<compile_context>
chip_gen: v7x
topology: tpu7x:2x2x1
jax: 0.10.0
libtpu: 0.0.40
codegen_flags: <defaults>
</compile_context>

<pallas_src>
import jax
import jax.numpy as jnp
from jax.experimental import pallas as pl
from jax.experimental.pallas import tpu as pltpu
import numpy as np


def _fold_bn(p):
    """Fold inference-mode BatchNorm into per-channel scale/shift."""
    scale = p["gamma"] / jnp.sqrt(p["var"] + p["eps"])
    shift = p["beta"] - p["mean"] * scale
    return scale, shift


# --------------------------------------------------------------------------
# Pallas kernel: one (batch, query-point tile) block of the attention math.
# All refs are 2-D and lane-dense; the neighbour axis S is a set of aligned
# lane-tiles of width TP in the flattened (C, S*TP) tensors.
# --------------------------------------------------------------------------
def point_transformer_kernel(pos_ref, xj_ref, xi_ref, fm_ref,
                             wt_ref, w_ref, b_ref, o_ref):
    C, TP = o_ref.shape
    S = fm_ref.shape[0]
    f32 = jnp.float32
    bf16 = jnp.bfloat16

    b_theta = b_ref[:, 0:1]          # folded theta bias + BN shift      (C, 1)
    c_rel = b_ref[:, 1:2]            # folded constant of the gamma path (C, 1)
    b_alpha = b_ref[:, 2:3]          # conv_alpha bias                   (C, 1)

    w_xj = w_ref[0:2 * C, :]         # [-G@W_psi ; W_alpha]              (2C, C)
    w_g = w_ref[2 * C:3 * C, :]      # G = BN_g . W_gamma2 @ W_gamma1    (C, C)
    w_gphi = w_ref[3 * C:4 * C, :]   # G @ W_phi                         (C, C)

    # delta = relu(bn_theta(conv_theta2(conv_theta1(position_vector))))  (folded)
    delta = jnp.maximum(
        jnp.dot(wt_ref[...], pos_ref[...], preferred_element_type=f32) + b_theta,
        0.0)                                                            # (C, S*TP)

    # Single stacked matmul over x_j: rows [0,C) = -G@W_psi@x_j, rows [C,2C) = W_alpha@x_j.
    y = jnp.dot(w_xj, xj_ref[...], preferred_element_type=f32)          # (2C, S*TP)
    gd = jnp.dot(w_g, delta.astype(bf16), preferred_element_type=f32)   # (C, S*TP)

    # Per-query-point term (independent of the neighbour axis): G@phi(x_i) + const.
    xi_t = jnp.dot(w_gphi, xi_ref[...], preferred_element_type=f32) + c_rel   # (C, TP)

    rel_lin = y[:C, :] + gd                          # gamma path pre-relu, minus xi term
    feat_lin = y[C:, :] + delta + b_alpha            # conv_alpha(x_j) + delta (pre-mask)

    # Softmax over the neighbour axis == over S aligned lane-tiles of width TP.
    m = jnp.full((C, TP), -jnp.inf, f32)
    for s in range(S):
        m = jnp.maximum(m, rel_lin[:, s * TP:(s + 1) * TP])
    m = jnp.maximum(m + xi_t, 0.0)                   # = max_s relu(rel_lin_s + xi_t)

    num = jnp.zeros((C, TP), f32)
    den = jnp.zeros((C, TP), f32)
    for s in range(S):
        sl = slice(s * TP, (s + 1) * TP)
        r = jnp.maximum(rel_lin[:, sl] + xi_t, 0.0)
        e = jnp.exp(r - m)
        den = den + e
        fmask_s = fm_ref[s:s + 1, :].astype(f32)     # (1, TP): nb_mask + (1 - query_mask)
        num = num + e * (feat_lin[:, sl] * fmask_s)

    o_ref[...] = num * pl.reciprocal(den, approx=False)


# --------------------------------------------------------------------------
# Host wrapper around pallas_call.
# --------------------------------------------------------------------------
def point_transformer_attention(x_j, position_vector, neighborhood_mask,
                                x_i, query_mask, params, *, tp=128):
    B, C, P, S = x_j.shape
    assert position_vector.shape == (B, 3, P, S)
    assert P % tp == 0, "query-point count must be divisible by the point tile"
    nblk = P // tp
    L = S * tp
    bf16 = jnp.bfloat16

    def tile_neighbour_major(a):
        # (B, Cd, P, S) -> (B, P//tp, Cd, S*tp): query points in the minor lane dim.
        Cd = a.shape[1]
        a = a.reshape(B, Cd, nblk, tp, S)
        a = jnp.transpose(a, (0, 2, 1, 4, 3))
        return a.reshape(B, nblk, Cd, L)

    pos_t = tile_neighbour_major(position_vector).astype(bf16)     # (B, nblk, 3, L)
    xj_t = tile_neighbour_major(x_j).astype(bf16)                  # (B, nblk, C, L)
    xi_b = x_i.astype(bf16)                                        # (B, C, P)

    fmask = neighborhood_mask.astype(jnp.float32) + \
        (1.0 - query_mask.astype(jnp.float32))[:, :, None]         # (B, P, S)
    fmask = jnp.transpose(fmask.reshape(B, nblk, tp, S), (0, 1, 3, 2)).astype(bf16)

    # ---- Fold BatchNorm + paired 1x1 convs into effective weights (host, f32) ----
    bn_t_scale, bn_t_shift = _fold_bn(params["bn_theta"])
    bn_g_scale, bn_g_shift = _fold_bn(params["bn_gamma"])

    w_theta = (bn_t_scale[:, None] * params["w_theta2"]) @ params["w_theta1"]     # (C, 3)
    b_theta = bn_t_scale * (params["w_theta2"] @ params["b_theta1"]
                            + params["b_theta2"]) + bn_t_shift

    G = bn_g_scale[:, None] * (params["w_gamma2"] @ params["w_gamma1"])           # (C, C)
    b_g = bn_g_scale * (params["w_gamma2"] @ params["b_gamma1"]
                        + params["b_gamma2"]) + bn_g_shift

    w_gphi = G @ params["w_phi"]
    w_gpsi = G @ params["w_psi"]
    c_rel = G @ (params["b_phi"] - params["b_psi"]) + b_g

    w_stack = jnp.concatenate(
        [-w_gpsi, params["w_alpha"], G, w_gphi], axis=0).astype(bf16)             # (4C, C)
    wt = w_theta.astype(bf16)                                                     # (C, 3)
    b_stack = jnp.stack(
        [b_theta, c_rel, params["b_alpha"]], axis=1).astype(jnp.float32)          # (C, 3)

    flops = int(2 * B * P * S * C * (3 + 3 * C) + 2 * B * P * C * C)
    transcendentals = int(B * P * S * C)
    bytes_accessed = int(2 * B * P * S * (C + 3 + 1) + 2 * B * C * P + 4 * B * C * P)

    tiled4 = lambda c, w: pl.BlockSpec((pl.Squeezed(), pl.Squeezed(), c, w),
                                       lambda b, p: (b, p, 0, 0))
    per_point = lambda c: pl.BlockSpec((pl.Squeezed(), c, tp), lambda b, p: (b, 0, p))

    return pl.pallas_call(
        point_transformer_kernel,
        out_shape=jax.ShapeDtypeStruct((B, C, P), jnp.float32),
        grid_spec=pltpu.PrefetchScalarGridSpec(
            num_scalar_prefetch=0,
            grid=(B, nblk),
            in_specs=[
                tiled4(3, L),                                    # position vectors
                tiled4(C, L),                                    # x_j (grouped features)
                per_point(C),                                    # x_i (nearest support feat)
                tiled4(S, tp),                                   # fmask
                pl.BlockSpec((C, 3), lambda b, p: (0, 0)),       # folded theta weight
                pl.BlockSpec((4 * C, C), lambda b, p: (0, 0)),   # stacked CxC weights
                pl.BlockSpec((C, 3), lambda b, p: (0, 0)),       # stacked bias columns
            ],
            out_specs=per_point(C),
        ),
        compiler_params=pltpu.CompilerParams(
            dimension_semantics=("parallel", "parallel"),
            vmem_limit_bytes=32 * 1024 * 1024),
        cost_estimate=pl.CostEstimate(flops=flops,
                                      transcendentals=transcendentals,
                                      bytes_accessed=bytes_accessed),
    )(pos_t, xj_t, xi_b, fmask, wt, w_stack, b_stack)


# --------------------------------------------------------------------------
# JAX stand-ins for the custom CUDA grouping ops.
# TODO(synk): MaskedQueryAndGroup / MaskedNearestQueryAndGroup are
# data-dependent ball-query gathers (custom CUDA ops upstream); they are
# implemented in plain JAX here rather than as a Pallas scalar-prefetch
# gather kernel.
# --------------------------------------------------------------------------
def masked_query_and_group(query_xyz, support_xyz, query_mask, support_mask,
                           features, *, radius, nsample):
    """use_xyz=False, ret_grouped_xyz=True, normalize_xyz=True semantics."""
    del query_mask  # the forward pass compensates via feature_mask
    B, P, _ = query_xyz.shape
    M = support_xyz.shape[1]
    C = features.shape[1]

    d2 = jnp.sum((query_xyz[:, :, None, :] - support_xyz[:, None, :, :]) ** 2, axis=-1)
    valid = (d2 < radius * radius) & (support_mask[:, None, :] > 0)          # (B,P,M)
    order = jnp.where(valid, jnp.arange(M, dtype=jnp.int32)[None, None, :], M)
    order = jnp.sort(order, axis=-1)[:, :, :nsample]                         # (B,P,S)
    cnt = jnp.sum(valid, axis=-1)                                            # (B,P)
    slot_ok = jnp.arange(nsample)[None, None, :] < jnp.minimum(cnt, nsample)[:, :, None]
    nb_mask = slot_ok.astype(jnp.float32)
    first = jnp.where(cnt > 0, order[:, :, 0], 0)
    idx = jnp.where(slot_ok, order, first[:, :, None])
    idx = jnp.clip(idx, 0, M - 1).astype(jnp.int32)

    flat = idx.reshape(B, P * nsample)
    g_xyz = jnp.take_along_axis(support_xyz, flat[:, :, None], axis=1)
    g_xyz = g_xyz.reshape(B, P, nsample, 3) - query_xyz[:, :, None, :]
    g_xyz = g_xyz / radius                                                   # normalize_xyz
    position_vector = jnp.transpose(g_xyz, (0, 3, 1, 2))                     # (B,3,P,S)

    g_feat = jnp.take_along_axis(
        features, jnp.broadcast_to(flat[:, None, :], (B, C, P * nsample)), axis=2)
    x_j = g_feat.reshape(B, C, P, nsample)                                   # (B,C,P,S)
    return x_j, position_vector, nb_mask


def masked_nearest_query_and_group(query_xyz, support_xyz, query_mask,
                                   support_mask, features):
    del query_mask
    B, P, _ = query_xyz.shape
    C = features.shape[1]
    d2 = jnp.sum((query_xyz[:, :, None, :] - support_xyz[:, None, :, :]) ** 2, axis=-1)
    d2 = jnp.where(support_mask[:, None, :] > 0, d2, jnp.inf)
    nn = jnp.argmin(d2, axis=-1).astype(jnp.int32)                           # (B,P)
    x_i = jnp.take_along_axis(
        features, jnp.broadcast_to(nn[:, None, :], (B, C, P)), axis=2)       # (B,C,P)
    return x_i


def point_transformer_forward(query_xyz, support_xyz, query_mask, support_mask,
                              support_features, params, *, radius, nsample, tp=128):
    """Full Point_Transformer.forward: grouping (JAX) + attention (Pallas)."""
    x_j, pos, nb_mask = masked_query_and_group(
        query_xyz, support_xyz, query_mask, support_mask, support_features,
        radius=radius, nsample=nsample)
    x_i = masked_nearest_query_and_group(
        query_xyz, support_xyz, query_mask, support_mask, support_features)
    return point_transformer_attention(x_j, pos, nb_mask, x_i, query_mask,
                                       params, tp=tp)


# --------------------------------------------------------------------------
# Pure-JAX (f32) reference of the attention math, mirroring the torch forward.
# --------------------------------------------------------------------------
def attention_ref(x_j, pos, nb_mask, x_i, query_mask, params):
    def conv(w, b, x):   # 1x1 Conv2d == per-channel matmul
        return jnp.einsum("oc,bc...->bo...", w, x) + b.reshape((1, -1) + (1,) * (x.ndim - 2))

    def bn(x, p):        # inference-mode BatchNorm2d
        scale, shift = _fold_bn(p)
        return x * scale.reshape(1, -1, 1, 1) + shift.reshape(1, -1, 1, 1)

    S = x_j.shape[-1]
    delta = jax.nn.relu(bn(conv(params["w_theta2"], params["b_theta2"],
                                conv(params["w_theta1"], params["b_theta1"], pos)),
                           params["bn_theta"]))
    x_i_rep = jnp.repeat(x_i[..., None], S, axis=-1)
    lin_xi = conv(params["w_phi"], params["b_phi"], x_i_rep)
    lin_xj = conv(params["w_psi"], params["b_psi"], x_j)
    rel = lin_xi - lin_xj + delta
    rel = jax.nn.relu(bn(conv(params["w_gamma2"], params["b_gamma2"],
                              conv(params["w_gamma1"], params["b_gamma1"], rel)),
                         params["bn_gamma"]))
    weights = jax.nn.softmax(rel, axis=-1)
    feats = conv(params["w_alpha"], params["b_alpha"], x_j) + delta
    fmask = nb_mask + (1.0 - query_mask[:, :, None])
    feats = feats * fmask[:, None, :, :]
    return jnp.sum(weights * feats, axis=-1)


# --------------------------------------------------------------------------
# Deterministic parameter init (PyTorch-like conv init; nontrivial BN stats).
# TODO(synk): BatchNorm2d is applied in inference form (folded running stats);
# training-mode batch statistics are not computed.
# --------------------------------------------------------------------------
def init_params(key, C):
    def conv_init(k, fan_in, shape_w):
        kw, kb = jax.random.split(k)
        bound = 1.0 / np.sqrt(fan_in)
        return (jax.random.uniform(kw, shape_w, jnp.float32, -bound, bound),
                jax.random.uniform(kb, (C,), jnp.float32, -bound, bound))

    def bn_init(k):
        k1, k2, k3, k4 = jax.random.split(k, 4)
        return {"gamma": jax.random.uniform(k1, (C,), jnp.float32, 0.8, 1.2),
                "beta": jax.random.uniform(k2, (C,), jnp.float32, -0.1, 0.1),
                "mean": jax.random.uniform(k3, (C,), jnp.float32, -0.1, 0.1),
                "var": jax.random.uniform(k4, (C,), jnp.float32, 0.5, 1.5),
                "eps": 1e-5}

    keys = jax.random.split(key, 9)
    p = {}
    p["w_theta1"], p["b_theta1"] = conv_init(keys[0], 3, (C, 3))
    p["w_theta2"], p["b_theta2"] = conv_init(keys[1], C, (C, C))
    p["w_phi"], p["b_phi"] = conv_init(keys[2], C, (C, C))
    p["w_psi"], p["b_psi"] = conv_init(keys[3], C, (C, C))
    p["w_gamma1"], p["b_gamma1"] = conv_init(keys[4], C, (C, C))
    p["w_gamma2"], p["b_gamma2"] = conv_init(keys[5], C, (C, C))
    p["w_alpha"], p["b_alpha"] = conv_init(keys[6], C, (C, C))
    p["bn_theta"] = bn_init(keys[7])
    p["bn_gamma"] = bn_init(keys[8])
    return p


if __name__ == "__main__":
    B, C, P, M, S = 2, 32, 256, 320, 16       # batch, channels, query pts, support pts, nsample
    RADIUS, TP = 0.25, 128                    # ball radius, query-point tile (lane-dense)

    key = jax.random.PRNGKey(0)
    k = jax.random.split(key, 6)
    query_xyz = jax.random.uniform(k[0], (B, P, 3), jnp.float32)
    support_xyz = jax.random.uniform(k[1], (B, M, 3), jnp.float32)
    query_mask = (jax.random.uniform(k[2], (B, P)) < 0.9).astype(jnp.float32)
    support_mask = (jax.random.uniform(k[3], (B, M)) < 0.9).astype(jnp.float32)
    support_features = jax.random.normal(k[4], (B, C, M), jnp.float32)
    params = init_params(k[5], C)

    # Full forward: grouping (JAX) + attention (Pallas kernel).
    out = point_transformer_forward(query_xyz, support_xyz, query_mask,
                                    support_mask, support_features, params,
                                    radius=RADIUS, nsample=S, tp=TP)
    out = jax.block_until_ready(out)

    # Pure-JAX f32 reference on the same grouped tensors.
    x_j, pos, nb_mask = masked_query_and_group(query_xyz, support_xyz, query_mask,
                                               support_mask, support_features,
                                               radius=RADIUS, nsample=S)
    x_i = masked_nearest_query_and_group(query_xyz, support_xyz, query_mask,
                                         support_mask, support_features)
    ref = jax.block_until_ready(attention_ref(x_j, pos, nb_mask, x_i, query_mask, params))

    # Tolerance reflects bf16 MXU inputs (f32 accumulation) + folded weights
    # in the kernel vs. the unfolded f32 reference.
    np.testing.assert_allclose(np.asarray(out), np.asarray(ref), rtol=3e-2, atol=3e-2)
    print("KERNEL_OK")
</pallas_src>

<mosaic_0001>
module attributes {stable_mosaic.version = 11 : i64} {
  func.func @point_transformer_kernel(%arg0: i32, %arg1: i32, %arg2: memref<1x1x3x2048xbf16, #tpu.memory_space<vmem>>, %arg3: memref<1x1x32x2048xbf16, #tpu.memory_space<vmem>>, %arg4: memref<1x32x128xbf16, #tpu.memory_space<vmem>>, %arg5: memref<1x1x16x128xbf16, #tpu.memory_space<vmem>>, %arg6: memref<32x3xbf16, #tpu.memory_space<vmem>>, %arg7: memref<128x32xbf16, #tpu.memory_space<vmem>>, %arg8: memref<32x3xf32, #tpu.memory_space<vmem>>, %arg9: memref<1x32x128xf32, #tpu.memory_space<vmem>>) attributes {dimension_semantics = [#tpu.dimension_semantics<parallel>, #tpu.dimension_semantics<parallel>], iteration_bounds = array<i64: 2, 2>, scalar_prefetch = 0 : i64, scratch_operands = 0 : i64, tpu.core_type = #tpu.core_type<tc>, window_params = [{transform_indices = @transform_0, window_bounds = array<i64: 1, 1, 3, 2048>}, {transform_indices = @transform_1, window_bounds = array<i64: 1, 1, 32, 2048>}, {transform_indices = @transform_2, window_bounds = array<i64: 1, 32, 128>}, {transform_indices = @transform_3, window_bounds = array<i64: 1, 1, 16, 128>}, {pipeline_mode = #tpu.pipeline_mode<synchronous>, transform_indices = @transform_4, window_bounds = array<i64: 32, 3>}, {pipeline_mode = #tpu.pipeline_mode<synchronous>, transform_indices = @transform_5, window_bounds = array<i64: 128, 32>}, {pipeline_mode = #tpu.pipeline_mode<synchronous>, transform_indices = @transform_6, window_bounds = array<i64: 32, 3>}, {transform_indices = @transform_7, window_bounds = array<i64: 1, 32, 128>}]} {
    %c0 = arith.constant 0 : index
    %c0_0 = arith.constant 0 : index
    %0 = vector.load %arg8[%c0, %c0_0] : memref<32x3xf32, #tpu.memory_space<vmem>>, vector<32x1xf32>
    %c0_1 = arith.constant 0 : index
    %c1 = arith.constant 1 : index
    %1 = vector.load %arg8[%c0_1, %c1] : memref<32x3xf32, #tpu.memory_space<vmem>>, vector<32x1xf32>
    %c0_2 = arith.constant 0 : index
    %c2 = arith.constant 2 : index
    %2 = vector.load %arg8[%c0_2, %c2] : memref<32x3xf32, #tpu.memory_space<vmem>>, vector<32x1xf32>
    %c0_3 = arith.constant 0 : index
    %c0_4 = arith.constant 0 : index
    %3 = vector.load %arg7[%c0_3, %c0_4] : memref<128x32xbf16, #tpu.memory_space<vmem>>, vector<64x32xbf16>
    %c64 = arith.constant 64 : index
    %c0_5 = arith.constant 0 : index
    %4 = vector.load %arg7[%c64, %c0_5] : memref<128x32xbf16, #tpu.memory_space<vmem>>, vector<32x32xbf16>
    %c96 = arith.constant 96 : index
    %c0_6 = arith.constant 0 : index
    %5 = vector.load %arg7[%c96, %c0_6] : memref<128x32xbf16, #tpu.memory_space<vmem>>, vector<32x32xbf16>
    %c0_7 = arith.constant 0 : index
    %c0_8 = arith.constant 0 : index
    %6 = vector.load %arg6[%c0_7, %c0_8] : memref<32x3xbf16, #tpu.memory_space<vmem>>, vector<32x3xbf16>
    %c0_9 = arith.constant 0 : index
    %c0_10 = arith.constant 0 : index
    %c0_11 = arith.constant 0 : index
    %c0_12 = arith.constant 0 : index
    %7 = vector.load %arg2[%c0_9, %c0_10, %c0_11, %c0_12] : memref<1x1x3x2048xbf16, #tpu.memory_space<vmem>>, vector<1x1x3x2048xbf16>
    %8 = vector.shape_cast %7 : vector<1x1x3x2048xbf16> to vector<3x2048xbf16>
    %cst = arith.constant dense<0.000000e+00> : vector<32x2048xf32>
    %9 = tpu.matmul %6, %8, %cst {dimension_numbers = #tpu.dot_dimension_numbers<[1], [0], [0], [1], [0, 0, 1, 1], [], []>} : vector<32x3xbf16>, vector<3x2048xbf16>, vector<32x2048xf32> -> vector<32x2048xf32>
    %10 = vector.broadcast %0 : vector<32x1xf32> to vector<32x2048xf32>
    %11 = arith.addf %9, %10 : vector<32x2048xf32>
    %cst_13 = arith.constant 0.000000e+00 : f32
    %12 = vector.broadcast %cst_13 : f32 to vector<32x2048xf32>
    %13 = arith.maximumf %11, %12 : vector<32x2048xf32>
    %c0_14 = arith.constant 0 : index
    %c0_15 = arith.constant 0 : index
    %c0_16 = arith.constant 0 : index
    %c0_17 = arith.constant 0 : index
    %14 = vector.load %arg3[%c0_14, %c0_15, %c0_16, %c0_17] : memref<1x1x32x2048xbf16, #tpu.memory_space<vmem>>, vector<1x1x32x2048xbf16>
    %15 = vector.shape_cast %14 : vector<1x1x32x2048xbf16> to vector<32x2048xbf16>
    %cst_18 = arith.constant dense<0.000000e+00> : vector<64x2048xf32>
    %16 = tpu.matmul %3, %15, %cst_18 {dimension_numbers = #tpu.dot_dimension_numbers<[1], [0], [0], [1], [0, 0, 1, 1], [], []>} : vector<64x32xbf16>, vector<32x2048xbf16>, vector<64x2048xf32> -> vector<64x2048xf32>
    %17 = arith.truncf %13 : vector<32x2048xf32> to vector<32x2048xbf16>
    %cst_19 = arith.constant dense<0.000000e+00> : vector<32x2048xf32>
    %18 = tpu.matmul %4, %17, %cst_19 {dimension_numbers = #tpu.dot_dimension_numbers<[1], [0], [0], [1], [0, 0, 1, 1], [], []>} : vector<32x32xbf16>, vector<32x2048xbf16>, vector<32x2048xf32> -> vector<32x2048xf32>
    %c0_20 = arith.constant 0 : index
    %c0_21 = arith.constant 0 : index
    %c0_22 = arith.constant 0 : index
    %19 = vector.load %arg4[%c0_20, %c0_21, %c0_22] : memref<1x32x128xbf16, #tpu.memory_space<vmem>>, vector<1x32x128xbf16>
    %20 = vector.shape_cast %19 : vector<1x32x128xbf16> to vector<32x128xbf16>
    %cst_23 = arith.constant dense<0.000000e+00> : vector<32x128xf32>
    %21 = tpu.matmul %5, %20, %cst_23 {dimension_numbers = #tpu.dot_dimension_numbers<[1], [0], [0], [1], [0, 0, 1, 1], [], []>} : vector<32x32xbf16>, vector<32x128xbf16>, vector<32x128xf32> -> vector<32x128xf32>
    %22 = vector.broadcast %1 : vector<32x1xf32> to vector<32x128xf32>
    %23 = arith.addf %21, %22 : vector<32x128xf32>
    %24 = vector.extract_strided_slice %16 {offsets = [0, 0], sizes = [32, 2048], strides = [1, 1]} : vector<64x2048xf32> to vector<32x2048xf32>
    %25 = arith.addf %24, %18 : vector<32x2048xf32>
    %26 = vector.extract_strided_slice %16 {offsets = [32, 0], sizes = [32, 2048], strides = [1, 1]} : vector<64x2048xf32> to vector<32x2048xf32>
    %27 = arith.addf %26, %13 : vector<32x2048xf32>
    %28 = vector.broadcast %2 : vector<32x1xf32> to vector<32x2048xf32>
    %29 = arith.addf %27, %28 : vector<32x2048xf32>
    %cst_24 = arith.constant 0xFF800000 : f32
    %30 = vector.broadcast %cst_24 : f32 to vector<32x128xf32>
    %31 = vector.extract_strided_slice %25 {offsets = [0, 0], sizes = [32, 128], strides = [1, 1]} : vector<32x2048xf32> to vector<32x128xf32>
    %32 = arith.maximumf %30, %31 : vector<32x128xf32>
    %33 = vector.extract_strided_slice %25 {offsets = [0, 128], sizes = [32, 128], strides = [1, 1]} : vector<32x2048xf32> to vector<32x128xf32>
    %34 = arith.maximumf %32, %33 : vector<32x128xf32>
    %35 = vector.extract_strided_slice %25 {offsets = [0, 256], sizes = [32, 128], strides = [1, 1]} : vector<32x2048xf32> to vector<32x128xf32>
    %36 = arith.maximumf %34, %35 : vector<32x128xf32>
    %37 = vector.extract_strided_slice %25 {offsets = [0, 384], sizes = [32, 128], strides = [1, 1]} : vector<32x2048xf32> to vector<32x128xf32>
    %38 = arith.maximumf %36, %37 : vector<32x128xf32>
    %39 = vector.extract_strided_slice %25 {offsets = [0, 512], sizes = [32, 128], strides = [1, 1]} : vector<32x2048xf32> to vector<32x128xf32>
    %40 = arith.maximumf %38, %39 : vector<32x128xf32>
    %41 = vector.extract_strided_slice %25 {offsets = [0, 640], sizes = [32, 128], strides = [1, 1]} : vector<32x2048xf32> to vector<32x128xf32>
    %42 = arith.maximumf %40, %41 : vector<32x128xf32>
    %43 = vector.extract_strided_slice %25 {offsets = [0, 768], sizes = [32, 128], strides = [1, 1]} : vector<32x2048xf32> to vector<32x128xf32>
    %44 = arith.maximumf %42, %43 : vector<32x128xf32>
    %45 = vector.extract_strided_slice %25 {offsets = [0, 896], sizes = [32, 128], strides = [1, 1]} : vector<32x2048xf32> to vector<32x128xf32>
    %46 = arith.maximumf %44, %45 : vector<32x128xf32>
    %47 = vector.extract_strided_slice %25 {offsets = [0, 1024], sizes = [32, 128], strides = [1, 1]} : vector<32x2048xf32> to vector<32x128xf32>
    %48 = arith.maximumf %46, %47 : vector<32x128xf32>
    %49 = vector.extract_strided_slice %25 {offsets = [0, 1152], sizes = [32, 128], strides = [1, 1]} : vector<32x2048xf32> to vector<32x128xf32>
    %50 = arith.maximumf %48, %49 : vector<32x128xf32>
    %51 = vector.extract_strided_slice %25 {offsets = [0, 1280], sizes = [32, 128], strides = [1, 1]} : vector<32x2048xf32> to vector<32x128xf32>
    %52 = arith.maximumf %50, %51 : vector<32x128xf32>
    %53 = vector.extract_strided_slice %25 {offsets = [0, 1408], sizes = [32, 128], strides = [1, 1]} : vector<32x2048xf32> to vector<32x128xf32>
    %54 = arith.maximumf %52, %53 : vector<32x128xf32>
    %55 = vector.extract_strided_slice %25 {offsets = [0, 1536], sizes = [32, 128], strides = [1, 1]} : vector<32x2048xf32> to vector<32x128xf32>
    %56 = arith.maximumf %54, %55 : vector<32x128xf32>
    %57 = vector.extract_strided_slice %25 {offsets = [0, 1664], sizes = [32, 128], strides = [1, 1]} : vector<32x2048xf32> to vector<32x128xf32>
    %58 = arith.maximumf %56, %57 : vector<32x128xf32>
    %59 = vector.extract_strided_slice %25 {offsets = [0, 1792], sizes = [32, 128], strides = [1, 1]} : vector<32x2048xf32> to vector<32x128xf32>
    %60 = arith.maximumf %58, %59 : vector<32x128xf32>
    %61 = vector.extract_strided_slice %25 {offsets = [0, 1920], sizes = [32, 128], strides = [1, 1]} : vector<32x2048xf32> to vector<32x128xf32>
    %62 = arith.maximumf %60, %61 : vector<32x128xf32>
    %63 = arith.addf %62, %23 : vector<32x128xf32>
    %cst_25 = arith.constant 0.000000e+00 : f32
    %64 = vector.broadcast %cst_25 : f32 to vector<32x128xf32>
    %65 = arith.maximumf %63, %64 : vector<32x128xf32>
    %cst_26 = arith.constant 0.000000e+00 : f32
    %66 = vector.broadcast %cst_26 : f32 to vector<32x128xf32>
    %cst_27 = arith.constant 0.000000e+00 : f32
    %67 = vector.broadcast %cst_27 : f32 to vector<32x128xf32>
    %68 = vector.extract_strided_slice %25 {offsets = [0, 0], sizes = [32, 128], strides = [1, 1]} : vector<32x2048xf32> to vector<32x128xf32>
    %69 = arith.addf %68, %23 : vector<32x128xf32>
    %cst_28 = arith.constant 0.000000e+00 : f32
    %70 = vector.broadcast %cst_28 : f32 to vector<32x128xf32>
    %71 = arith.maximumf %69, %70 : vector<32x128xf32>
    %72 = arith.subf %71, %65 : vector<32x128xf32>
    %73 = math.exp %72 : vector<32x128xf32>
    %74 = arith.addf %67, %73 : vector<32x128xf32>
    %c0_29 = arith.constant 0 : index
    %c0_30 = arith.constant 0 : index
    %c0_31 = arith.constant 0 : index
    %c0_32 = arith.constant 0 : index
    %75 = vector.load %arg5[%c0_29, %c0_30, %c0_31, %c0_32] : memref<1x1x16x128xbf16, #tpu.memory_space<vmem>>, vector<1x1x1x128xbf16>
    %76 = vector.shape_cast %75 : vector<1x1x1x128xbf16> to vector<1x128xbf16>
    %77 = arith.extf %76 : vector<1x128xbf16> to vector<1x128xf32>
    %78 = vector.extract_strided_slice %29 {offsets = [0, 0], sizes = [32, 128], strides = [1, 1]} : vector<32x2048xf32> to vector<32x128xf32>
    %79 = vector.broadcast %77 : vector<1x128xf32> to vector<32x128xf32>
    %80 = arith.mulf %78, %79 : vector<32x128xf32>
    %81 = arith.mulf %73, %80 : vector<32x128xf32>
    %82 = arith.addf %66, %81 : vector<32x128xf32>
    %83 = vector.extract_strided_slice %25 {offsets = [0, 128], sizes = [32, 128], strides = [1, 1]} : vector<32x2048xf32> to vector<32x128xf32>
    %84 = arith.addf %83, %23 : vector<32x128xf32>
    %cst_33 = arith.constant 0.000000e+00 : f32
    %85 = vector.broadcast %cst_33 : f32 to vector<32x128xf32>
    %86 = arith.maximumf %84, %85 : vector<32x128xf32>
    %87 = arith.subf %86, %65 : vector<32x128xf32>
    %88 = math.exp %87 : vector<32x128xf32>
    %89 = arith.addf %74, %88 : vector<32x128xf32>
    %c0_34 = arith.constant 0 : index
    %c0_35 = arith.constant 0 : index
    %c1_36 = arith.constant 1 : index
    %c0_37 = arith.constant 0 : index
    %90 = vector.load %arg5[%c0_34, %c0_35, %c1_36, %c0_37] : memref<1x1x16x128xbf16, #tpu.memory_space<vmem>>, vector<1x1x1x128xbf16>
    %91 = vector.shape_cast %90 : vector<1x1x1x128xbf16> to vector<1x128xbf16>
    %92 = arith.extf %91 : vector<1x128xbf16> to vector<1x128xf32>
    %93 = vector.extract_strided_slice %29 {offsets = [0, 128], sizes = [32, 128], strides = [1, 1]} : vector<32x2048xf32> to vector<32x128xf32>
    %94 = vector.broadcast %92 : vector<1x128xf32> to vector<32x128xf32>
    %95 = arith.mulf %93, %94 : vector<32x128xf32>
    %96 = arith.mulf %88, %95 : vector<32x128xf32>
    %97 = arith.addf %82, %96 : vector<32x128xf32>
    %98 = vector.extract_strided_slice %25 {offsets = [0, 256], sizes = [32, 128], strides = [1, 1]} : vector<32x2048xf32> to vector<32x128xf32>
    %99 = arith.addf %98, %23 : vector<32x128xf32>
    %cst_38 = arith.constant 0.000000e+00 : f32
    %100 = vector.broadcast %cst_38 : f32 to vector<32x128xf32>
    %101 = arith.maximumf %99, %100 : vector<32x128xf32>
    %102 = arith.subf %101, %65 : vector<32x128xf32>
    %103 = math.exp %102 : vector<32x128xf32>
    %104 = arith.addf %89, %103 : vector<32x128xf32>
    %c0_39 = arith.constant 0 : index
    %c0_40 = arith.constant 0 : index
    %c2_41 = arith.constant 2 : index
    %c0_42 = arith.constant 0 : index
    %105 = vector.load %arg5[%c0_39, %c0_40, %c2_41, %c0_42] : memref<1x1x16x128xbf16, #tpu.memory_space<vmem>>, vector<1x1x1x128xbf16>
    %106 = vector.shape_cast %105 : vector<1x1x1x128xbf16> to vector<1x128xbf16>
    %107 = arith.extf %106 : vector<1x128xbf16> to vector<1x128xf32>
    %108 = vector.extract_strided_slice %29 {offsets = [0, 256], sizes = [32, 128], strides = [1, 1]} : vector<32x2048xf32> to vector<32x128xf32>
    %109 = vector.broadcast %107 : vector<1x128xf32> to vector<32x128xf32>
    %110 = arith.mulf %108, %109 : vector<32x128xf32>
    %111 = arith.mulf %103, %110 : vector<32x128xf32>
    %112 = arith.addf %97, %111 : vector<32x128xf32>
    %113 = vector.extract_strided_slice %25 {offsets = [0, 384], sizes = [32, 128], strides = [1, 1]} : vector<32x2048xf32> to vector<32x128xf32>
    %114 = arith.addf %113, %23 : vector<32x128xf32>
    %cst_43 = arith.constant 0.000000e+00 : f32
    %115 = vector.broadcast %cst_43 : f32 to vector<32x128xf32>
    %116 = arith.maximumf %114, %115 : vector<32x128xf32>
    %117 = arith.subf %116, %65 : vector<32x128xf32>
    %118 = math.exp %117 : vector<32x128xf32>
    %119 = arith.addf %104, %118 : vector<32x128xf32>
    %c0_44 = arith.constant 0 : index
    %c0_45 = arith.constant 0 : index
    %c3 = arith.constant 3 : index
    %c0_46 = arith.constant 0 : index
    %120 = vector.load %arg5[%c0_44, %c0_45, %c3, %c0_46] : memref<1x1x16x128xbf16, #tpu.memory_space<vmem>>, vector<1x1x1x128xbf16>
    %121 = vector.shape_cast %120 : vector<1x1x1x128xbf16> to vector<1x128xbf16>
    %122 = arith.extf %121 : vector<1x128xbf16> to vector<1x128xf32>
    %123 = vector.extract_strided_slice %29 {offsets = [0, 384], sizes = [32, 128], strides = [1, 1]} : vector<32x2048xf32> to vector<32x128xf32>
    %124 = vector.broadcast %122 : vector<1x128xf32> to vector<32x128xf32>
    %125 = arith.mulf %123, %124 : vector<32x128xf32>
    %126 = arith.mulf %118, %125 : vector<32x128xf32>
    %127 = arith.addf %112, %126 : vector<32x128xf32>
    %128 = vector.extract_strided_slice %25 {offsets = [0, 512], sizes = [32, 128], strides = [1, 1]} : vector<32x2048xf32> to vector<32x128xf32>
    %129 = arith.addf %128, %23 : vector<32x128xf32>
    %cst_47 = arith.constant 0.000000e+00 : f32
    %130 = vector.broadcast %cst_47 : f32 to vector<32x128xf32>
    %131 = arith.maximumf %129, %130 : vector<32x128xf32>
    %132 = arith.subf %131, %65 : vector<32x128xf32>
    %133 = math.exp %132 : vector<32x128xf32>
    %134 = arith.addf %119, %133 : vector<32x128xf32>
    %c0_48 = arith.constant 0 : index
    %c0_49 = arith.constant 0 : index
    %c4 = arith.constant 4 : index
    %c0_50 = arith.constant 0 : index
    %135 = vector.load %arg5[%c0_48, %c0_49, %c4, %c0_50] : memref<1x1x16x128xbf16, #tpu.memory_space<vmem>>, vector<1x1x1x128xbf16>
    %136 = vector.shape_cast %135 : vector<1x1x1x128xbf16> to vector<1x128xbf16>
    %137 = arith.extf %136 : vector<1x128xbf16> to vector<1x128xf32>
    %138 = vector.extract_strided_slice %29 {offsets = [0, 512], sizes = [32, 128], strides = [1, 1]} : vector<32x2048xf32> to vector<32x128xf32>
    %139 = vector.broadcast %137 : vector<1x128xf32> to vector<32x128xf32>
    %140 = arith.mulf %138, %139 : vector<32x128xf32>
    %141 = arith.mulf %133, %140 : vector<32x128xf32>
    %142 = arith.addf %127, %141 : vector<32x128xf32>
    %143 = vector.extract_strided_slice %25 {offsets = [0, 640], sizes = [32, 128], strides = [1, 1]} : vector<32x2048xf32> to vector<32x128xf32>
    %144 = arith.addf %143, %23 : vector<32x128xf32>
    %cst_51 = arith.constant 0.000000e+00 : f32
    %145 = vector.broadcast %cst_51 : f32 to vector<32x128xf32>
    %146 = arith.maximumf %144, %145 : vector<32x128xf32>
    %147 = arith.subf %146, %65 : vector<32x128xf32>
    %148 = math.exp %147 : vector<32x128xf32>
    %149 = arith.addf %134, %148 : vector<32x128xf32>
    %c0_52 = arith.constant 0 : index
    %c0_53 = arith.constant 0 : index
    %c5 = arith.constant 5 : index
    %c0_54 = arith.constant 0 : index
    %150 = vector.load %arg5[%c0_52, %c0_53, %c5, %c0_54] : memref<1x1x16x128xbf16, #tpu.memory_space<vmem>>, vector<1x1x1x128xbf16>
    %151 = vector.shape_cast %150 : vector<1x1x1x128xbf16> to vector<1x128xbf16>
    %152 = arith.extf %151 : vector<1x128xbf16> to vector<1x128xf32>
    %153 = vector.extract_strided_slice %29 {offsets = [0, 640], sizes = [32, 128], strides = [1, 1]} : vector<32x2048xf32> to vector<32x128xf32>
    %154 = vector.broadcast %152 : vector<1x128xf32> to vector<32x128xf32>
    %155 = arith.mulf %153, %154 : vector<32x128xf32>
    %156 = arith.mulf %148, %155 : vector<32x128xf32>
    %157 = arith.addf %142, %156 : vector<32x128xf32>
    %158 = vector.extract_strided_slice %25 {offsets = [0, 768], sizes = [32, 128], strides = [1, 1]} : vector<32x2048xf32> to vector<32x128xf32>
    %159 = arith.addf %158, %23 : vector<32x128xf32>
    %cst_55 = arith.constant 0.000000e+00 : f32
    %160 = vector.broadcast %cst_55 : f32 to vector<32x128xf32>
    %161 = arith.maximumf %159, %160 : vector<32x128xf32>
    %162 = arith.subf %161, %65 : vector<32x128xf32>
    %163 = math.exp %162 : vector<32x128xf32>
    %164 = arith.addf %149, %163 : vector<32x128xf32>
    %c0_56 = arith.constant 0 : index
    %c0_57 = arith.constant 0 : index
    %c6 = arith.constant 6 : index
    %c0_58 = arith.constant 0 : index
    %165 = vector.load %arg5[%c0_56, %c0_57, %c6, %c0_58] : memref<1x1x16x128xbf16, #tpu.memory_space<vmem>>, vector<1x1x1x128xbf16>
    %166 = vector.shape_cast %165 : vector<1x1x1x128xbf16> to vector<1x128xbf16>
    %167 = arith.extf %166 : vector<1x128xbf16> to vector<1x128xf32>
    %168 = vector.extract_strided_slice %29 {offsets = [0, 768], sizes = [32, 128], strides = [1, 1]} : vector<32x2048xf32> to vector<32x128xf32>
    %169 = vector.broadcast %167 : vector<1x128xf32> to vector<32x128xf32>
    %170 = arith.mulf %168, %169 : vector<32x128xf32>
    %171 = arith.mulf %163, %170 : vector<32x128xf32>
    %172 = arith.addf %157, %171 : vector<32x128xf32>
    %173 = vector.extract_strided_slice %25 {offsets = [0, 896], sizes = [32, 128], strides = [1, 1]} : vector<32x2048xf32> to vector<32x128xf32>
    %174 = arith.addf %173, %23 : vector<32x128xf32>
    %cst_59 = arith.constant 0.000000e+00 : f32
    %175 = vector.broadcast %cst_59 : f32 to vector<32x128xf32>
    %176 = arith.maximumf %174, %175 : vector<32x128xf32>
    %177 = arith.subf %176, %65 : vector<32x128xf32>
    %178 = math.exp %177 : vector<32x128xf32>
    %179 = arith.addf %164, %178 : vector<32x128xf32>
    %c0_60 = arith.constant 0 : index
    %c0_61 = arith.constant 0 : index
    %c7 = arith.constant 7 : index
    %c0_62 = arith.constant 0 : index
    %180 = vector.load %arg5[%c0_60, %c0_61, %c7, %c0_62] : memref<1x1x16x128xbf16, #tpu.memory_space<vmem>>, vector<1x1x1x128xbf16>
    %181 = vector.shape_cast %180 : vector<1x1x1x128xbf16> to vector<1x128xbf16>
    %182 = arith.extf %181 : vector<1x128xbf16> to vector<1x128xf32>
    %183 = vector.extract_strided_slice %29 {offsets = [0, 896], sizes = [32, 128], strides = [1, 1]} : vector<32x2048xf32> to vector<32x128xf32>
    %184 = vector.broadcast %182 : vector<1x128xf32> to vector<32x128xf32>
    %185 = arith.mulf %183, %184 : vector<32x128xf32>
    %186 = arith.mulf %178, %185 : vector<32x128xf32>
    %187 = arith.addf %172, %186 : vector<32x128xf32>
    %188 = vector.extract_strided_slice %25 {offsets = [0, 1024], sizes = [32, 128], strides = [1, 1]} : vector<32x2048xf32> to vector<32x128xf32>
    %189 = arith.addf %188, %23 : vector<32x128xf32>
    %cst_63 = arith.constant 0.000000e+00 : f32
    %190 = vector.broadcast %cst_63 : f32 to vector<32x128xf32>
    %191 = arith.maximumf %189, %190 : vector<32x128xf32>
    %192 = arith.subf %191, %65 : vector<32x128xf32>
    %193 = math.exp %192 : vector<32x128xf32>
    %194 = arith.addf %179, %193 : vector<32x128xf32>
    %c0_64 = arith.constant 0 : index
    %c0_65 = arith.constant 0 : index
    %c8 = arith.constant 8 : index
    %c0_66 = arith.constant 0 : index
    %195 = vector.load %arg5[%c0_64, %c0_65, %c8, %c0_66] : memref<1x1x16x128xbf16, #tpu.memory_space<vmem>>, vector<1x1x1x128xbf16>
    %196 = vector.shape_cast %195 : vector<1x1x1x128xbf16> to vector<1x128xbf16>
    %197 = arith.extf %196 : vector<1x128xbf16> to vector<1x128xf32>
    %198 = vector.extract_strided_slice %29 {offsets = [0, 1024], sizes = [32, 128], strides = [1, 1]} : vector<32x2048xf32> to vector<32x128xf32>
    %199 = vector.broadcast %197 : vector<1x128xf32> to vector<32x128xf32>
    %200 = arith.mulf %198, %199 : vector<32x128xf32>
    %201 = arith.mulf %193, %200 : vector<32x128xf32>
    %202 = arith.addf %187, %201 : vector<32x128xf32>
    %203 = vector.extract_strided_slice %25 {offsets = [0, 1152], sizes = [32, 128], strides = [1, 1]} : vector<32x2048xf32> to vector<32x128xf32>
    %204 = arith.addf %203, %23 : vector<32x128xf32>
    %cst_67 = arith.constant 0.000000e+00 : f32
    %205 = vector.broadcast %cst_67 : f32 to vector<32x128xf32>
    %206 = arith.maximumf %204, %205 : vector<32x128xf32>
    %207 = arith.subf %206, %65 : vector<32x128xf32>
    %208 = math.exp %207 : vector<32x128xf32>
    %209 = arith.addf %194, %208 : vector<32x128xf32>
    %c0_68 = arith.constant 0 : index
    %c0_69 = arith.constant 0 : index
    %c9 = arith.constant 9 : index
    %c0_70 = arith.constant 0 : index
    %210 = vector.load %arg5[%c0_68, %c0_69, %c9, %c0_70] : memref<1x1x16x128xbf16, #tpu.memory_space<vmem>>, vector<1x1x1x128xbf16>
    %211 = vector.shape_cast %210 : vector<1x1x1x128xbf16> to vector<1x128xbf16>
    %212 = arith.extf %211 : vector<1x128xbf16> to vector<1x128xf32>
    %213 = vector.extract_strided_slice %29 {offsets = [0, 1152], sizes = [32, 128], strides = [1, 1]} : vector<32x2048xf32> to vector<32x128xf32>
    %214 = vector.broadcast %212 : vector<1x128xf32> to vector<32x128xf32>
    %215 = arith.mulf %213, %214 : vector<32x128xf32>
    %216 = arith.mulf %208, %215 : vector<32x128xf32>
    %217 = arith.addf %202, %216 : vector<32x128xf32>
    %218 = vector.extract_strided_slice %25 {offsets = [0, 1280], sizes = [32, 128], strides = [1, 1]} : vector<32x2048xf32> to vector<32x128xf32>
    %219 = arith.addf %218, %23 : vector<32x128xf32>
    %cst_71 = arith.constant 0.000000e+00 : f32
    %220 = vector.broadcast %cst_71 : f32 to vector<32x128xf32>
    %221 = arith.maximumf %219, %220 : vector<32x128xf32>
    %222 = arith.subf %221, %65 : vector<32x128xf32>
    %223 = math.exp %222 : vector<32x128xf32>
    %224 = arith.addf %209, %223 : vector<32x128xf32>
    %c0_72 = arith.constant 0 : index
    %c0_73 = arith.constant 0 : index
    %c10 = arith.constant 10 : index
    %c0_74 = arith.constant 0 : index
    %225 = vector.load %arg5[%c0_72, %c0_73, %c10, %c0_74] : memref<1x1x16x128xbf16, #tpu.memory_space<vmem>>, vector<1x1x1x128xbf16>
    %226 = vector.shape_cast %225 : vector<1x1x1x128xbf16> to vector<1x128xbf16>
    %227 = arith.extf %226 : vector<1x128xbf16> to vector<1x128xf32>
    %228 = vector.extract_strided_slice %29 {offsets = [0, 1280], sizes = [32, 128], strides = [1, 1]} : vector<32x2048xf32> to vector<32x128xf32>
    %229 = vector.broadcast %227 : vector<1x128xf32> to vector<32x128xf32>
    %230 = arith.mulf %228, %229 : vector<32x128xf32>
    %231 = arith.mulf %223, %230 : vector<32x128xf32>
    %232 = arith.addf %217, %231 : vector<32x128xf32>
    %233 = vector.extract_strided_slice %25 {offsets = [0, 1408], sizes = [32, 128], strides = [1, 1]} : vector<32x2048xf32> to vector<32x128xf32>
    %234 = arith.addf %233, %23 : vector<32x128xf32>
    %cst_75 = arith.constant 0.000000e+00 : f32
    %235 = vector.broadcast %cst_75 : f32 to vector<32x128xf32>
    %236 = arith.maximumf %234, %235 : vector<32x128xf32>
    %237 = arith.subf %236, %65 : vector<32x128xf32>
    %238 = math.exp %237 : vector<32x128xf32>
    %239 = arith.addf %224, %238 : vector<32x128xf32>
    %c0_76 = arith.constant 0 : index
    %c0_77 = arith.constant 0 : index
    %c11 = arith.constant 11 : index
    %c0_78 = arith.constant 0 : index
    %240 = vector.load %arg5[%c0_76, %c0_77, %c11, %c0_78] : memref<1x1x16x128xbf16, #tpu.memory_space<vmem>>, vector<1x1x1x128xbf16>
    %241 = vector.shape_cast %240 : vector<1x1x1x128xbf16> to vector<1x128xbf16>
    %242 = arith.extf %241 : vector<1x128xbf16> to vector<1x128xf32>
    %243 = vector.extract_strided_slice %29 {offsets = [0, 1408], sizes = [32, 128], strides = [1, 1]} : vector<32x2048xf32> to vector<32x128xf32>
    %244 = vector.broadcast %242 : vector<1x128xf32> to vector<32x128xf32>
    %245 = arith.mulf %243, %244 : vector<32x128xf32>
    %246 = arith.mulf %238, %245 : vector<32x128xf32>
    %247 = arith.addf %232, %246 : vector<32x128xf32>
    %248 = vector.extract_strided_slice %25 {offsets = [0, 1536], sizes = [32, 128], strides = [1, 1]} : vector<32x2048xf32> to vector<32x128xf32>
    %249 = arith.addf %248, %23 : vector<32x128xf32>
    %cst_79 = arith.constant 0.000000e+00 : f32
    %250 = vector.broadcast %cst_79 : f32 to vector<32x128xf32>
    %251 = arith.maximumf %249, %250 : vector<32x128xf32>
    %252 = arith.subf %251, %65 : vector<32x128xf32>
    %253 = math.exp %252 : vector<32x128xf32>
    %254 = arith.addf %239, %253 : vector<32x128xf32>
    %c0_80 = arith.constant 0 : index
    %c0_81 = arith.constant 0 : index
    %c12 = arith.constant 12 : index
    %c0_82 = arith.constant 0 : index
    %255 = vector.load %arg5[%c0_80, %c0_81, %c12, %c0_82] : memref<1x1x16x128xbf16, #tpu.memory_space<vmem>>, vector<1x1x1x128xbf16>
    %256 = vector.shape_cast %255 : vector<1x1x1x128xbf16> to vector<1x128xbf16>
    %257 = arith.extf %256 : vector<1x128xbf16> to vector<1x128xf32>
    %258 = vector.extract_strided_slice %29 {offsets = [0, 1536], sizes = [32, 128], strides = [1, 1]} : vector<32x2048xf32> to vector<32x128xf32>
    %259 = vector.broadcast %257 : vector<1x128xf32> to vector<32x128xf32>
    %260 = arith.mulf %258, %259 : vector<32x128xf32>
    %261 = arith.mulf %253, %260 : vector<32x128xf32>
    %262 = arith.addf %247, %261 : vector<32x128xf32>
    %263 = vector.extract_strided_slice %25 {offsets = [0, 1664], sizes = [32, 128], strides = [1, 1]} : vector<32x2048xf32> to vector<32x128xf32>
    %264 = arith.addf %263, %23 : vector<32x128xf32>
    %cst_83 = arith.constant 0.000000e+00 : f32
    %265 = vector.broadcast %cst_83 : f32 to vector<32x128xf32>
    %266 = arith.maximumf %264, %265 : vector<32x128xf32>
    %267 = arith.subf %266, %65 : vector<32x128xf32>
    %268 = math.exp %267 : vector<32x128xf32>
    %269 = arith.addf %254, %268 : vector<32x128xf32>
    %c0_84 = arith.constant 0 : index
    %c0_85 = arith.constant 0 : index
    %c13 = arith.constant 13 : index
    %c0_86 = arith.constant 0 : index
    %270 = vector.load %arg5[%c0_84, %c0_85, %c13, %c0_86] : memref<1x1x16x128xbf16, #tpu.memory_space<vmem>>, vector<1x1x1x128xbf16>
    %271 = vector.shape_cast %270 : vector<1x1x1x128xbf16> to vector<1x128xbf16>
    %272 = arith.extf %271 : vector<1x128xbf16> to vector<1x128xf32>
    %273 = vector.extract_strided_slice %29 {offsets = [0, 1664], sizes = [32, 128], strides = [1, 1]} : vector<32x2048xf32> to vector<32x128xf32>
    %274 = vector.broadcast %272 : vector<1x128xf32> to vector<32x128xf32>
    %275 = arith.mulf %273, %274 : vector<32x128xf32>
    %276 = arith.mulf %268, %275 : vector<32x128xf32>
    %277 = arith.addf %262, %276 : vector<32x128xf32>
    %278 = vector.extract_strided_slice %25 {offsets = [0, 1792], sizes = [32, 128], strides = [1, 1]} : vector<32x2048xf32> to vector<32x128xf32>
    %279 = arith.addf %278, %23 : vector<32x128xf32>
    %cst_87 = arith.constant 0.000000e+00 : f32
    %280 = vector.broadcast %cst_87 : f32 to vector<32x128xf32>
    %281 = arith.maximumf %279, %280 : vector<32x128xf32>
    %282 = arith.subf %281, %65 : vector<32x128xf32>
    %283 = math.exp %282 : vector<32x128xf32>
    %284 = arith.addf %269, %283 : vector<32x128xf32>
    %c0_88 = arith.constant 0 : index
    %c0_89 = arith.constant 0 : index
    %c14 = arith.constant 14 : index
    %c0_90 = arith.constant 0 : index
    %285 = vector.load %arg5[%c0_88, %c0_89, %c14, %c0_90] : memref<1x1x16x128xbf16, #tpu.memory_space<vmem>>, vector<1x1x1x128xbf16>
    %286 = vector.shape_cast %285 : vector<1x1x1x128xbf16> to vector<1x128xbf16>
    %287 = arith.extf %286 : vector<1x128xbf16> to vector<1x128xf32>
    %288 = vector.extract_strided_slice %29 {offsets = [0, 1792], sizes = [32, 128], strides = [1, 1]} : vector<32x2048xf32> to vector<32x128xf32>
    %289 = vector.broadcast %287 : vector<1x128xf32> to vector<32x128xf32>
    %290 = arith.mulf %288, %289 : vector<32x128xf32>
    %291 = arith.mulf %283, %290 : vector<32x128xf32>
    %292 = arith.addf %277, %291 : vector<32x128xf32>
    %293 = vector.extract_strided_slice %25 {offsets = [0, 1920], sizes = [32, 128], strides = [1, 1]} : vector<32x2048xf32> to vector<32x128xf32>
    %294 = arith.addf %293, %23 : vector<32x128xf32>
    %cst_91 = arith.constant 0.000000e+00 : f32
    %295 = vector.broadcast %cst_91 : f32 to vector<32x128xf32>
    %296 = arith.maximumf %294, %295 : vector<32x128xf32>
    %297 = arith.subf %296, %65 : vector<32x128xf32>
    %298 = math.exp %297 : vector<32x128xf32>
    %299 = arith.addf %284, %298 : vector<32x128xf32>
    %c0_92 = arith.constant 0 : index
    %c0_93 = arith.constant 0 : index
    %c15 = arith.constant 15 : index
    %c0_94 = arith.constant 0 : index
    %300 = vector.load %arg5[%c0_92, %c0_93, %c15, %c0_94] : memref<1x1x16x128xbf16, #tpu.memory_space<vmem>>, vector<1x1x1x128xbf16>
    %301 = vector.shape_cast %300 : vector<1x1x1x128xbf16> to vector<1x128xbf16>
    %302 = arith.extf %301 : vector<1x128xbf16> to vector<1x128xf32>
    %303 = vector.extract_strided_slice %29 {offsets = [0, 1920], sizes = [32, 128], strides = [1, 1]} : vector<32x2048xf32> to vector<32x128xf32>
    %304 = vector.broadcast %302 : vector<1x128xf32> to vector<32x128xf32>
    %305 = arith.mulf %303, %304 : vector<32x128xf32>
    %306 = arith.mulf %298, %305 : vector<32x128xf32>
    %307 = arith.addf %292, %306 : vector<32x128xf32>
    %308 = tpu.reciprocal %299 : vector<32x128xf32> -> vector<32x128xf32>
    %309 = arith.mulf %307, %308 : vector<32x128xf32>
    %c0_95 = arith.constant 0 : index
    %c0_96 = arith.constant 0 : index
    %c0_97 = arith.constant 0 : index
    %310 = vector.load %arg9[%c0_95, %c0_96, %c0_97] : memref<1x32x128xf32, #tpu.memory_space<vmem>>, vector<1x32x128xf32>
    %311 = vector.shape_cast %310 : vector<1x32x128xf32> to vector<32x128xf32>
    %312 = vector.shape_cast %309 : vector<32x128xf32> to vector<1x32x128xf32>
    tpu.vector_store %arg9[%c0_95, %c0_96, %c0_97], %312 {strides = array<i32>} : memref<1x32x128xf32, #tpu.memory_space<vmem>>, vector<1x32x128xf32>,
    return
  }
  func.func @transform_0(%arg0: i32, %arg1: i32) -> (i32, i32, i32, i32) {
    %c0_i32 = arith.constant 0 : i32
    %c0_i32_0 = arith.constant 0 : i32
    %c0_i32_1 = arith.constant 0 : i32
    return %arg0, %arg1, %c0_i32, %c0_i32_0 : i32, i32, i32, i32
  }
  func.func @transform_1(%arg0: i32, %arg1: i32) -> (i32, i32, i32, i32) {
    %c0_i32 = arith.constant 0 : i32
    %c0_i32_0 = arith.constant 0 : i32
    %c0_i32_1 = arith.constant 0 : i32
    return %arg0, %arg1, %c0_i32, %c0_i32_0 : i32, i32, i32, i32
  }
  func.func @transform_2(%arg0: i32, %arg1: i32) -> (i32, i32, i32) {
    %c0_i32 = arith.constant 0 : i32
    %c0_i32_0 = arith.constant 0 : i32
    return %arg0, %c0_i32, %arg1 : i32, i32, i32
  }
  func.func @transform_3(%arg0: i32, %arg1: i32) -> (i32, i32, i32, i32) {
    %c0_i32 = arith.constant 0 : i32
    %c0_i32_0 = arith.constant 0 : i32
    %c0_i32_1 = arith.constant 0 : i32
    return %arg0, %arg1, %c0_i32, %c0_i32_0 : i32, i32, i32, i32
  }
  func.func @transform_4(%arg0: i32, %arg1: i32) -> (i32, i32) {
    %c0_i32 = arith.constant 0 : i32
    %c0_i32_0 = arith.constant 0 : i32
    %c0_i32_1 = arith.constant 0 : i32
    return %c0_i32, %c0_i32_0 : i32, i32
  }
  func.func @transform_5(%arg0: i32, %arg1: i32) -> (i32, i32) {
    %c0_i32 = arith.constant 0 : i32
    %c0_i32_0 = arith.constant 0 : i32
    %c0_i32_1 = arith.constant 0 : i32
    return %c0_i32, %c0_i32_0 : i32, i32
  }
  func.func @transform_6(%arg0: i32, %arg1: i32) -> (i32, i32) {
    %c0_i32 = arith.constant 0 : i32
    %c0_i32_0 = arith.constant 0 : i32
    %c0_i32_1 = arith.constant 0 : i32
    return %c0_i32, %c0_i32_0 : i32, i32
  }
  func.func @transform_7(%arg0: i32, %arg1: i32) -> (i32, i32, i32) {
    %c0_i32 = arith.constant 0 : i32
    %c0_i32_0 = arith.constant 0 : i32
    return %arg0, %c0_i32, %arg1 : i32, i32, i32
  }
}

</mosaic_0001>

<bundles_post_ra>
// kernel: tpu_custom_call.1
= control target key start
LH: loop header
LB: loop body
LE: loop exit
PB: predicated region body
PF: predicated region fallthrough
CT: control target
= control target key end

     0   :  { %s6054_s0 = inlined_call_operand.vmem [shape: bf16[2,2,3,2048], index: 0, kind: input, shape index: {}]   ;;  %s6055_s1 = inlined_call_operand.hbm [shape: bf16[2,2,32,2048], index: 1, kind: input, shape index: {}]   ;;  %s6056_s2 = inlined_call_operand.vmem [shape: bf16[2,32,256], index: 2, kind: input, shape index: {}]   ;;  %s6057_s3 = inlined_call_operand.vmem [shape: bf16[2,2,16,128], index: 3, kind: input, shape index: {}]   ;;  %s6058_s4 = inlined_call_operand.vmem [shape: bf16[32,3], index: 4, kind: input, shape index: {}]   ;;  %s6059_s5 = inlined_call_operand.vmem [shape: bf16[128,32], index: 5, kind: input, shape index: {}]   ;;  %s6060_s6 = inlined_call_operand.vmem [shape: f32[32,3], index: 6, kind: input, shape index: {}]   ;;  %s6061_s7 = inlined_call_operand.hbm [shape: f32[2,32,256], index: 7, kind: output, shape index: {}]  }
   0x1   :  { %6195 = sst [smem:[#allocation103_spill]] %s6055_s1 }
   0x2   :  { %12 = vsyncpa [#allocation3], 0 }
   0x3   :  { %14 = vsyncpa [#allocation3 + $0x1], 0 }
   0x4   :  { %15 = vsyncpa [#allocation4], 0 }
   0x5   :  { %17 = vsyncpa [#allocation4 + $0x1], 0  ;;  %s4259_s24 = smov 0   ;;  %s4261_s25 = smov 0  }
   0x6   :  { %s4263_s26 = smov 0   ;;  %s4265_s27 = smov 0  }
   0x7   :  { %s4267_s28 = smov 0   ;;  %s4269_s29 = smov 0  }
   0x8   :  { %s4271_s30 = smov 0   ;;  %s4273_s8 = smov 0  }
   0x9 LB: > { %6196 = sst [smem:[#allocation9_spill]] %s4185_s26  ;;  %s3626_s9 = sadd.s32 4294967295, %s4205_s8   ;;  %s4205_s8 = sphi %s4273_s8, %s23_s8   ;;  %s4201_s30 = sphi %s4271_s30, %s6527_s30   ;;  %s4197_s29 = sphi %s4269_s29, %s6526_s29   ;;  %s4193_s28 = sphi %s4267_s28, %s6525_s28   ;;  %s4189_s27 = sphi %s4265_s27, %s6524_s27   ;;  %s4185_s26 = sphi %s4263_s26, %s6519_s26   ;;  %s4181_s25 = sphi %s4261_s25, %s6523_s25   ;;  %s4177_s24 = sphi %s4259_s24, %s6522_s24  }
   0xa   : > { %s3627_s10 = sadd.s32 4294967294, %s4205_s8   ;;  %s32_s11 = sadd.s32 1, %s4197_s29 }
   0xb   : > { %p33_p0 = scmp.ge.s32.totalorder %s32_s11, 2  ;;  %s35_s12 = sadd.s32 1, %s4201_s30 }
   0xc   : > { %p79_p1 = scmp.ne.s32.totalorder %s4185_s26, %s4181_s25  ;;  %p80_p2 = scmp.eq.s32.totalorder %s4205_s8, 0 }
   0xd   : > { %s6529_s11 = smov (%p33_p0, %s32_s11), 0  ;;  %s6531_s12 = smov (!%p33_p0, %s35_s12), %s4201_s30 }
   0xe   : > { %6197 = sst [smem:[#allocation10_spill]] %s6529_s11  ;;  %s68_s13 = ssub.s32 %s4197_s29, %s6529_s11 }
   0xf   : > { %p4311_p3 = por %p80_p2, %p79_p1  ;;  %p37_p4 = scmp.ge.s32.totalorder %s6531_s12, 2 }
  0x10   : > { %p85_p5 = scmp.ne.s32.totalorder %s4181_s25, %s4177_s24  ;;  %p86_p6 = scmp.eq.s32.totalorder %s3626_s9, 0 }
  0x11   : > { %p230_p7 = scmp.eq.s32.totalorder %s3626_s9, 3  ;;  %s6533_s12 = smov (%p37_p4, %s6531_s12), 0 }
  0x12   : > { %6199 = sst [smem:[#allocation11_spill]] %s6533_s12  ;;  %p4319_p8 = por %p86_p6, %p85_p5 }
  0x13   : > { %p4323_p9 = por %p230_p7, %p79_p1  ;;  %s67_s17 = ssub.s32 %s4201_s30, %s6533_s12 }
  0x14   : > { %p236_p10 = scmp.eq.s32.totalorder %s3627_s10, 3  ;;  %s69_s18 = sor.u32 %s68_s13, %s67_s17 }
  0x15   : > { %s6201_s16 = scalar_select %p4323_p9, 1, 0 }
  0x16   : > { %s72_s19 = sadd.s32 1, %s4185_s26  ;;  %p70_p11 = scmp.eq.s32.totalorder %s69_s18, 0 }
  0x17   : > { %p4330_p12 = por %p236_p10, %p85_p5  ;;  %p3629_p13 = scmp.ge.s32.totalorder %s4205_s8, 4 }
  0x18   : > { %s4335_s21 = scalar_select %p70_p11, %s4185_s26, %s72_s19  }
  0x19   : > { %s6202_s20 = scalar_select %p4330_p12, 1, 0 }
  0x1a   : > { %6204 = sst [smem:[#allocation13_spill]] %s4335_s21  ;;  %261 = sbr.rel (%p3629_p13) target bundleno = 68 (0x44), region = 28 }
  0x1b   : > { %6203 = sst [smem:[#allocation12_spill]] %s6202_s20  ;;  %s4339_s22 = sand.u32 (!%p3629_p13), 1, %s4185_s26  }
  0x1c   : > { %s3631_s23 = sshll.u32 (!%p3629_p13), %s4197_s29, 6  ;;  %s3630_s9 = sshll.u32 (!%p3629_p13), %s4339_s22, 8 }
  0x1d   : > { %s3632_s10 = sshll.u32 (!%p3629_p13), %s4201_s30, 7  ;;  %s281_s17 = scalar_lea.vmem (!%p3629_p13), [#allocation2], %s3630_s9 }
  0x1e   : > { %s287_s13 = sadd.s32 (!%p3629_p13), %s3632_s10, %s3631_s23  ;;  %s290_s18 = sshll.u32 (!%p3629_p13), %s281_s17, 4  ;;  %s4344_s18 = int_to_ptr.vmem [resolvable:$true] %s290_s18 }
  0x1f   : > { %s3633_s12 = sshll.u32 (!%p3629_p13), %s287_s13, 6  ;;  %s6205_s1 = sld [smem:[#allocation103_spill]] (!%p3629_p13) }
  0x20   : > { %s278_s26 = scalar_lea.sflag (!%p3629_p13), [#allocation3], %s4339_s22 }
  0x25   : > { %s4349_s21 = scalar_lea.hbm %s6205_s1, %s3633_s12  ;;  %s4083_s10 = scalar_lea.hbm %s6205_s1, 16384 }
  0x26   : > { %s4079_s20 = scalar_lea.hbm %s4349_s21, 4096  ;;  %p4084_p4 = scmp.lt.u32.totalorder %s4349_s21, %s6205_s1 }
  0x27   : > { %p4080_p0 = scmp.ne.s32.totalorder %s4349_s21, %s4079_s20  ;;  %p4085_p5 = scmp.lt.u32.totalorder %s4083_s10, %s4079_s20 }
  0x28   : > { %p4087_p7 = scmp.lt.u32.totalorder %s4079_s20, %s4349_s21 }
  0x29   : > { %p4081_p1 = pnand %p4080_p0, %p4311_p3  ;;  %p4086_p6 = por %p4085_p5, %p4084_p4 }
  0x2b   : > { %p4082_p2 = pneg %p4081_p1  ;;  %p4088_p10 = por %p4087_p7, %p4086_p6 }
  0x2d   : > { %p4089_p11 = pnand %p4088_p10, %p4082_p2 }
  0x2f   : > { %4092 = shalt.err (!%p4089_p11)
}
  0x30   : > { %s4093_s11 = scalar_lea.vmem %s4344_s18, 4096  ;;  %s4207_s12 = smov [#allocation2]  }
  0x31   : > { %p4094_p13 = scmp.ne.s32.totalorder %s4344_s18, %s4093_s11  ;;  %s4097_s19 = sshll.u32 %s4207_s12, 4  ;;  %s4098_s19 = int_to_ptr.vmem [resolvable:$false] %s4097_s19 }
  0x32   : > { %s4099_s23 = scalar_lea.vmem %s4098_s19, 8192  ;;  %p4100_p12 = scmp.lt.s32.totalorder %s4344_s18, %s4098_s19 }
  0x33   : > { %p4095_p0 = pnand %p4094_p13, %p4311_p3  ;;  %p4101_p9 = scmp.lt.s32.totalorder %s4099_s23, %s4093_s11 }
  0x35   : > { %p4096_p1 = pneg %p4095_p0  ;;  %p4102_p4 = por %p4101_p9, %p4100_p12 }
  0x37   : > { %p4103_p5 = pnand %p4102_p4, %p4096_p1 }
  0x39   : > { %4106 = shalt.err (!%p4103_p5)
}
  0x3a   : > { %s4208_s20 = smov 1024   ;;  %s4209_s9 = smov 64  }
  0x3b   : > { %3838 = dma.hbm_to_vmem [thread:$0]  (%p4311_p3), %s4349_s21, 4096, %s4344_s18, %s278_s26, %s4208_s20, %s4208_s20, %s4209_s9  }
  0x3c   : > { %299 = sbr.rel (!%p4311_p3) target bundleno = 68 (0x44), region = 40  ;;  %s3634_s10 = sshll.u32 (%p4311_p3), %s4339_s22, 4 }
  0x3d   : > { %s3635_s13 = sshll.u32 (%p4311_p3), %s4201_s30, 3  ;;  %s303_s1 = scalar_lea.vmem (%p4311_p3), [#allocation5], %s3634_s10 }
  0x3e   : > { %s305_s17 = sadd.s32 (%p4311_p3), %s4197_s29, %s3635_s13 }
  0x3f   : > { %s3636_s11 = sshll.u32 (%p4311_p3), %s305_s17, 2 }
  0x40   : > { %s307_s23 = scalar_lea.vmem (%p4311_p3), %s6056_s2, %s3636_s11 }
  0x41   : > { %v323_v0 = vld [vmem:[%s307_s23] sm:$0xf] (%p4311_p3)  ;;  %v325_v1 = vld [vmem:[%s307_s23 + $0x8] sm:$0xf] (%p4311_p3)  ;;  %v327_v2 = vld [vmem:[%s307_s23 + $0x10] sm:$0xf] (%p4311_p3) }
  0x42   : > { %324 = vst [vmem:[%s303_s1] sm:$0xf] (%p4311_p3), %v323_v0  ;;  %326 = vst [vmem:[%s303_s1 + $0x4] sm:$0xf] (%p4311_p3), %v325_v1  ;;  %v329_v3 = vld [vmem:[%s307_s23 + $0x18] sm:$0xf] (%p4311_p3) }
  0x43   : > { %328 = vst [vmem:[%s303_s1 + $0x8] sm:$0xf] %v327_v2  ;;  %330 = vst [vmem:[%s303_s1 + $0xc] sm:$0xf] %v329_v3 }
  0x44 PF: > { %p3637_p3 = scmp.ge.s32.totalorder %s4205_s8, 1  ;;  %p372_p9 = scmp.lt.s32.totalorder %s4205_s8, 5 }
  0x46   : > { %p373_p12 = pnand %p3637_p3, %p372_p9 }
  0x48   : > { %376 = sbr.rel (%p373_p12) target bundleno = 780 (0x30c), region = 85 }
  0x4f   : > { %s4386_s26 = sand.u32 1, %s4181_s25  }
  0x50   : > { %s3638_s14 = sshll.u32 %s4386_s26, 8  ;;  %s379_s21 = scalar_lea.sflag [#allocation3], %s4386_s26 }
  0x51   : > { %s4390_s22 = scalar_lea.vmem [#allocation2], %s3638_s14 }
  0x52   : > { %4168 = dma.done.wait (%p4319_p8), %s379_s21, 4096  }
  0x53   : > { %4170 = vsyncadd (%p4319_p8), %s379_s21, 4294963200  ;;  %p442_p2 = scmp.lt.s32.totalorder %s4193_s28, 1  ;;  %p444_p6 = scmp.lt.s32.totalorder %s4189_s27, 1  ;;  %v527_v4 = vlaneseq  ;;  %v4210_v5 = vmov 1983009808   ;;  %v6103_v8 = vmov 0  }
  0x54   : > { %v525_v6 = vunpack.c.l.s4 %v4210_v5  ;;  %682 = vmatprep.mubr.bf16.mxu0 %v6103_v8  ;;  %735 = vmatprep.mubr.bf16.mxu1 %v6103_v8  ;;  %vm598_vm0 = vcmask 1040384   ;;  %vm599_vm1 = vcmask 1041408   ;;  %v4212_v11 = vmov 65535   ;;  %v4427_v36 = vld [vmem:[%s6058_s4] sm:$0xff]   ;;  %v4448_v45 = vld [vmem:[%s6060_s6 + $0x10] sm:$0xff]  ;;  %v4453_v46 = vld [vmem:[%s6058_s4 + $0x8] sm:$0xff]  }
  0x55   : > { %s443_s1 = scalar_select %p442_p2, %s4193_s28, 1  ;;  %v4399_v7 = vshrl.u32 %v527_v4, 7  ;;  %3921 = vset.pattern.permute.xlu0 %v6103_v8  ;;  %3922 = vset.pattern.permute.xlu1 %v6103_v8  ;;  %v600_v12 = vsel %vm598_vm0, 4294967295, %v4212_v11  ;;  %vm591_vm2 = vcmask 23552   ;;  %v4441_v44 = vld [vmem:[%s6060_s6] sm:$0xff]  ;;  %v462_v47 = vld [vmem:[%s6060_s6 + $0x8] sm:$0xff] }
  0x56   : > { %s445_s18 = scalar_select %p444_p6, %s4189_s27, 1  ;;  %v526_v9 = vunpack.c.0.s8 %v525_v6  ;;  %v4415_v14 = vsel %vm599_vm1, %v600_v12, 0  ;;  %491 = vperm.xlu0 %3921, %v4441_v44   ;;  %501 = vperm.xlu1 %3922, %v4448_v45   ;;  %v4464_v50 = vld [vmem:[%s6060_s6 + $0x18] sm:$0xff]  ;;  %v1138_v58 = vld [vmem:[%s4390_s22] sm:$0xff]  ;;  %v4213_v60 = vmov 1   ;;  %v1139_v62 = vld [vmem:[%s4390_s22 + $0x8] sm:$0xff] }
  0x57   : > { %s3642_s15 = sshll.u32 %s443_s1, 5  ;;  %s3645_s20 = sshll.u32 %s443_s1, 2  ;;  %v1146_v59 = vld [vmem:[%s4390_s22 + $0x40] sm:$0xff]  ;;  %v1147_v63 = vld [vmem:[%s4390_s22 + $0x48] sm:$0xff]  ;;  %v4214_v3 = vmov 2   ;;  %vm1350_vm3 = vcmask 261120  }
  0x58   : > { %s3641_s9 = sshll.u32 %s445_s18, 4  ;;  %s3644_s10 = sshll.u32 %s445_s18, 1  ;;  %v529_v10 = vsub.s32 %v526_v9, %v4399_v7  ;;  %v3670_v0 = vcombine.high %v1138_v58, %v1146_v59  ;;  %v3672_v2 = vcombine.high %v1139_v62, %v1147_v63  ;;  %v1154_v4 = vld [vmem:[%s4390_s22 + $0x80] sm:$0xff]  ;;  %v3669_v6 = vcombine.low %v1138_v58, %v1146_v59  ;;  %v1155_v9 = vld [vmem:[%s4390_s22 + $0x88] sm:$0xff]  ;;  %v1160_v58 = vld [vmem:[%s4390_s22 + $0xb0] sm:$0xff] }
  0x59   : > { %s448_s13 = sadd.s32 %s3642_s15, %s3641_s9  ;;  %s4406_s17 = sadd.s32 %s3645_s20, %s3644_s10  ;;  %v1162_v5 = vld [vmem:[%s4390_s22 + $0xc0] sm:$0xff]  ;;  %v3671_v12 = vcombine.low %v1139_v62, %v1147_v63  ;;  %v1168_v59 = vld [vmem:[%s4390_s22 + $0xf0] sm:$0xff]  ;;  %v1169_v62 = vld [vmem:[%s4390_s22 + $0xf8] sm:$0xff] }
  0x5a   : > { %s3643_s11 = sshll.u32 %s448_s13, 1  ;;  %496 = vperm.xlu0 %3921, %v462_v47   ;;  %506 = vperm.xlu1 %3922, %v4464_v50   ;;  %v3686_v11 = vcombine.high %v1154_v4, %v1162_v5  ;;  %v3698_v63 = vcombine.high %v1160_v58, %v1168_v59  ;;  %s3758_s9 = sshll.u32 %s4193_s28, 3 }
  0x5b   : > { %s4412_s23 = scalar_lea.vmem %s6054_s0, %s3643_s11  ;;  %p6515_p7 = scmp.ne.s32.totalorder %s6201_s16, 0 }
  0x5c   : > { %v485_v13 = vld [vmem:[%s4412_s23] sm:$0xff]  ;;  %v486_v15 = vld [vmem:[%s4412_s23 + $0x8] sm:$0xff]  ;;  %v487_v20 = vld [vmem:[%s4412_s23 + $0x10] sm:$0xff]  ;;  %s4215_s21 = smov [#allocation6]  }
  0x5d   : > { %v530_v16 = vrot.slane %v485_v13, %v529_v10  ;;  %v523_v17 = vcombine.high %v485_v13, %v485_v13  ;;  %v547_v18 = vrot.slane %v486_v15, %v529_v10  ;;  %v540_v19 = vcombine.high %v486_v15, %v486_v15  ;;  %v488_v43 = vld [vmem:[%s4412_s23 + $0x18] sm:$0xff]  ;;  %v1140_v13 = vld [vmem:[%s4390_s22 + $0x10] sm:$0xff]  ;;  %s3646_s23 = sshll.u32 %s4406_s17, 2 }
  0x5e   : > { %v564_v21 = vrot.slane %v487_v20, %v529_v10  ;;  %v557_v22 = vcombine.high %v487_v20, %v487_v20  ;;  %v574_v48 = vcombine.high %v488_v43, %v488_v43  ;;  %v581_v49 = vrot.slane %v488_v43, %v529_v10  ;;  %3924 = vset.pattern.permute.xlu1 %v4213_v60  ;;  %v1166_v43 = vld [vmem:[%s4390_s22 + $0xe0] sm:$0xff]  ;;  %s5122_s1 = scalar_lea.vmem %s6057_s3, %s3646_s23  ;;  %s3461_s23 = scalar_lea.sflag [#allocation4], %s4386_s26 }
  0x5f   : > { %v538_v23 = vcombine.high %v530_v16, %v530_v16  ;;  %v537_v24 = vrot.slane %v523_v17, %v529_v10  ;;  %v555_v25 = vcombine.high %v547_v18, %v547_v18  ;;  %v603_v26 = vand.u32 %v4415_v14, %v530_v16  ;;  %2428 = vperm.xlu1 %3924, %v462_v47   ;;  %v1141_v17 = vld [vmem:[%s4390_s22 + $0x18] sm:$0xff] }
  0x60   : > { %v554_v27 = vrot.slane %v540_v19, %v529_v10  ;;  %v572_v31 = vcombine.high %v564_v21, %v564_v21  ;;  %v571_v34 = vrot.slane %v557_v22, %v529_v10  ;;  %v615_v37 = vand.u32 %v4415_v14, %v547_v18  ;;  %3923 = vset.pattern.permute.xlu0 %v4213_v60  ;;  %v1149_v18 = vld [vmem:[%s4390_s22 + $0x58] sm:$0xff]  ;;  %v1156_v22 = vld [vmem:[%s4390_s22 + $0x90] sm:$0xff] }
  0x61   : > { %v606_v28 = vand.u32 %v4415_v14, %v538_v23  ;;  %v539_v29 = vcombine.high %v537_v24, %v537_v24  ;;  %v618_v30 = vand.u32 %v4415_v14, %v555_v25  ;;  %v609_v32 = vand.u32 %v4415_v14, %v537_v24  ;;  %2424 = vperm.xlu0 %3923, %v4441_v44   ;;  %v1164_v23 = vld [vmem:[%s4390_s22 + $0xd0] sm:$0xff]  ;;  %v4538_v24 = vld [vmem:[%s6059_s5] sm:$0xff]  }
  0x62   : > { %v556_v33 = vcombine.high %v554_v27, %v554_v27  ;;  %v573_v39 = vcombine.high %v571_v34, %v571_v34  ;;  %v630_v40 = vand.u32 %v4415_v14, %v572_v31  ;;  %v621_v41 = vand.u32 %v4415_v14, %v554_v27  ;;  %v1165_v27 = vld [vmem:[%s4390_s22 + $0xd8] sm:$0xff]  ;;  %v1150_v31 = vld [vmem:[%s4390_s22 + $0x60] sm:$0xff] }
  0x63   : > { %650 = vmatprep.subr.bf16.mxu0 %v606_v28  ;;  %v612_v35 = vand.u32 %v4415_v14, %v539_v29  ;;  %v588_v51 = vrot.slane %v574_v48, %v529_v10  ;;  %v589_v52 = vcombine.high %v581_v49, %v581_v49  ;;  %v627_v54 = vand.u32 %v4415_v14, %v564_v21  ;;  %v1163_v10 = vld [vmem:[%s4390_s22 + $0xc8] sm:$0xff] }
  0x64   : > { %651 = vmatpush1.bf16.msra.mxu0 %v603_v26  ;;  %v624_v38 = vand.u32 %v4415_v14, %v556_v33  ;;  %v636_v42 = vand.u32 %v4415_v14, %v573_v39  ;;  %v633_v56 = vand.u32 %v4415_v14, %v571_v34  ;;  %v639_v61 = vand.u32 %v4415_v14, %v581_v49  ;;  %v1157_v26 = vld [vmem:[%s4390_s22 + $0x98] sm:$0xff]  ;;  %v1143_v34 = vld [vmem:[%s4390_s22 + $0x28] sm:$0xff]  ;;  %v1144_v49 = vld [vmem:[%s4390_s22 + $0x30] sm:$0xff] }
  0x65   : > { %703 = vmatprep.subr.bf16.mxu1 %v612_v35  ;;  %756 = vmatprep.subr.bf16.mxu0 %v618_v30  ;;  %v590_v53 = vcombine.high %v588_v51, %v588_v51  ;;  %v642_v55 = vand.u32 %v4415_v14, %v589_v52  ;;  %v645_v1 = vand.u32 %v4415_v14, %v588_v51  ;;  %v1142_v30 = vld [vmem:[%s4390_s22 + $0x20] sm:$0xff]  ;;  %v1151_v35 = vld [vmem:[%s4390_s22 + $0x68] sm:$0xff] }
  0x66   : > { %704 = vmatpush1.bf16.msra.mxu1 %v609_v32  ;;  %2432 = vperm.xlu1 %3924, %v4448_v45   ;;  %v3688_v15 = vcombine.high %v1155_v9, %v1163_v10  ;;  %v3685_v16 = vcombine.low %v1154_v4, %v1162_v5  ;;  %v3687_v20 = vcombine.low %v1155_v9, %v1163_v10 }
  0x67   : > { %3649 = vmatmul.mubr.msk.bf16.vlgmr.msra.gmra.mrb[0].mxu0 %vm591_vm2, %v4427_v36  ;;  %809 = vmatprep.subr.bf16.mxu1 %v624_v38  ;;  %v648_v57 = vand.u32 %v4415_v14, %v590_v53  ;;  %v1148_v14 = vld [vmem:[%s4390_s22 + $0x50] sm:$0xff]  ;;  %v3676_v21 = vcombine.high %v1141_v17, %v1149_v18  ;;  %v3690_v28 = vcombine.high %v1156_v22, %v1164_v23  ;;  %v4555_v38 = vld [vmem:[%s6059_s5 + $0x8] sm:$0xff]   ;;  %v1145_v53 = vld [vmem:[%s4390_s22 + $0x38] sm:$0xff] }
  0x68   : > { %692 = vmatprep.mubr.bf16.mxu0 %v6103_v8  ;;  %757 = vmatpush1.bf16.msra.mxu0 %v615_v37  ;;  %v3674_v19 = vcombine.high %v1140_v13, %v1148_v14  ;;  %v3673_v25 = vcombine.low %v1140_v13, %v1148_v14  ;;  %v3675_v29 = vcombine.low %v1141_v17, %v1149_v18 }
  0x69   : > { %3651 = vmatmul.mubr.msk.bf16.vlgmr.msra.gmra.mrb[0].mxu1 %vm591_vm2, %v4427_v36  ;;  %862 = vmatprep.subr.bf16.mxu0 %v630_v40  ;;  %v3692_v32 = vcombine.high %v1157_v26, %v1165_v27  ;;  %v3689_v33 = vcombine.low %v1156_v22, %v1164_v23  ;;  %v3691_v37 = vcombine.low %v1157_v26, %v1165_v27  ;;  %v4566_v40 = vld [vmem:[%s6059_s5 + $0x10] sm:$0xff]  }
  0x6a   : > { %745 = vmatprep.mubr.bf16.mxu1 %v6103_v8  ;;  %810 = vmatpush1.bf16.msra.mxu1 %v621_v41  ;;  %v3680_v39 = vcombine.high %v1143_v34, %v1151_v35  ;;  %v4577_v41 = vld [vmem:[%s6059_s5 + $0x18] sm:$0xff]   ;;  %v3679_v48 = vcombine.low %v1143_v34, %v1151_v35 }
  0x6b   : > { %915 = vmatprep.subr.bf16.mxu1 %v636_v42  ;;  %2436 = vperm.xlu0 %3923, %v4464_v50   ;;  %v1158_v42 = vld [vmem:[%s4390_s22 + $0xa0] sm:$0xff] }
  0x6c   : > { %3925 = vset.pattern.permute.xlu1 %v4214_v3  ;;  %v3693_v52 = vcombine.low %v1158_v42, %v1166_v43 }
  0x6d   : > { %2645 = vperm.xlu1 %3925, %v4441_v44   ;;  %v3677_v44 = vcombine.low %v1142_v30, %v1150_v31 }
  0x6f   : > { %3650 = vmatmul.mubr.msk.bf16.gmra.mrb[4].mxu0 %vm591_vm2, %v4453_v46  ;;  %3926 = vset.pattern.permute.xlu0 %v4214_v3 }
  0x70   : > { %788 = vmatprep.mubr.bf16.mxu0 %v6103_v8  ;;  %2649 = vperm.xlu0 %3926, %v462_v47   ;;  %v3694_v47 = vcombine.high %v1158_v42, %v1166_v43 }
  0x71   : > { %3652 = vmatmul.mubr.msk.bf16.gmra.mrb[4].mxu1 %vm591_vm2, %v4453_v46  ;;  %2653 = vperm.xlu1 %3925, %v4448_v45   ;;  %v1159_v45 = vld [vmem:[%s4390_s22 + $0xa8] sm:$0xff] }
  0x72   : > { %841 = vmatprep.mubr.bf16.mxu1 %v6103_v8 }
  0x75   : > { %2657 = vperm.xlu1 %3925, %v4464_v50   ;;  %v1152_v50 = vld [vmem:[%s4390_s22 + $0x70] sm:$0xff] }
  0x76   : > { %v3681_v60 = vcombine.low %v1144_v49, %v1152_v50 }
  0x77   : > { %3653 = vmatmul.mubr.msk.bf16.vlgmr.msra.gmra.mrb[8].mxu0 %vm591_vm2, %v4427_v36 }
  0x78   : > { %798 = vmatprep.mubr.bf16.mxu0 %v6103_v8  ;;  %863 = vmatpush1.bf16.msra.mxu0 %v627_v54  ;;  %v1153_v54 = vld [vmem:[%s4390_s22 + $0x78] sm:$0xff] }
  0x79   : > { %3655 = vmatmul.mubr.msk.bf16.vlgmr.msra.gmra.mrb[8].mxu1 %vm591_vm2, %v4427_v36  ;;  %968 = vmatprep.subr.bf16.mxu0 %v642_v55  ;;  %v3682_v55 = vcombine.high %v1144_v49, %v1152_v50 }
  0x7a   : > { %851 = vmatprep.mubr.bf16.mxu1 %v6103_v8  ;;  %916 = vmatpush1.bf16.msra.mxu1 %v633_v56 }
  0x7b   : > { %1021 = vmatprep.subr.bf16.mxu1 %v648_v57  ;;  %v3684_v57 = vcombine.high %v1145_v53, %v1153_v54 }
  0x7f   : > { %3654 = vmatmul.mubr.msk.bf16.gmra.mrb[12].mxu0 %vm591_vm2, %v4453_v46 }
  0x80   : > { %894 = vmatprep.mubr.bf16.mxu0 %v6103_v8 }
  0x81   : > { %3656 = vmatmul.mubr.msk.bf16.gmra.mrb[12].mxu1 %vm591_vm2, %v4453_v46 }
  0x82   : > { %947 = vmatprep.mubr.bf16.mxu1 %v6103_v8 }
  0x87   : > { %3657 = vmatmul.mubr.msk.bf16.vlgmr.msra.gmra.mrb[16].mxu0 %vm591_vm2, %v4427_v36 }
  0x88   : > { %904 = vmatprep.mubr.bf16.mxu0 %v6103_v8  ;;  %969 = vmatpush1.bf16.msra.mxu0 %v639_v61  ;;  %v1161_v61 = vld [vmem:[%s4390_s22 + $0xb8] sm:$0xff] }
  0x89   : > { %3659 = vmatmul.mubr.msk.bf16.vlgmr.msra.gmra.mrb[16].mxu1 %vm591_vm2, %v4427_v36  ;;  %1363 = vmatprep.subr.bf16.mxu0 %v3670_v0  ;;  %v3683_v0 = vcombine.low %v1145_v53, %v1153_v54  ;;  %v3699_v3 = vcombine.low %v1161_v61, %v1169_v62 }
  0x8a   : > { %957 = vmatprep.mubr.bf16.mxu1 %v6103_v8  ;;  %1022 = vmatpush1.bf16.msra.mxu1 %v645_v1  ;;  %v3700_v1 = vcombine.high %v1161_v61, %v1169_v62 }
  0x8b   : > { %1436 = vmatprep.subr.bf16.mxu1 %v3672_v2  ;;  %v3697_v2 = vcombine.low %v1160_v58, %v1168_v59 }
  0x8f   : > { %3658 = vmatmul.mubr.msk.bf16.gmra.mrb[20].mxu0 %vm591_vm2, %v4453_v46 }
  0x90   : > { %1000 = vmatprep.mubr.bf16.mxu0 %v6103_v8 }
  0x91   : > { %3660 = vmatmul.mubr.msk.bf16.gmra.mrb[20].mxu1 %vm591_vm2, %v4453_v46 }
  0x92   : > { %1053 = vmatprep.mubr.bf16.mxu1 %v6103_v8 }
  0x97   : > { %3661 = vmatmul.mubr.msk.bf16.vlgmr.msra.gmra.mrb[24].mxu0 %vm591_vm2, %v4427_v36 }
  0x98   : > { %1010 = vmatprep.mubr.bf16.mxu0 %v6103_v8  ;;  %1364 = vmatpush1.bf16.msra.mxu0 %v3669_v6 }
  0x99   : > { %3663 = vmatmul.mubr.msk.bf16.vlgmr.msra.gmra.mrb[24].mxu1 %vm591_vm2, %v4427_v36  ;;  %1365 = vmatprep.subr.bf16.mxu0 %v3686_v11  ;;  %v3678_v36 = vcombine.high %v1142_v30, %v1150_v31 }
  0x9a   : > { %1063 = vmatprep.mubr.bf16.mxu1 %v6103_v8  ;;  %1437 = vmatpush1.bf16.msra.mxu1 %v3671_v12 }
  0x9b   : > { %1438 = vmatprep.subr.bf16.mxu1 %v3688_v15 }
  0x9c   : > { %1366 = vmatpush1.bf16.msra.mxu0 %v3685_v16 }
  0x9d   : > { %1509 = vmatprep.subr.bf16.mxu0 %v3674_v19 }
  0x9e   : > { %1439 = vmatpush1.bf16.msra.mxu1 %v3687_v20 }
  0x9f   : > { %3662 = vmatmul.mubr.msk.bf16.gmra.mrb[28].mxu0 %vm591_vm2, %v4453_v46  ;;  %1582 = vmatprep.subr.bf16.mxu1 %v3676_v21 }
  0xa0   : > { %1395 = vmatprep.mubr.bf16.mxu0 %v6103_v8 }
  0xa1   : > { %3664 = vmatmul.mubr.msk.bf16.gmra.mrb[28].mxu1 %vm591_vm2, %v4453_v46  ;;  %v1167_v46 = vld [vmem:[%s4390_s22 + $0xe8] sm:$0xff]  ;;  %s3639_s22 = sshll.u32 %s4386_s26, 4 }
  0xa2   : > { %1468 = vmatprep.mubr.bf16.mxu1 %v6103_v8  ;;  %v3696_v51 = vcombine.high %v1159_v45, %v1167_v46  ;;  %v3695_v56 = vcombine.low %v1159_v45, %v1167_v46  ;;  %s4646_s10 = scalar_lea.vmem [#allocation5], %s3639_s22  ;;  %s3640_s22 = sshll.u32 %s4386_s26, 5 }
  0xa3   : > { %s441_s13 = scalar_lea.vmem [#allocation6], %s3640_s22 }
  0xa4   : > { %s3475_s11 = sshll.u32 %s441_s13, 4  ;;  %s5995_s11 = int_to_ptr.vmem [resolvable:$true] %s3475_s11 }
  0xa5   : > { %s4107_s14 = scalar_lea.vmem %s5995_s11, 512 }
  0xa6   : > { %p4108_p8 = scmp.ne.s32.totalorder %s5995_s11, %s4107_s14 }
  0xa7   : > { %3701 = vmatmul.mubr.msk.bf16.vlgmr.msra.gmra.mrb[32].mxu0 %vm1350_vm3, %v4538_v24 }
  0xa8   : > { %1405 = vmatprep.mubr.bf16.mxu0 %v6103_v8  ;;  %1510 = vmatpush1.bf16.msra.mxu0 %v3673_v25  ;;  %p4109_p10 = pnand %p4108_p8, %p6515_p7 }
  0xa9   : > { %3705 = vmatmul.mubr.msk.bf16.vlgmr.msra.gmra.mrb[32].mxu1 %vm1350_vm3, %v4538_v24  ;;  %1511 = vmatprep.subr.bf16.mxu0 %v3690_v28 }
  0xaa   : > { %1478 = vmatprep.mubr.bf16.mxu1 %v6103_v8  ;;  %1583 = vmatpush1.bf16.msra.mxu1 %v3675_v29  ;;  %p4110_p11 = pneg %p4109_p10 }
  0xab   : > { %1584 = vmatprep.subr.bf16.mxu1 %v3692_v32 }
  0xac   : > { %1512 = vmatpush1.bf16.msra.mxu0 %v3689_v33 }
  0xad   : > { %1655 = vmatprep.subr.bf16.mxu0 %v3678_v36 }
  0xae   : > { %1585 = vmatpush1.bf16.msra.mxu1 %v3691_v37 }
  0xaf   : > { %3702 = vmatmul.mubr.msk.bf16.gmra.mrb[36].mxu0 %vm1350_vm3, %v4555_v38  ;;  %1728 = vmatprep.subr.bf16.mxu1 %v3680_v39 }
  0xb0   : > { %1415 = vmatprep.mubr.bf16.mxu0 %v6103_v8 }
  0xb1   : > { %3706 = vmatmul.mubr.msk.bf16.gmra.mrb[36].mxu1 %vm1350_vm3, %v4555_v38 }
  0xb2   : > { %1488 = vmatprep.mubr.bf16.mxu1 %v6103_v8 }
  0xb7   : > { %3703 = vmatmul.mubr.msk.bf16.gmra.mrb[40].mxu0 %vm1350_vm3, %v4566_v40 }
  0xb8   : > { %1425 = vmatprep.mubr.bf16.mxu0 %v6103_v8 }
  0xb9   : > { %3707 = vmatmul.mubr.msk.bf16.gmra.mrb[40].mxu1 %vm1350_vm3, %v4566_v40 }
  0xba   : > { %1498 = vmatprep.mubr.bf16.mxu1 %v6103_v8 }
  0xbf   : > { %3704 = vmatmul.mubr.msk.bf16.gmra.mrb[44].mxu0 %vm1350_vm3, %v4577_v41 }
  0xc0   : > { %1541 = vmatprep.mubr.bf16.mxu0 %v6103_v8 }
  0xc1   : > { %3708 = vmatmul.mubr.msk.bf16.gmra.mrb[44].mxu1 %vm1350_vm3, %v4577_v41 }
  0xc2   : > { %1614 = vmatprep.mubr.bf16.mxu1 %v6103_v8 }
  0xc7   : > { %3709 = vmatmul.mubr.msk.bf16.vlgmr.msra.gmra.mrb[48].mxu0 %vm1350_vm3, %v4538_v24 }
  0xc8   : > { %1551 = vmatprep.mubr.bf16.mxu0 %v6103_v8  ;;  %1656 = vmatpush1.bf16.msra.mxu0 %v3677_v44 }
  0xc9   : > { %3713 = vmatmul.mubr.msk.bf16.vlgmr.msra.gmra.mrb[48].mxu1 %vm1350_vm3, %v4538_v24  ;;  %1657 = vmatprep.subr.bf16.mxu0 %v3694_v47 }
  0xca   : > { %1624 = vmatprep.mubr.bf16.mxu1 %v6103_v8  ;;  %1729 = vmatpush1.bf16.msra.mxu1 %v3679_v48 }
  0xcb   : > { %1730 = vmatprep.subr.bf16.mxu1 %v3696_v51 }
  0xcc   : > { %1658 = vmatpush1.bf16.msra.mxu0 %v3693_v52 }
  0xcd   : > { %1801 = vmatprep.subr.bf16.mxu0 %v3682_v55 }
  0xce   : > { %1731 = vmatpush1.bf16.msra.mxu1 %v3695_v56 }
  0xcf   : > { %3710 = vmatmul.mubr.msk.bf16.gmra.mrb[52].mxu0 %vm1350_vm3, %v4555_v38  ;;  %1874 = vmatprep.subr.bf16.mxu1 %v3684_v57 }
  0xd0   : > { %1561 = vmatprep.mubr.bf16.mxu0 %v6103_v8 }
  0xd1   : > { %3714 = vmatmul.mubr.msk.bf16.gmra.mrb[52].mxu1 %vm1350_vm3, %v4555_v38 }
  0xd2   : > { %1634 = vmatprep.mubr.bf16.mxu1 %v6103_v8 }
  0xd5   : > { %v4672_v4 = vpop.permute.xlu0 %491  ;;  %v4676_v10 = vpop.permute.xlu1 %501 }
  0xd7   : > { %3711 = vmatmul.mubr.msk.bf16.gmra.mrb[56].mxu0 %vm1350_vm3, %v4566_v40 }
  0xd8   : > { %1571 = vmatprep.mubr.bf16.mxu0 %v6103_v8 }
  0xd9   : > { %3715 = vmatmul.mubr.msk.bf16.gmra.mrb[56].mxu1 %vm1350_vm3, %v4566_v40  ;;  %v4674_v5 = vpop.permute.xlu0 %496  ;;  %v4718_v37 = vpop.permute.xlu1 %506 }
  0xda   : > { %1644 = vmatprep.mubr.bf16.mxu1 %v6103_v8 }
  0xdf   : > { %3712 = vmatmul.mubr.msk.bf16.gmra.mrb[60].mxu0 %vm1350_vm3, %v4577_v41 }
  0xe0   : > { %1687 = vmatprep.mubr.bf16.mxu0 %v6103_v8 }
  0xe1   : > { %3716 = vmatmul.mubr.msk.bf16.gmra.mrb[60].mxu1 %vm1350_vm3, %v4577_v41 }
  0xe2   : > { %1760 = vmatprep.mubr.bf16.mxu1 %v6103_v8 }
  0xe7   : > { %3717 = vmatmul.mubr.msk.bf16.vlgmr.msra.gmra.mrb[64].mxu0 %vm1350_vm3, %v4538_v24 }
  0xe8   : > { %1697 = vmatprep.mubr.bf16.mxu0 %v6103_v8  ;;  %1802 = vmatpush1.bf16.msra.mxu0 %v3681_v60 }
  0xe9   : > { %3721 = vmatmul.mubr.msk.bf16.vlgmr.msra.gmra.mrb[64].mxu1 %vm1350_vm3, %v4538_v24  ;;  %1803 = vmatprep.subr.bf16.mxu0 %v3698_v63 }
  0xea   : > { %1770 = vmatprep.mubr.bf16.mxu1 %v6103_v8  ;;  %1875 = vmatpush1.bf16.msra.mxu1 %v3683_v0 }
  0xeb   : > { %1876 = vmatprep.subr.bf16.mxu1 %v3700_v1 }
  0xec   : > { %1804 = vmatpush1.bf16.msra.mxu0 %v3697_v2 }
  0xee   : > { %1877 = vmatpush1.bf16.msra.mxu1 %v3699_v3 }
  0xef   : > { %3718 = vmatmul.mubr.msk.bf16.gmra.mrb[68].mxu0 %vm1350_vm3, %v4555_v38 }
  0xf0   : > { %1707 = vmatprep.mubr.bf16.mxu0 %v6103_v8 }
  0xf1   : > { %3722 = vmatmul.mubr.msk.bf16.gmra.mrb[68].mxu1 %vm1350_vm3, %v4555_v38 }
  0xf2   : > { %1780 = vmatprep.mubr.bf16.mxu1 %v6103_v8 }
  0xf7   : > { %3719 = vmatmul.mubr.msk.bf16.gmra.mrb[72].mxu0 %vm1350_vm3, %v4566_v40 }
  0xf8   : > { %1717 = vmatprep.mubr.bf16.mxu0 %v6103_v8 }
  0xf9   : > { %3723 = vmatmul.mubr.msk.bf16.gmra.mrb[72].mxu1 %vm1350_vm3, %v4566_v40 }
  0xfa   : > { %1790 = vmatprep.mubr.bf16.mxu1 %v6103_v8 }
  0xff   : > { %3720 = vmatmul.mubr.msk.bf16.gmra.mrb[76].mxu0 %vm1350_vm3, %v4577_v41 }
 0x100   : > { %1833 = vmatprep.mubr.bf16.mxu0 %v6103_v8 }
 0x101   : > { %3724 = vmatmul.mubr.msk.bf16.gmra.mrb[76].mxu1 %vm1350_vm3, %v4577_v41 }
 0x102   : > { %1906 = vmatprep.mubr.bf16.mxu1 %v6103_v8 }
 0x107   : > { %3725 = vmatmul.mubr.msk.bf16.vlgmr.msra.gmra.mrb[80].mxu0 %vm1350_vm3, %v4538_v24 }
 0x108   : > { %1843 = vmatprep.mubr.bf16.mxu0 %v6103_v8 }
 0x109   : > { %3729 = vmatmul.mubr.msk.bf16.vlgmr.msra.gmra.mrb[80].mxu1 %vm1350_vm3, %v4538_v24 }
 0x10a   : > { %1916 = vmatprep.mubr.bf16.mxu1 %v6103_v8 }
 0x10f   : > { %3726 = vmatmul.mubr.msk.bf16.gmra.mrb[84].mxu0 %vm1350_vm3, %v4555_v38 }
 0x110   : > { %1853 = vmatprep.mubr.bf16.mxu0 %v6103_v8 }
 0x111   : > { %3730 = vmatmul.mubr.msk.bf16.gmra.mrb[84].mxu1 %vm1350_vm3, %v4555_v38 }
 0x112   : > { %1926 = vmatprep.mubr.bf16.mxu1 %v6103_v8 }
 0x117   : > { %3727 = vmatmul.mubr.msk.bf16.gmra.mrb[88].mxu0 %vm1350_vm3, %v4566_v40 }
 0x118   : > { %1863 = vmatprep.mubr.bf16.mxu0 %v6103_v8 }
 0x119   : > { %3731 = vmatmul.mubr.msk.bf16.gmra.mrb[88].mxu1 %vm1350_vm3, %v4566_v40 }
 0x11a   : > { %1936 = vmatprep.mubr.bf16.mxu1 %v6103_v8 }
 0x11f   : > { %3728 = vmatmul.mubr.msk.bf16.gmra.mrb[92].mxu0 %vm1350_vm3, %v4577_v41 }
 0x120   : > { %2027 = vmatprep.mubr.bf16.mxu0 %v6103_v8 }
 0x121   : > { %3732 = vmatmul.mubr.msk.bf16.gmra.mrb[92].mxu1 %vm1350_vm3, %v4577_v41 }
 0x122   : > { %2080 = vmatprep.mubr.bf16.mxu1 %v6103_v8 }
 0x13a   : > { %v684_v6 = vpop.f32.mrb[0].mxu0 }
 0x13b   : > { %v686_v9 = vpop.f32.mrb[1].mxu0  ;;  %v4682_v14 = vadd.f32 %v684_v6, %v4672_v4 }
 0x13c   : > { %v4679_v11 = vadd.f32 %v686_v9, %v4672_v4  ;;  %v688_v12 = vpop.f32.mrb[2].mxu0  ;;  %v737_v13 = vpop.f32.mrb[0].mxu1 }
 0x13d   : > { %v4685_v15 = vadd.f32 %v688_v12, %v4674_v5  ;;  %v4688_v16 = vadd.f32 %v737_v13, %v4672_v4  ;;  %v690_v17 = vpop.f32.mrb[3].mxu0  ;;  %v739_v18 = vpop.f32.mrb[1].mxu1  ;;  %v6102_v28 = vmax.f32 %v4682_v14, 0.0  ;;  %v4778_v12 = vld [vmem:[%s6059_s5 + $0x20] sm:$0xff]  }
 0x13e   : > { %v4691_v19 = vadd.f32 %v690_v17, %v4674_v5  ;;  %v4694_v20 = vadd.f32 %v739_v18, %v4672_v4  ;;  %v741_v21 = vpop.f32.mrb[2].mxu1  ;;  %v6101_v25 = vmax.f32 %v4679_v11, 0.0 }
 0x13f   : > { %v6098_v22 = vmax.f32 %v4685_v15, 0.0  ;;  %v4698_v23 = vadd.f32 %v741_v21, %v4674_v5  ;;  %v743_v24 = vpop.f32.mrb[3].mxu1  ;;  %v6097_v29 = vmax.f32 %v4688_v16, 0.0 }
 0x140   : > { %v6094_v26 = vmax.f32 %v4691_v19, 0.0  ;;  %v4703_v27 = vadd.f32 %v743_v24, %v4674_v5  ;;  %v6093_v32 = vmax.f32 %v4694_v20, 0.0 }
 0x141   : > { %v6092_v30 = vmax.f32 %v4698_v23, 0.0  ;;  %v1947_v35 = vpack.c.bf16 %v6098_v22, %v6102_v28 }
 0x142   : > { %v1948_v31 = vpack.c.bf16 %v6094_v26, %v6101_v25  ;;  %v6087_v33 = vmax.f32 %v4703_v27, 0.0  ;;  %v694_v34 = vpop.f32.mrb[4].mxu0 }
 0x143   : > { %v696_v36 = vpop.f32.mrb[5].mxu0  ;;  %v1949_v42 = vpack.c.bf16 %v6092_v30, %v6097_v29  ;;  %v4732_v43 = vadd.f32 %v694_v34, %v4676_v10 }
 0x144   : > { %v1950_v38 = vpack.c.bf16 %v6087_v33, %v6093_v32  ;;  %v4725_v39 = vadd.f32 %v696_v36, %v4676_v10  ;;  %v698_v40 = vpop.f32.mrb[6].mxu0  ;;  %v747_v41 = vpop.f32.mrb[4].mxu1  ;;  %1995 = vmatprep.subr.bf16.mxu0 %v1948_v31 }
 0x145   : > { %v700_v44 = vpop.f32.mrb[7].mxu0  ;;  %v749_v45 = vpop.f32.mrb[5].mxu1  ;;  %1996 = vmatpush1.bf16.msra.mxu0 %v1947_v35  ;;  %v4735_v46 = vadd.f32 %v698_v40, %v4718_v37  ;;  %v4744_v50 = vadd.f32 %v747_v41, %v4676_v10  ;;  %v6086_v57 = vmax.f32 %v4732_v43, 0.0 }
 0x146   : > { %v4738_v47 = vadd.f32 %v749_v45, %v4676_v10  ;;  %v751_v48 = vpop.f32.mrb[6].mxu1  ;;  %2048 = vmatprep.subr.bf16.mxu1 %v1950_v38  ;;  %v4741_v49 = vadd.f32 %v700_v44, %v4718_v37  ;;  %v6085_v54 = vmax.f32 %v4725_v39, 0.0 }
 0x147   : > { %v4747_v51 = vadd.f32 %v751_v48, %v4718_v37  ;;  %v753_v52 = vpop.f32.mrb[7].mxu1  ;;  %2049 = vmatpush1.bf16.msra.mxu1 %v1949_v42  ;;  %v6082_v53 = vmax.f32 %v4735_v46, 0.0  ;;  %v6081_v63 = vmax.f32 %v4744_v50, 0.0 }
 0x148   : > { %v4752_v55 = vadd.f32 %v753_v52, %v4718_v37  ;;  %v6078_v56 = vmax.f32 %v4741_v49, 0.0  ;;  %v6077_v59 = vmax.f32 %v4738_v47, 0.0 }
 0x149   : > { %v6076_v58 = vmax.f32 %v4747_v51, 0.0  ;;  %v1963_v1 = vpack.c.bf16 %v6082_v53, %v6086_v57 }
 0x14a   : > { %v6073_v60 = vmax.f32 %v4752_v55, 0.0  ;;  %v790_v61 = vpop.f32.mrb[8].mxu0  ;;  %v1964_v62 = vpack.c.bf16 %v6078_v56, %v6085_v54 }
 0x14b   : > { %v792_v0 = vpop.f32.mrb[9].mxu0  ;;  %v1965_v13 = vpack.c.bf16 %v6076_v58, %v6081_v63  ;;  %v4785_v17 = vadd.f32 %v790_v61, %v4672_v4 }
 0x14c   : > { %v1966_v2 = vpack.c.bf16 %v6073_v60, %v6077_v59  ;;  %v4773_v3 = vadd.f32 %v792_v0, %v4672_v4  ;;  %v794_v6 = vpop.f32.mrb[10].mxu0  ;;  %v843_v9 = vpop.f32.mrb[8].mxu1  ;;  %1997 = vmatprep.subr.bf16.mxu0 %v1964_v62 }
 0x14d   : > { %v4788_v18 = vadd.f32 %v794_v6, %v4674_v5  ;;  %v796_v21 = vpop.f32.mrb[11].mxu0  ;;  %v845_v24 = vpop.f32.mrb[9].mxu1  ;;  %1998 = vmatpush1.bf16.msra.mxu0 %v1963_v1  ;;  %v4798_v38 = vadd.f32 %v843_v9, %v4672_v4  ;;  %v6072_v48 = vmax.f32 %v4785_v17, 0.0 }
 0x14e   : > { %v4791_v31 = vadd.f32 %v796_v21, %v4674_v5  ;;  %v4794_v34 = vadd.f32 %v845_v24, %v4672_v4  ;;  %v847_v35 = vpop.f32.mrb[10].mxu1  ;;  %2050 = vmatprep.subr.bf16.mxu1 %v1966_v2  ;;  %v6071_v42 = vmax.f32 %v4773_v3, 0.0 }
 0x14f   : > { %v6068_v36 = vmax.f32 %v4788_v18, 0.0  ;;  %v4801_v40 = vadd.f32 %v847_v35, %v4674_v5  ;;  %v849_v41 = vpop.f32.mrb[11].mxu1  ;;  %2051 = vmatpush1.bf16.msra.mxu1 %v1965_v13  ;;  %v6075_v6 = vmax.f32 %v4798_v38, 0.0 }
 0x150   : > { %v6067_v44 = vmax.f32 %v4791_v31, 0.0  ;;  %v4806_v45 = vadd.f32 %v849_v41, %v4674_v5  ;;  %3735 = vmatmul.mubr.msk.bf16.vlgmr.msra.gmra.mrb[32].mxu0 %vm1350_vm3, %v4778_v12  ;;  %v6070_v62 = vmax.f32 %v4794_v34, 0.0  ;;  %v4837_v41 = vld [vmem:[%s6059_s5 + $0x28] sm:$0xff]  }
 0x151   : > { %v6074_v52 = vmax.f32 %v4801_v40, 0.0  ;;  %2037 = vmatprep.mubr.bf16.mxu0 %v6103_v8  ;;  %v1951_v2 = vpack.c.bf16 %v6068_v36, %v6072_v48 }
 0x152   : > { %v1952_v61 = vpack.c.bf16 %v6067_v44, %v6071_v42  ;;  %v6069_v0 = vmax.f32 %v4806_v45, 0.0  ;;  %v800_v1 = vpop.f32.mrb[12].mxu0  ;;  %3737 = vmatmul.mubr.msk.bf16.vlgmr.msra.gmra.mrb[32].mxu1 %vm1350_vm3, %v4778_v12 }
 0x153   : > { %v802_v9 = vpop.f32.mrb[13].mxu0  ;;  %2090 = vmatprep.mubr.bf16.mxu1 %v6103_v8  ;;  %v1953_v44 = vpack.c.bf16 %v6074_v52, %v6075_v6  ;;  %v4844_v36 = vadd.f32 %v800_v1, %v4676_v10 }
 0x154   : > { %v1954_v13 = vpack.c.bf16 %v6069_v0, %v6070_v62  ;;  %v4832_v21 = vadd.f32 %v802_v9, %v4676_v10  ;;  %v804_v24 = vpop.f32.mrb[14].mxu0  ;;  %v853_v35 = vpop.f32.mrb[12].mxu1  ;;  %2101 = vmatprep.subr.bf16.mxu0 %v1952_v61 }
 0x155   : > { %v4847_v0 = vadd.f32 %v804_v24, %v4718_v37  ;;  %v806_v9 = vpop.f32.mrb[15].mxu0  ;;  %v855_v62 = vpop.f32.mrb[13].mxu1  ;;  %2102 = vmatpush1.bf16.msra.mxu0 %v1951_v2  ;;  %v4857_v52 = vadd.f32 %v853_v35, %v4676_v10 }
 0x156   : > { %v4850_v61 = vadd.f32 %v806_v9, %v4718_v37  ;;  %v4853_v42 = vadd.f32 %v855_v62, %v4676_v10  ;;  %v857_v48 = vpop.f32.mrb[14].mxu1  ;;  %2154 = vmatprep.subr.bf16.mxu1 %v1954_v13  ;;  %v6080_v2 = vmax.f32 %v4832_v21, 0.0  ;;  %v6084_v62 = vmax.f32 %v4844_v36, 0.0 }
 0x157   : > { %v6083_v60 = vmax.f32 %v4847_v0, 0.0  ;;  %v4860_v1 = vadd.f32 %v857_v48, %v4718_v37  ;;  %v859_v24 = vpop.f32.mrb[15].mxu1  ;;  %2155 = vmatpush1.bf16.msra.mxu1 %v1953_v44  ;;  %v6091_v59 = vmax.f32 %v4857_v52, 0.0 }
 0x158   : > { %v6079_v9 = vmax.f32 %v4850_v61, 0.0  ;;  %v4865_v6 = vadd.f32 %v859_v24, %v4718_v37  ;;  %3736 = vmatmul.mubr.msk.bf16.gmra.mrb[36].mxu0 %vm1350_vm3, %v4837_v41  ;;  %v6089_v48 = vmax.f32 %v4853_v42, 0.0 }
 0x159   : > { %v6090_v13 = vmax.f32 %v4860_v1, 0.0  ;;  %2133 = vmatprep.mubr.bf16.mxu0 %v6103_v8  ;;  %v1967_v58 = vpack.c.bf16 %v6083_v60, %v6084_v62 }
 0x15a   : > { %v1968_v44 = vpack.c.bf16 %v6079_v9, %v6080_v2  ;;  %v6088_v35 = vmax.f32 %v4865_v6, 0.0  ;;  %v896_v24 = vpop.f32.mrb[16].mxu0  ;;  %3738 = vmatmul.mubr.msk.bf16.gmra.mrb[36].mxu1 %vm1350_vm3, %v4837_v41 }
 0x15b   : > { %v898_v56 = vpop.f32.mrb[17].mxu0  ;;  %2186 = vmatprep.mubr.bf16.mxu1 %v6103_v8  ;;  %v1969_v60 = vpack.c.bf16 %v6090_v13, %v6091_v59  ;;  %v4898_v62 = vadd.f32 %v896_v24, %v4672_v4 }
 0x15c   : > { %v1970_v9 = vpack.c.bf16 %v6088_v35, %v6089_v48  ;;  %v4891_v2 = vadd.f32 %v898_v56, %v4672_v4  ;;  %v900_v63 = vpop.f32.mrb[18].mxu0  ;;  %v949_v53 = vpop.f32.mrb[16].mxu1  ;;  %2103 = vmatprep.subr.bf16.mxu0 %v1968_v44 }
 0x15d   : > { %v4901_v54 = vadd.f32 %v900_v63, %v4674_v5  ;;  %v902_v57 = vpop.f32.mrb[19].mxu0  ;;  %v951_v33 = vpop.f32.mrb[17].mxu1  ;;  %2104 = vmatpush1.bf16.msra.mxu0 %v1967_v58  ;;  %v4911_v13 = vadd.f32 %v949_v53, %v4672_v4 }
 0x15e   : > { %v4904_v56 = vadd.f32 %v902_v57, %v4674_v5  ;;  %v4907_v35 = vadd.f32 %v951_v33, %v4672_v4  ;;  %v953_v44 = vpop.f32.mrb[18].mxu1  ;;  %2156 = vmatprep.subr.bf16.mxu1 %v1970_v9  ;;  %v6096_v58 = vmax.f32 %v4891_v2, 0.0  ;;  %v6100_v33 = vmax.f32 %v4898_v62, 0.0 }
 0x15f   : > { %v6099_v48 = vmax.f32 %v4901_v54, 0.0  ;;  %v4914_v24 = vadd.f32 %v953_v44, %v4674_v5  ;;  %v955_v63 = vpop.f32.mrb[19].mxu1  ;;  %2157 = vmatpush1.bf16.msra.mxu1 %v1969_v60  ;;  %v6108_v32 = vmax.f32 %v4911_v13, 0.0 }
 0x160   : > { %6206 = vst [vmem:[#allocation14_spill] sm:$0xff] %v4907_v35  ;;  %v6095_v57 = vmax.f32 %v4904_v56, 0.0  ;;  %v4919_v59 = vadd.f32 %v955_v63, %v4674_v5  ;;  %3739 = vmatmul.mubr.msk.bf16.vlgmr.msra.gmra.mrb[48].mxu0 %vm1350_vm3, %v4778_v12  ;;  %v6106_v9 = vmax.f32 %v4907_v35, 0.0 }
 0x161   : > { %6207 = vst [vmem:[#allocation15_spill] sm:$0xff] %v4914_v24  ;;  %v6107_v53 = vmax.f32 %v4914_v24, 0.0  ;;  %2143 = vmatprep.mubr.bf16.mxu0 %v6103_v8  ;;  %v1955_v30 = vpack.c.bf16 %v6099_v48, %v6100_v33 }
 0x162   : > { %6208 = vst [vmem:[#allocation16_spill] sm:$0xff] %v4919_v59  ;;  %v1956_v60 = vpack.c.bf16 %v6095_v57, %v6096_v58  ;;  %v6105_v44 = vmax.f32 %v4919_v59, 0.0  ;;  %v906_v63 = vpop.f32.mrb[20].mxu0  ;;  %3741 = vmatmul.mubr.msk.bf16.vlgmr.msra.gmra.mrb[48].mxu1 %vm1350_vm3, %v4778_v12 }
 0x163   : > { %v908_v26 = vpop.f32.mrb[21].mxu0  ;;  %2196 = vmatprep.mubr.bf16.mxu1 %v6103_v8  ;;  %v1957_v48 = vpack.c.bf16 %v6107_v53, %v6108_v32  ;;  %v4952_v33 = vadd.f32 %v906_v63, %v4676_v10 }
 0x164   : > { %v1958_v57 = vpack.c.bf16 %v6105_v44, %v6106_v9  ;;  %v4945_v58 = vadd.f32 %v908_v26, %v4676_v10  ;;  %v910_v29 = vpop.f32.mrb[22].mxu0  ;;  %v959_v22 = vpop.f32.mrb[20].mxu1  ;;  %2207 = vmatprep.subr.bf16.mxu0 %v1956_v60 }
 0x165   : > { %6210 = vst [vmem:[#allocation18_spill] sm:$0xff] %v4952_v33  ;;  %v4955_v25 = vadd.f32 %v910_v29, %v4718_v37  ;;  %v912_v28 = vpop.f32.mrb[23].mxu0  ;;  %v961_v8 = vpop.f32.mrb[21].mxu1  ;;  %2208 = vmatpush1.bf16.msra.mxu0 %v1955_v30  ;;  %v4965_v53 = vadd.f32 %v959_v22, %v4676_v10 }
 0x166   : > { %6209 = vst [vmem:[#allocation17_spill] sm:$0xff] %v4945_v58  ;;  %v4958_v26 = vadd.f32 %v912_v28, %v4718_v37  ;;  %v4961_v44 = vadd.f32 %v961_v8, %v4676_v10  ;;  %v963_v60 = vpop.f32.mrb[22].mxu1  ;;  %2260 = vmatprep.subr.bf16.mxu1 %v1958_v57  ;;  %v6113_v30 = vmax.f32 %v4945_v58, 0.0  ;;  %v6116_v8 = vmax.f32 %v4952_v33, 0.0 }
 0x167   : > { %6211 = vst [vmem:[#allocation19_spill] sm:$0xff] %v4955_v25  ;;  %v4968_v63 = vadd.f32 %v963_v60, %v4718_v37  ;;  %v965_v29 = vpop.f32.mrb[23].mxu1  ;;  %2261 = vmatpush1.bf16.msra.mxu1 %v1957_v48  ;;  %v6215_v57 = vmov 0   ;;  %v6216_v59 = vmax.f32 %v4955_v25, 0.0  ;;  %v6123_v24 = vmax.f32 %v4965_v53, 0.0 }
 0x168   : > { %6212 = vst [vmem:[#allocation20_spill] sm:$0xff] %v4958_v26  ;;  %6213 = vst [vmem:[#allocation21_spill] sm:$0xff] %v4961_v44  ;;  %v6112_v28 = vmax.f32 %v4958_v26, 0.0  ;;  %v4973_v32 = vadd.f32 %v965_v29, %v4718_v37  ;;  %3740 = vmatmul.mubr.msk.bf16.gmra.mrb[52].mxu0 %vm1350_vm3, %v4837_v41  ;;  %v6122_v60 = vmax.f32 %v4961_v44, 0.0 }
 0x169   : > { %2239 = vmatprep.mubr.bf16.mxu0 %v6215_v57  ;;  %v1971_v22 = vpack.c.bf16 %v6216_v59, %v6116_v8  ;;  %v6218_v59 = vmax.f32 %v4968_v63, 0.0 }
 0x16a   : > { %6214 = vst [vmem:[#allocation22_spill] sm:$0xff] %v4973_v32  ;;  %v1972_v48 = vpack.c.bf16 %v6112_v28, %v6113_v30  ;;  %v6121_v9 = vmax.f32 %v4973_v32, 0.0  ;;  %v1002_v29 = vpop.f32.mrb[24].mxu0  ;;  %3742 = vmatmul.mubr.msk.bf16.gmra.mrb[52].mxu1 %vm1350_vm3, %v4837_v41 }
 0x16b   : > { %v1004_v35 = vpop.f32.mrb[25].mxu0  ;;  %2292 = vmatprep.mubr.bf16.mxu1 %v6215_v57  ;;  %v1973_v8 = vpack.c.bf16 %v6218_v59, %v6123_v24  ;;  %v5006_v25 = vadd.f32 %v1002_v29, %v4672_v4 }
 0x16c   : > { %v1974_v28 = vpack.c.bf16 %v6121_v9, %v6122_v60  ;;  %v4999_v30 = vadd.f32 %v1004_v35, %v4672_v4  ;;  %v1006_v26 = vpop.f32.mrb[26].mxu0  ;;  %v1055_v58 = vpop.f32.mrb[24].mxu1  ;;  %2209 = vmatprep.subr.bf16.mxu0 %v1972_v48 }
 0x16d   : > { %6219 = vst [vmem:[#allocation24_spill] sm:$0xff] %v5006_v25  ;;  %v5009_v33 = vadd.f32 %v1006_v26, %v4674_v5  ;;  %v1008_v44 = vpop.f32.mrb[27].mxu0  ;;  %v1057_v32 = vpop.f32.mrb[25].mxu1  ;;  %2210 = vmatpush1.bf16.msra.mxu0 %v1971_v22  ;;  %v5019_v59 = vadd.f32 %v1055_v58, %v4672_v4 }
 0x16e   : > { %6217 = vst [vmem:[#allocation23_spill] sm:$0xff] %v4999_v30  ;;  %v5012_v35 = vadd.f32 %v1008_v44, %v4674_v5  ;;  %v5015_v9 = vadd.f32 %v1057_v32, %v4672_v4  ;;  %v1059_v48 = vpop.f32.mrb[26].mxu1  ;;  %2262 = vmatprep.subr.bf16.mxu1 %v1974_v28  ;;  %v6125_v22 = vmax.f32 %v4999_v30, 0.0  ;;  %v6129_v32 = vmax.f32 %v5006_v25, 0.0 }
 0x16f   : > { %6220 = vst [vmem:[#allocation25_spill] sm:$0xff] %v5009_v33  ;;  %v6128_v60 = vmax.f32 %v5009_v33, 0.0  ;;  %6223 = vst [vmem:[#allocation28_spill] sm:$0xff] %v5019_v59  ;;  %v5022_v29 = vadd.f32 %v1059_v48, %v4674_v5  ;;  %v1061_v26 = vpop.f32.mrb[27].mxu1  ;;  %2263 = vmatpush1.bf16.msra.mxu1 %v1973_v8 }
 0x170   : > { %6221 = vst [vmem:[#allocation26_spill] sm:$0xff] %v5012_v35  ;;  %6222 = vst [vmem:[#allocation27_spill] sm:$0xff] %v5015_v9  ;;  %v6124_v44 = vmax.f32 %v5012_v35, 0.0  ;;  %v5027_v24 = vadd.f32 %v1061_v26, %v4674_v5  ;;  %3743 = vmatmul.mubr.msk.bf16.vlgmr.msra.gmra.mrb[64].mxu0 %vm1350_vm3, %v4778_v12  ;;  %v6135_v28 = vmax.f32 %v5015_v9, 0.0  ;;  %v6136_v26 = vmax.f32 %v5019_v59, 0.0 }
 0x171   : > { %6224 = vst [vmem:[#allocation29_spill] sm:$0xff] %v5022_v29  ;;  %2249 = vmatprep.mubr.bf16.mxu0 %v6215_v57  ;;  %v1959_v48 = vpack.c.bf16 %v6128_v60, %v6129_v32  ;;  %v6227_v60 = vmax.f32 %v5022_v29, 0.0  ;;  %v6248_v29 = vmax.f32 %v4694_v20, 0.0  ;;  %v6251_v20 = vmax.f32 %v4703_v27, 0.0 }
 0x172   : > { %6225 = vst [vmem:[#allocation30_spill] sm:$0xff] %v5027_v24  ;;  %v1960_v58 = vpack.c.bf16 %v6124_v44, %v6125_v22  ;;  %v6134_v8 = vmax.f32 %v5027_v24, 0.0  ;;  %v1012_v5 = vpop.f32.mrb[28].mxu0  ;;  %3745 = vmatmul.mubr.msk.bf16.vlgmr.msra.gmra.mrb[64].mxu1 %vm1350_vm3, %v4778_v12  ;;  %v6252_v27 = vmax.f32 %v4732_v43, 0.0 }
 0x173   : > { %v1014_v4 = vpop.f32.mrb[29].mxu0  ;;  %2302 = vmatprep.mubr.bf16.mxu1 %v6215_v57  ;;  %v1961_v32 = vpack.c.bf16 %v6227_v60, %v6136_v26  ;;  %v5060_v33 = vadd.f32 %v1012_v5, %v4676_v10 }
 0x174   : > { %v1962_v44 = vpack.c.bf16 %v6134_v8, %v6135_v28  ;;  %v5053_v22 = vadd.f32 %v1014_v4, %v4676_v10  ;;  %v1016_v35 = vpop.f32.mrb[30].mxu0  ;;  %v1065_v30 = vpop.f32.mrb[28].mxu1  ;;  %2313 = vmatprep.subr.bf16.mxu0 %v1960_v58 }
 0x175   : > { %6228 = vst [vmem:[#allocation32_spill] sm:$0xff] %v5060_v33  ;;  %v5063_v25 = vadd.f32 %v1016_v35, %v4718_v37  ;;  %v1018_v9 = vpop.f32.mrb[31].mxu0  ;;  %v1067_v24 = vpop.f32.mrb[29].mxu1  ;;  %2314 = vmatpush1.bf16.msra.mxu0 %v1959_v48  ;;  %v5073_v60 = vadd.f32 %v1065_v30, %v4676_v10 }
 0x176   : > { %6226 = vst [vmem:[#allocation31_spill] sm:$0xff] %v5053_v22  ;;  %v5066_v4 = vadd.f32 %v1018_v9, %v4718_v37  ;;  %v5069_v8 = vadd.f32 %v1067_v24, %v4676_v10  ;;  %v1069_v58 = vpop.f32.mrb[30].mxu1  ;;  %2366 = vmatprep.subr.bf16.mxu1 %v1962_v44  ;;  %v6138_v48 = vmax.f32 %v5053_v22, 0.0  ;;  %v6141_v44 = vmax.f32 %v5060_v33, 0.0  ;;  %v5103_v10 = vpop.permute.xlu1 %2428 }
 0x177   : > { %6229 = vst [vmem:[#allocation33_spill] sm:$0xff] %v5063_v25  ;;  %v6140_v28 = vmax.f32 %v5063_v25, 0.0  ;;  %6232 = vst [vmem:[#allocation36_spill] sm:$0xff] %v5073_v60  ;;  %v5076_v35 = vadd.f32 %v1069_v58, %v4718_v37  ;;  %v1071_v5 = vpop.f32.mrb[31].mxu1  ;;  %2367 = vmatpush1.bf16.msra.mxu1 %v1961_v32  ;;  %v3939_v58 = vld [vmem:[%s4646_s10] sm:$0xff]   ;;  %v6144_v26 = vmax.f32 %v5073_v60, 0.0 }
 0x178   : > { %6230 = vst [vmem:[#allocation34_spill] sm:$0xff] %v5066_v4  ;;  %6231 = vst [vmem:[#allocation35_spill] sm:$0xff] %v5069_v8  ;;  %v6137_v9 = vmax.f32 %v5066_v4, 0.0  ;;  %v5081_v24 = vadd.f32 %v1071_v5, %v4718_v37  ;;  %3744 = vmatmul.mubr.msk.bf16.gmra.mrb[68].mxu0 %vm1350_vm3, %v4837_v41  ;;  %v6143_v32 = vmax.f32 %v5069_v8, 0.0  ;;  %v6247_v22 = vmax.f32 %v4691_v19, 0.0 }
 0x179   : > { %6233 = vst [vmem:[#allocation37_spill] sm:$0xff] %v5076_v35  ;;  %2345 = vmatprep.mubr.bf16.mxu0 %v6215_v57  ;;  %v1975_v5 = vpack.c.bf16 %v6140_v28, %v6141_v44  ;;  %6235 = vst [vmem:[#allocation39_spill] sm:$0xff] %v5103_v10  ;;  %v5114_v28 = vpop.permute.xlu0 %2424  ;;  %v3940_v44 = vld [vmem:[%s4646_s10 + $0x8] sm:$0xff]   ;;  %v6243_v10 = vsub.s32 1, %v4399_v7  ;;  %s3472_s10 = sadd.s32 %s4189_s27, %s3758_s9 }
 0x17a   : > { %6234 = vst [vmem:[#allocation38_spill] sm:$0xff] %v5081_v24  ;;  %v1976_v30 = vpack.c.bf16 %v6137_v9, %v6138_v48  ;;  %v6142_v37 = vmax.f32 %v5081_v24, 0.0  ;;  %3746 = vmatmul.mubr.msk.bf16.gmra.mrb[68].mxu1 %vm1350_vm3, %v4837_v41  ;;  %v6236_v48 = vmax.f32 %v5076_v35, 0.0  ;;  %6237 = vst [vmem:[#allocation40_spill] sm:$0xff] %v5114_v28  ;;  %s3759_s12 = sshll.u32 %s3472_s10, 7 }
 0x17b   : > { %2398 = vmatprep.mubr.bf16.mxu1 %v6215_v57  ;;  %s6000_s19 = scalar_lea.hbm %s6061_s7, %s3759_s12 }
 0x17c   : > { %v1978_v9 = vpack.c.bf16 %v6142_v37, %v6143_v32  ;;  %2315 = vmatprep.subr.bf16.mxu0 %v1976_v30  ;;  %v1977_v4 = vpack.c.bf16 %v6236_v48, %v6144_v26  ;;  %v5125_v48 = vpop.permute.xlu1 %2432  ;;  %v3941_v30 = vld [vmem:[%s6059_s5 + $0x30] sm:$0xff]  }
 0x17d   : > { %2316 = vmatpush1.bf16.msra.mxu0 %v1975_v5  ;;  %6238 = vst [vmem:[#allocation41_spill] sm:$0xff] %v5125_v48  ;;  %v2898_v5 = vld [vmem:[%s5122_s1] sm:$0x2] }
 0x17e   : > { %2368 = vmatprep.subr.bf16.mxu1 %v1978_v9  ;;  %3766 = vmatprep.subr.bf16.mxu0 %v3939_v58  ;;  %v2816_v9 = vld [vmem:[%s5122_s1] sm:$0x1] }
 0x17f   : > { %2369 = vmatpush1.bf16.msra.mxu1 %v1977_v4  ;;  %v5130_v4 = vpop.permute.xlu0 %2436  ;;  %v2817_v32 = vunpack.c.l.bf16 %v2816_v9  ;;  %v6240_v9 = vmax.f32 %v4682_v14, 0.0  ;;  %v6244_v14 = vmax.f32 %v4685_v15, 0.0 }
 0x180   : > { %3747 = vmatmul.mubr.msk.bf16.vlgmr.msra.gmra.mrb[80].mxu0 %vm1350_vm3, %v4778_v12  ;;  %6239 = vst [vmem:[#allocation42_spill] sm:$0xff] %v5130_v4  ;;  %v5137_v37 = vpop.permute.xlu1 %2645 }
 0x181   : > { %2355 = vmatprep.mubr.bf16.mxu0 %v6215_v57  ;;  %3767 = vmatpush3.bf16.msra.mxu0 %v3939_v58  ;;  %v2861_v8 = vrot.slane %v2817_v32, %v6243_v10  ;;  %v6249_v10 = vsub.s32 3, %v4399_v7 }
 0x182   : > { %3749 = vmatmul.mubr.msk.bf16.vlgmr.msra.gmra.mrb[80].mxu1 %vm1350_vm3, %v4778_v12  ;;  %3768 = vmatprep.subr.bf16.mxu0 %v3940_v44 }
 0x183   : > { %2408 = vmatprep.mubr.bf16.mxu1 %v6215_v57  ;;  %v2899_v57 = vunpack.c.l.bf16 %v2898_v5  ;;  %v5148_v4 = vpop.permute.xlu0 %2649  ;;  %v6241_v5 = vsub.s32 0, %v4399_v7 }
 0x184   : > { %v5152_v48 = vpop.permute.xlu1 %2653 }
 0x185   : > { %3769 = vmatpush3.bf16.msra.mxu0 %v3940_v44  ;;  %v2821_v12 = vrot.slane %v2817_v32, %v6241_v5  ;;  %v2943_v15 = vrot.slane %v2899_v57, %v6249_v10 }
 0x188   : > { %3748 = vmatmul.mubr.msk.bf16.gmra.mrb[84].mxu0 %vm1350_vm3, %v4837_v41  ;;  %v5204_v10 = vpop.permute.xlu1 %2657 }
 0x189   : > { %3770 = vmatprep.mubr.msk.bf16.mxu0 %vm1350_vm3, %v3941_v30  ;;  %v6242_v30 = vmax.f32 %v4679_v11, 0.0  ;;  %v6246_v11 = vsub.s32 2, %v4399_v7 }
 0x18a   : > { %v1417_v26 = vpop.f32.mrb[40].mxu0  ;;  %3750 = vmatmul.mubr.msk.bf16.gmra.mrb[84].mxu1 %vm1350_vm3, %v4837_v41  ;;  %v3942_v41 = vld [vmem:[%s6059_s5 + $0x38] sm:$0xff]  }
 0x18b   : > { %v2580_v58 = vadd.f32 %v1417_v26, %v6240_v9  ;;  %v1419_v28 = vpop.f32.mrb[41].mxu0  ;;  %v6245_v9 = vmax.f32 %v4688_v16, 0.0 }
 0x18c   : > { %v2581_v44 = vadd.f32 %v1419_v28, %v6242_v30  ;;  %v1421_v24 = vpop.f32.mrb[42].mxu0  ;;  %v1490_v35 = vpop.f32.mrb[40].mxu1  ;;  %v2903_v28 = vrot.slane %v2899_v57, %v6246_v11 }
 0x18d   : > { %v2596_v26 = vadd.f32 %v1421_v24, %v6244_v14  ;;  %v2582_v60 = vadd.f32 %v1490_v35, %v6245_v9  ;;  %v1423_v25 = vpop.f32.mrb[43].mxu0  ;;  %v1492_v5 = vpop.f32.mrb[41].mxu1  ;;  %v2660_v30 = vadd.f32 %v5137_v37, %v2580_v58  ;;  %v6250_v35 = vmax.f32 %v4698_v23, 0.0 }
 0x18e   : > { %v2597_v33 = vadd.f32 %v1423_v25, %v6247_v22  ;;  %v2583_v59 = vadd.f32 %v1492_v5, %v6248_v29  ;;  %v1494_v24 = vpop.f32.mrb[42].mxu1  ;;  %v2661_v16 = vadd.f32 %v5137_v37, %v2581_v44 }
 0x18f   : > { %v2598_v32 = vadd.f32 %v1494_v24, %v6250_v35  ;;  %v1496_v14 = vpop.f32.mrb[43].mxu1  ;;  %v2662_v9 = vadd.f32 %v5137_v37, %v2582_v60  ;;  %v2676_v58 = vadd.f32 %v5148_v4, %v2596_v26  ;;  %v5181_v11 = vmul.f32 %v2821_v12, %v2660_v30 }
 0x190   : > { %v2663_v19 = vadd.f32 %v5137_v37, %v2583_v59  ;;  %v2599_v25 = vadd.f32 %v1496_v14, %v6251_v20  ;;  %3771 = vmatmul.mubr.msk.bf16.vlgmr.msra.gmra.mrb[96].mxu0 %vm1350_vm3, %v3942_v41  ;;  %v2677_v29 = vadd.f32 %v5148_v4, %v2597_v33  ;;  %v5188_v22 = vmul.f32 %v2861_v8, %v2661_v16 }
 0x191   : > { %v2678_v23 = vadd.f32 %v5148_v4, %v2598_v32  ;;  %v5191_v57 = vmul.f32 %v2903_v28, %v2662_v9  ;;  %v5193_v60 = vmul.f32 %v2821_v12, %v2676_v58  ;;  %v6253_v16 = vmax.f32 %v4725_v39, 0.0 }
 0x192   : > { %v5195_v44 = vmul.f32 %v2943_v15, %v2663_v19  ;;  %v2679_v26 = vadd.f32 %v5148_v4, %v2599_v25  ;;  %v1427_v59 = vpop.f32.mrb[44].mxu0  ;;  %v5198_v5 = vmul.f32 %v2861_v8, %v2677_v29  ;;  %v6254_v9 = vmax.f32 %v4735_v46, 0.0 }
 0x193   : > { %v2612_v41 = vadd.f32 %v1427_v59, %v6252_v27  ;;  %v1429_v30 = vpop.f32.mrb[45].mxu0  ;;  %v5202_v33 = vmul.f32 %v2903_v28, %v2678_v23  ;;  %v6255_v19 = vmax.f32 %v4744_v50, 0.0  ;;  %v6257_v39 = vmax.f32 %v4738_v47, 0.0 }
 0x194   : > { %v5206_v24 = vmul.f32 %v2943_v15, %v2679_v26  ;;  %v2613_v35 = vadd.f32 %v1429_v30, %v6253_v16  ;;  %v1431_v32 = vpop.f32.mrb[46].mxu0  ;;  %v1500_v14 = vpop.f32.mrb[44].mxu1  ;;  %v6256_v26 = vmax.f32 %v4741_v49, 0.0  ;;  %v6258_v46 = vmax.f32 %v4747_v51, 0.0 }
 0x195   : > { %v2628_v58 = vadd.f32 %v1431_v32, %v6254_v9  ;;  %v2614_v20 = vadd.f32 %v1500_v14, %v6255_v19  ;;  %v1433_v43 = vpop.f32.mrb[47].mxu0  ;;  %v1502_v25 = vpop.f32.mrb[45].mxu1  ;;  %v2692_v29 = vadd.f32 %v5152_v48, %v2612_v41  ;;  %v6259_v9 = vmax.f32 %v4752_v55, 0.0 }
 0x196   : > { %v2693_v23 = vadd.f32 %v5152_v48, %v2613_v35  ;;  %v2629_v59 = vadd.f32 %v1433_v43, %v6256_v26  ;;  %v2615_v27 = vadd.f32 %v1502_v25, %v6257_v39  ;;  %v1504_v30 = vpop.f32.mrb[46].mxu1  ;;  %v3062_v39 = vld [vmem:[%s5122_s1] sm:$0x8] }
 0x197   : > { %v2694_v16 = vadd.f32 %v5152_v48, %v2614_v20  ;;  %v2630_v32 = vadd.f32 %v1504_v30, %v6258_v46  ;;  %v1506_v50 = vpop.f32.mrb[47].mxu1  ;;  %v2708_v14 = vadd.f32 %v5204_v10, %v2628_v58  ;;  %v5224_v41 = vmul.f32 %v2821_v12, %v2692_v29 }
 0x198   : > { %v5226_v35 = vmul.f32 %v2861_v8, %v2693_v23  ;;  %v2695_v49 = vadd.f32 %v5152_v48, %v2615_v27  ;;  %v2709_v47 = vadd.f32 %v5204_v10, %v2629_v59  ;;  %v2631_v19 = vadd.f32 %v1506_v50, %v6259_v9  ;;  %v2980_v59 = vld [vmem:[%s5122_s1] sm:$0x4] }
 0x199   : > { %v5232_v20 = vmul.f32 %v2903_v28, %v2694_v16  ;;  %v2710_v51 = vadd.f32 %v5204_v10, %v2630_v32  ;;  %v5235_v43 = vmul.f32 %v2821_v12, %v2708_v14  ;;  %v2981_v55 = vunpack.c.l.bf16 %v2980_v59 }
 0x19a   : > { %v5237_v25 = vmul.f32 %v2943_v15, %v2695_v49  ;;  %v5239_v58 = vmul.f32 %v2861_v8, %v2709_v47  ;;  %v2711_v29 = vadd.f32 %v5204_v10, %v2631_v19  ;;  %v6154_v27 = vsub.s32 4, %v4399_v7 }
 0x19b   : > { %v5242_v23 = vmul.f32 %v2903_v28, %v2710_v51  ;;  %v6155_v30 = vsub.s32 5, %v4399_v7  ;;  %v3063_v16 = vunpack.c.l.bf16 %v3062_v39  ;;  %v6156_v12 = vsub.s32 6, %v4399_v7 }
 0x19c   : > { %v5244_v26 = vmul.f32 %v2943_v15, %v2711_v29  ;;  %v6157_v8 = vsub.s32 7, %v4399_v7  ;;  %v6260_v32 = vmax.f32 %v4785_v17, 0.0  ;;  %v2985_v28 = vrot.slane %v2981_v55, %v6154_v27 }
 0x19d   : > { %v6261_v14 = vmax.f32 %v4773_v3, 0.0  ;;  %v3025_v47 = vrot.slane %v2981_v55, %v6155_v30  ;;  %v6262_v29 = vmax.f32 %v4788_v18, 0.0  ;;  %v6263_v17 = vmax.f32 %v4798_v38, 0.0 }
 0x19e   : > { %v3107_v18 = vrot.slane %v3063_v16, %v6157_v8 }
 0x1aa   : > { %v1563_v46 = vpop.f32.mrb[56].mxu0 }
 0x1ab   : > { %v2584_v50 = vadd.f32 %v1563_v46, %v6260_v32  ;;  %v1565_v15 = vpop.f32.mrb[57].mxu0  ;;  %v3067_v46 = vrot.slane %v3063_v16, %v6156_v12 }
 0x1ac   : > { %v2585_v49 = vadd.f32 %v1565_v15, %v6261_v14  ;;  %v1567_v9 = vpop.f32.mrb[58].mxu0  ;;  %v1636_v19 = vpop.f32.mrb[56].mxu1  ;;  %v6264_v15 = vmax.f32 %v4791_v31, 0.0  ;;  %v6265_v14 = vmax.f32 %v4794_v34, 0.0 }
 0x1ad   : > { %v2664_v51 = vadd.f32 %v5137_v37, %v2584_v50  ;;  %v2600_v59 = vadd.f32 %v1567_v9, %v6262_v29  ;;  %v2586_v39 = vadd.f32 %v1636_v19, %v6263_v17  ;;  %v1569_v32 = vpop.f32.mrb[59].mxu0  ;;  %v1638_v27 = vpop.f32.mrb[57].mxu1  ;;  %v6267_v29 = vmax.f32 %v4801_v40, 0.0 }
 0x1ae   : > { %v2665_v3 = vadd.f32 %v5137_v37, %v2585_v49  ;;  %v2601_v55 = vadd.f32 %v1569_v32, %v6264_v15  ;;  %v2587_v30 = vadd.f32 %v1638_v27, %v6265_v14  ;;  %v1640_v50 = vpop.f32.mrb[58].mxu1  ;;  %v6269_v27 = vmax.f32 %v4806_v45, 0.0 }
 0x1af   : > { %v5274_v9 = vmul.f32 %v2985_v28, %v2664_v51  ;;  %v2680_v38 = vadd.f32 %v5148_v4, %v2600_v59  ;;  %v2666_v19 = vadd.f32 %v5137_v37, %v2586_v39  ;;  %v2602_v17 = vadd.f32 %v1640_v50, %v6267_v29  ;;  %v1642_v49 = vpop.f32.mrb[59].mxu1 }
 0x1b0   : > { %v5280_v12 = vmul.f32 %v3025_v47, %v2665_v3  ;;  %v2681_v31 = vadd.f32 %v5148_v4, %v2601_v55  ;;  %v2667_v34 = vadd.f32 %v5137_v37, %v2587_v30  ;;  %v2603_v16 = vadd.f32 %v1642_v49, %v6269_v27 }
 0x1b1   : > { %6266 = vst [vmem:[#allocation43_spill] sm:$0xff] %v5274_v9  ;;  %v5286_v32 = vmul.f32 %v2985_v28, %v2680_v38  ;;  %v5288_v51 = vmul.f32 %v3067_v46, %v2666_v19  ;;  %v2682_v59 = vadd.f32 %v5148_v4, %v2602_v17  ;;  %v6275_v30 = vmax.f32 %v4844_v36, 0.0 }
 0x1b2   : > { %6268 = vst [vmem:[#allocation44_spill] sm:$0xff] %v5280_v12  ;;  %v5291_v39 = vmul.f32 %v3025_v47, %v2681_v31  ;;  %v5293_v40 = vmul.f32 %v3107_v18, %v2667_v34  ;;  %v2683_v3 = vadd.f32 %v5148_v4, %v2603_v16  ;;  %v1573_v15 = vpop.f32.mrb[60].mxu0  ;;  %v6277_v38 = vmax.f32 %v4832_v21, 0.0 }
 0x1b3   : > { %6270 = vst [vmem:[#allocation45_spill] sm:$0xff] %v5286_v32  ;;  %6271 = vst [vmem:[#allocation46_spill] sm:$0xff] %v5288_v51  ;;  %v5296_v14 = vmul.f32 %v3067_v46, %v2682_v59  ;;  %v2616_v55 = vadd.f32 %v1573_v15, %v6275_v30  ;;  %v1575_v45 = vpop.f32.mrb[61].mxu0  ;;  %v6278_v31 = vmax.f32 %v4847_v0, 0.0  ;;  %v6279_v27 = vmax.f32 %v4857_v52, 0.0 }
 0x1b4   : > { %6272 = vst [vmem:[#allocation47_spill] sm:$0xff] %v5291_v39  ;;  %6273 = vst [vmem:[#allocation48_spill] sm:$0xff] %v5293_v40  ;;  %v5300_v50 = vmul.f32 %v3107_v18, %v2683_v3  ;;  %v2617_v19 = vadd.f32 %v1575_v45, %v6277_v38  ;;  %v1577_v29 = vpop.f32.mrb[62].mxu0  ;;  %v1646_v17 = vpop.f32.mrb[60].mxu1  ;;  %v6280_v3 = vmax.f32 %v4850_v61, 0.0  ;;  %v6281_v21 = vmax.f32 %v4853_v42, 0.0 }
 0x1b5   : > { %6274 = vst [vmem:[#allocation49_spill] sm:$0xff] %v5296_v14  ;;  %v2696_v49 = vadd.f32 %v5152_v48, %v2616_v55  ;;  %v2632_v34 = vadd.f32 %v1577_v29, %v6278_v31  ;;  %v2618_v16 = vadd.f32 %v1646_v17, %v6279_v27  ;;  %v1579_v59 = vpop.f32.mrb[63].mxu0  ;;  %v1648_v8 = vpop.f32.mrb[61].mxu1  ;;  %v6283_v52 = vmax.f32 %v4860_v1, 0.0 }
 0x1b6   : > { %6276 = vst [vmem:[#allocation50_spill] sm:$0xff] %v5300_v50  ;;  %v2697_v36 = vadd.f32 %v5152_v48, %v2617_v19  ;;  %v2633_v15 = vadd.f32 %v1579_v59, %v6280_v3  ;;  %v2619_v30 = vadd.f32 %v1648_v8, %v6281_v21  ;;  %v1650_v45 = vpop.f32.mrb[62].mxu1  ;;  %v6285_v8 = vmax.f32 %v4865_v6, 0.0  ;;  %v3226_v21 = vld [vmem:[%s5122_s1 + $0x4] sm:$0x2] }
 0x1b7   : > { %v5314_v38 = vmul.f32 %v2985_v28, %v2696_v49  ;;  %v2712_v55 = vadd.f32 %v5204_v10, %v2632_v34  ;;  %v2698_v0 = vadd.f32 %v5152_v48, %v2618_v16  ;;  %v2634_v29 = vadd.f32 %v1650_v45, %v6283_v52  ;;  %v1652_v17 = vpop.f32.mrb[63].mxu1 }
 0x1b8   : > { %v5320_v19 = vmul.f32 %v3025_v47, %v2697_v36  ;;  %v2713_v61 = vadd.f32 %v5204_v10, %v2633_v15  ;;  %v2699_v42 = vadd.f32 %v5152_v48, %v2619_v30  ;;  %v2635_v49 = vadd.f32 %v1652_v17, %v6285_v8  ;;  %v3144_v15 = vld [vmem:[%s5122_s1 + $0x4] sm:$0x1] }
 0x1b9   : > { %6282 = vst [vmem:[#allocation51_spill] sm:$0xff] %v5314_v38  ;;  %v5326_v31 = vmul.f32 %v2985_v28, %v2712_v55  ;;  %v5328_v34 = vmul.f32 %v3067_v46, %v2698_v0  ;;  %v2714_v27 = vadd.f32 %v5204_v10, %v2634_v29  ;;  %v3145_v6 = vunpack.c.l.bf16 %v3144_v15 }
 0x1ba   : > { %6284 = vst [vmem:[#allocation52_spill] sm:$0xff] %v5320_v19  ;;  %v5331_v16 = vmul.f32 %v3025_v47, %v2713_v61  ;;  %v5333_v1 = vmul.f32 %v3107_v18, %v2699_v42  ;;  %v2715_v59 = vadd.f32 %v5204_v10, %v2635_v49  ;;  %v3227_v30 = vunpack.c.l.bf16 %v3226_v21 }
 0x1bb   : > { %6286 = vst [vmem:[#allocation53_spill] sm:$0xff] %v5326_v31  ;;  %6287 = vst [vmem:[#allocation54_spill] sm:$0xff] %v5328_v34  ;;  %v5336_v36 = vmul.f32 %v3067_v46, %v2714_v27  ;;  %v6292_v45 = vmax.f32 %v4898_v62, 0.0  ;;  %v6293_v0 = vsub.s32 0, %v4399_v7  ;;  %v6294_v29 = vmax.f32 %v4891_v2, 0.0 }
 0x1bc   : > { %6288 = vst [vmem:[#allocation55_spill] sm:$0xff] %v5331_v16  ;;  %6289 = vst [vmem:[#allocation56_spill] sm:$0xff] %v5333_v1  ;;  %v5338_v3 = vmul.f32 %v3107_v18, %v2715_v59  ;;  %v6295_v46 = vsub.s32 1, %v4399_v7  ;;  %v6296_v49 = vmax.f32 %v4901_v54, 0.0  ;;  %v6297_v62 = vmax.f32 %v4911_v13, 0.0 }
 0x1bd   : > { %6290 = vst [vmem:[#allocation57_spill] sm:$0xff] %v5336_v36  ;;  %v3149_v47 = vrot.slane %v3145_v6, %v6293_v0  ;;  %v6298_v15 = vsub.s32 2, %v4399_v7  ;;  %v6299_v0 = vmax.f32 %v4904_v56, 0.0 }
 0x1be   : > { %6291 = vst [vmem:[#allocation58_spill] sm:$0xff] %v5338_v3  ;;  %v3189_v61 = vrot.slane %v3145_v6, %v6295_v46 }
 0x1bf   : > { %v3231_v21 = vrot.slane %v3227_v30, %v6298_v15 }
 0x1ca   : > { %v1709_v28 = vpop.f32.mrb[72].mxu0 }
 0x1cb   : > { %v2588_v55 = vadd.f32 %v1709_v28, %v6292_v45  ;;  %v1711_v52 = vpop.f32.mrb[73].mxu0 }
 0x1cc   : > { %v2589_v17 = vadd.f32 %v1711_v52, %v6294_v29  ;;  %v1713_v18 = vpop.f32.mrb[74].mxu0  ;;  %v1782_v42 = vpop.f32.mrb[72].mxu1  ;;  %v6300_v52 = vld [vmem:[#allocation14_spill] sm:$0xff] }
 0x1cd   : > { %v2668_v8 = vadd.f32 %v5137_v37, %v2588_v55  ;;  %v2604_v27 = vadd.f32 %v1713_v18, %v6296_v49  ;;  %v2590_v59 = vadd.f32 %v1782_v42, %v6297_v62  ;;  %v1715_v28 = vpop.f32.mrb[75].mxu0  ;;  %v1784_v45 = vpop.f32.mrb[73].mxu1  ;;  %v6301_v29 = vmax.f32 %v6300_v52, 0.0  ;;  %v6304_v62 = vld [vmem:[#allocation15_spill] sm:$0xff] }
 0x1ce   : > { %v2669_v2 = vadd.f32 %v5137_v37, %v2589_v17  ;;  %v2605_v6 = vadd.f32 %v1715_v28, %v6299_v0  ;;  %v6302_v55 = vsub.s32 3, %v4399_v7  ;;  %v1786_v18 = vpop.f32.mrb[74].mxu1  ;;  %v6305_v15 = vmax.f32 %v6304_v62, 0.0 }
 0x1cf   : > { %v2591_v46 = vadd.f32 %v1784_v45, %v6301_v29  ;;  %v5364_v49 = vmul.f32 %v3149_v47, %v2668_v8  ;;  %v2684_v13 = vadd.f32 %v5148_v4, %v2604_v27  ;;  %v2670_v42 = vadd.f32 %v5137_v37, %v2590_v59  ;;  %v1788_v17 = vpop.f32.mrb[75].mxu1  ;;  %v6307_v45 = vld [vmem:[#allocation16_spill] sm:$0xff] }
 0x1d0   : > { %v3271_v54 = vrot.slane %v3227_v30, %v6302_v55  ;;  %v2606_v3 = vadd.f32 %v1786_v18, %v6305_v15  ;;  %v5370_v1 = vmul.f32 %v3189_v61, %v2669_v2  ;;  %v2685_v56 = vadd.f32 %v5148_v4, %v2605_v6  ;;  %v6314_v6 = vld [vmem:[#allocation18_spill] sm:$0xff] }
 0x1d1   : > { %6303 = vst [vmem:[#allocation14_spill] sm:$0xff] %v5364_v49  ;;  %v2671_v28 = vadd.f32 %v5137_v37, %v2591_v46  ;;  %v6308_v0 = vmax.f32 %v6307_v45, 0.0  ;;  %v5376_v52 = vmul.f32 %v3149_v47, %v2684_v13  ;;  %v5378_v8 = vmul.f32 %v3231_v21, %v2670_v42  ;;  %v6317_v13 = vld [vmem:[#allocation17_spill] sm:$0xff] }
 0x1d2   : > { %6306 = vst [vmem:[#allocation15_spill] sm:$0xff] %v5370_v1  ;;  %v2686_v27 = vadd.f32 %v5148_v4, %v2606_v3  ;;  %v5381_v59 = vmul.f32 %v3189_v61, %v2685_v56  ;;  %v1719_v55 = vpop.f32.mrb[76].mxu0  ;;  %v6315_v46 = vmax.f32 %v6314_v6, 0.0  ;;  %v6318_v42 = vmax.f32 %v6317_v13, 0.0  ;;  %v6322_v6 = vld [vmem:[#allocation20_spill] sm:$0xff] }
 0x1d3   : > { %v2607_v30 = vadd.f32 %v1788_v17, %v6308_v0  ;;  %6309 = vst [vmem:[#allocation16_spill] sm:$0xff] %v5376_v52  ;;  %6310 = vst [vmem:[#allocation59_spill] sm:$0xff] %v5378_v8  ;;  %v5383_v29 = vmul.f32 %v3271_v54, %v2671_v28  ;;  %v1721_v15 = vpop.f32.mrb[77].mxu0  ;;  %v6319_v28 = vld [vmem:[#allocation19_spill] sm:$0xff] }
 0x1d4   : > { %6311 = vst [vmem:[#allocation60_spill] sm:$0xff] %v5381_v59  ;;  %v5386_v18 = vmul.f32 %v3231_v21, %v2686_v27  ;;  %v2620_v62 = vadd.f32 %v1719_v55, %v6315_v46  ;;  %v2621_v45 = vadd.f32 %v1721_v15, %v6318_v42  ;;  %v1723_v0 = vpop.f32.mrb[78].mxu0  ;;  %v1792_v3 = vpop.f32.mrb[76].mxu1 }
 0x1d5   : > { %6312 = vst [vmem:[#allocation61_spill] sm:$0xff] %v5383_v29  ;;  %v2687_v2 = vadd.f32 %v5148_v4, %v2607_v30  ;;  %v6320_v29 = vmax.f32 %v6319_v28, 0.0  ;;  %v6321_v30 = vmax.f32 %v4965_v53, 0.0  ;;  %v1794_v59 = vpop.f32.mrb[77].mxu1  ;;  %v6327_v53 = vmax.f32 %v4968_v63, 0.0 }
 0x1d6   : > { %6313 = vst [vmem:[#allocation62_spill] sm:$0xff] %v5386_v18  ;;  %v2700_v56 = vadd.f32 %v5152_v48, %v2620_v62  ;;  %v1725_v18 = vpop.f32.mrb[79].mxu0  ;;  %v2701_v55 = vadd.f32 %v5152_v48, %v2621_v45  ;;  %v1796_v42 = vpop.f32.mrb[78].mxu1 }
 0x1d7   : > { %v5390_v17 = vmul.f32 %v3271_v54, %v2687_v2  ;;  %v2636_v8 = vadd.f32 %v1723_v0, %v6320_v29  ;;  %v2622_v27 = vadd.f32 %v1792_v3, %v6321_v30  ;;  %v6323_v2 = vmax.f32 %v6322_v6, 0.0  ;;  %v1798_v3 = vpop.f32.mrb[79].mxu1 }
 0x1d8   : > { %v5404_v1 = vmul.f32 %v3149_v47, %v2700_v56  ;;  %v2638_v0 = vadd.f32 %v1796_v42, %v6327_v53  ;;  %v5410_v45 = vmul.f32 %v3189_v61, %v2701_v55 }
 0x1d9   : > { %6316 = vst [vmem:[#allocation18_spill] sm:$0xff] %v5390_v17  ;;  %v2637_v46 = vadd.f32 %v1725_v18, %v6323_v2  ;;  %v6324_v17 = vld [vmem:[#allocation21_spill] sm:$0xff]  ;;  %v2716_v62 = vadd.f32 %v5204_v10, %v2636_v8  ;;  %v2702_v29 = vadd.f32 %v5152_v48, %v2622_v27 }
 0x1da   : > { %v6325_v13 = vmax.f32 %v6324_v17, 0.0  ;;  %6326 = vst [vmem:[#allocation17_spill] sm:$0xff] %v5404_v1  ;;  %6328 = vst [vmem:[#allocation19_spill] sm:$0xff] %v5410_v45  ;;  %v2718_v27 = vadd.f32 %v5204_v10, %v2638_v0  ;;  %v6339_v0 = vsub.s32 4, %v4399_v7 }
 0x1db   : > { %v2717_v18 = vadd.f32 %v5204_v10, %v2637_v46  ;;  %v5416_v30 = vmul.f32 %v3149_v47, %v2716_v62  ;;  %v5418_v8 = vmul.f32 %v3231_v21, %v2702_v29  ;;  %v6337_v62 = vld [vmem:[#allocation24_spill] sm:$0xff] }
 0x1dc   : > { %v2623_v15 = vadd.f32 %v1794_v59, %v6325_v13  ;;  %v6329_v59 = vld [vmem:[#allocation22_spill] sm:$0xff]  ;;  %v5426_v2 = vmul.f32 %v3231_v21, %v2718_v27  ;;  %v6338_v29 = vmax.f32 %v6337_v62, 0.0  ;;  %v6342_v21 = vsub.s32 5, %v4399_v7 }
 0x1dd   : > { %v6330_v28 = vmax.f32 %v6329_v59, 0.0  ;;  %6331 = vst [vmem:[#allocation20_spill] sm:$0xff] %v5416_v30  ;;  %6332 = vst [vmem:[#allocation21_spill] sm:$0xff] %v5418_v8  ;;  %v5421_v6 = vmul.f32 %v3189_v61, %v2717_v18  ;;  %v3308_v13 = vld [vmem:[%s5122_s1 + $0x4] sm:$0x4] }
 0x1de   : > { %v2703_v17 = vadd.f32 %v5152_v48, %v2623_v15  ;;  %6335 = vst [vmem:[#allocation64_spill] sm:$0xff] %v5426_v2  ;;  %v3390_v15 = vld [vmem:[%s5122_s1 + $0x4] sm:$0x8]  ;;  %v3309_v42 = vunpack.c.l.bf16 %v3308_v13  ;;  %v6343_v13 = vld [vmem:[#allocation25_spill] sm:$0xff]  ;;  %s4111_s1 = sshll.u32 %s4215_s21, 4  ;;  %s4112_s1 = int_to_ptr.vmem [resolvable:$false] %s4111_s1 }
 0x1df   : > { %v2639_v56 = vadd.f32 %v1798_v3, %v6330_v28  ;;  %6333 = vst [vmem:[#allocation22_spill] sm:$0xff] %v5421_v6  ;;  %v3391_v53 = vunpack.c.l.bf16 %v3390_v15  ;;  %v6344_v15 = vmax.f32 %v6343_v13, 0.0  ;;  %s4113_s17 = scalar_lea.vmem %s4112_s1, 1024  ;;  %p4114_p13 = scmp.lt.s32.totalorder %s5995_s11, %s4112_s1 }
 0x1e0   : > { %v5423_v63 = vmul.f32 %v3271_v54, %v2703_v17  ;;  %v3313_v61 = vrot.slane %v3309_v42, %v6339_v0  ;;  %v6340_v17 = vld [vmem:[#allocation23_spill] sm:$0xff]  ;;  %p4115_p0 = scmp.lt.s32.totalorder %s4113_s17, %s4107_s14 }
 0x1e1   : > { %v2719_v55 = vadd.f32 %v5204_v10, %v2639_v56  ;;  %v6341_v59 = vmax.f32 %v6340_v17, 0.0  ;;  %v3353_v56 = vrot.slane %v3309_v42, %v6342_v21  ;;  %v6348_v17 = vld [vmem:[#allocation26_spill] sm:$0xff]  ;;  %v6350_v21 = vld [vmem:[#allocation27_spill] sm:$0xff] }
 0x1e2   : > { %6334 = vst [vmem:[#allocation63_spill] sm:$0xff] %v5423_v63  ;;  %v6345_v63 = vld [vmem:[#allocation28_spill] sm:$0xff]  ;;  %v6351_v6 = vmax.f32 %v6350_v21, 0.0  ;;  %p4116_p1 = por %p4115_p0, %p4114_p13 }
 0x1e3   : > { %v5428_v46 = vmul.f32 %v3271_v54, %v2719_v55  ;;  %v6346_v62 = vmax.f32 %v6345_v63, 0.0 }
 0x1e4   : > { %p4117_p4 = pnand %p4116_p1, %p4110_p11 }
 0x1e5   : > { %6336 = vst [vmem:[#allocation65_spill] sm:$0xff] %v5428_v46 }
 0x1ea   : > { %v1855_v47 = vpop.f32.mrb[88].mxu0 }
 0x1eb   : > { %v2592_v3 = vadd.f32 %v1855_v47, %v6338_v29  ;;  %v1857_v18 = vpop.f32.mrb[89].mxu0  ;;  %v6347_v29 = vsub.s32 6, %v4399_v7 }
 0x1ec   : > { %v2593_v28 = vadd.f32 %v1857_v18, %v6341_v59  ;;  %v1859_v54 = vpop.f32.mrb[90].mxu0  ;;  %v1928_v27 = vpop.f32.mrb[88].mxu1  ;;  %v6349_v59 = vmax.f32 %v6348_v17, 0.0 }
 0x1ed   : > { %v2672_v55 = vadd.f32 %v5137_v37, %v2592_v3  ;;  %v2608_v46 = vadd.f32 %v1859_v54, %v6344_v15  ;;  %v2594_v47 = vadd.f32 %v1928_v27, %v6346_v62  ;;  %v3395_v0 = vrot.slane %v3391_v53, %v6347_v29  ;;  %v1861_v2 = vpop.f32.mrb[91].mxu0  ;;  %v1930_v8 = vpop.f32.mrb[89].mxu1  ;;  %v6354_v62 = vld [vmem:[#allocation29_spill] sm:$0xff] }
 0x1ee   : > { %v2673_v18 = vadd.f32 %v5137_v37, %v2593_v28  ;;  %v2609_v42 = vadd.f32 %v1861_v2, %v6349_v59  ;;  %v2595_v45 = vadd.f32 %v1930_v8, %v6351_v6  ;;  %v6352_v3 = vsub.s32 7, %v4399_v7  ;;  %v1932_v54 = vpop.f32.mrb[90].mxu1  ;;  %v6357_v6 = vld [vmem:[#allocation30_spill] sm:$0xff] }
 0x1ef   : > { %v5454_v15 = vmul.f32 %v3313_v61, %v2672_v55  ;;  %v2688_v63 = vadd.f32 %v5148_v4, %v2608_v46  ;;  %v2674_v27 = vadd.f32 %v5137_v37, %v2594_v47  ;;  %v6355_v29 = vmax.f32 %v6354_v62, 0.0  ;;  %v1934_v28 = vpop.f32.mrb[91].mxu1 }
 0x1f0   : > { %v3435_v13 = vrot.slane %v3391_v53, %v6352_v3  ;;  %v5460_v1 = vmul.f32 %v3353_v56, %v2673_v18  ;;  %v2689_v2 = vadd.f32 %v5148_v4, %v2609_v42  ;;  %v2675_v8 = vadd.f32 %v5137_v37, %v2595_v45  ;;  %v6364_v42 = vld [vmem:[#allocation32_spill] sm:$0xff] }
 0x1f1   : > { %6353 = vst [vmem:[#allocation24_spill] sm:$0xff] %v5454_v15  ;;  %v2610_v30 = vadd.f32 %v1932_v54, %v6355_v29  ;;  %v6358_v7 = vmax.f32 %v6357_v6, 0.0  ;;  %v5466_v17 = vmul.f32 %v3313_v61, %v2688_v63  ;;  %v5468_v55 = vmul.f32 %v3395_v0, %v2674_v27  ;;  %v6367_v63 = vld [vmem:[#allocation31_spill] sm:$0xff] }
 0x1f2   : > { %6356 = vst [vmem:[#allocation23_spill] sm:$0xff] %v5460_v1  ;;  %v5471_v47 = vmul.f32 %v3353_v56, %v2689_v2  ;;  %v5473_v59 = vmul.f32 %v3435_v13, %v2675_v8  ;;  %v1865_v21 = vpop.f32.mrb[92].mxu0  ;;  %v6365_v37 = vmax.f32 %v6364_v42, 0.0  ;;  %v6368_v27 = vmax.f32 %v6367_v63, 0.0  ;;  %v6369_v8 = vld [vmem:[#allocation33_spill] sm:$0xff]  ;;  %v6373_v42 = vld [vmem:[#allocation34_spill] sm:$0xff] }
 0x1f3   : > { %v2611_v53 = vadd.f32 %v1934_v28, %v6358_v7  ;;  %6359 = vst [vmem:[#allocation25_spill] sm:$0xff] %v5466_v17  ;;  %6360 = vst [vmem:[#allocation28_spill] sm:$0xff] %v5468_v55  ;;  %v2690_v46 = vadd.f32 %v5148_v4, %v2610_v30  ;;  %v1867_v54 = vpop.f32.mrb[93].mxu0  ;;  %v6370_v6 = vmax.f32 %v6369_v8, 0.0  ;;  %v6378_v8 = vld [vmem:[#allocation37_spill] sm:$0xff] }
 0x1f4   : > { %6361 = vst [vmem:[#allocation26_spill] sm:$0xff] %v5471_v47  ;;  %6362 = vst [vmem:[#allocation27_spill] sm:$0xff] %v5473_v59  ;;  %v2624_v45 = vadd.f32 %v1865_v21, %v6365_v37  ;;  %v2625_v29 = vadd.f32 %v1867_v54, %v6368_v27  ;;  %v1869_v28 = vpop.f32.mrb[94].mxu0  ;;  %v1938_v30 = vpop.f32.mrb[92].mxu1 }
 0x1f5   : > { %v2691_v18 = vadd.f32 %v5148_v4, %v2611_v53  ;;  %v5476_v3 = vmul.f32 %v3395_v0, %v2690_v46  ;;  %v2640_v7 = vadd.f32 %v1869_v28, %v6370_v6  ;;  %v6371_v4 = vld [vmem:[#allocation36_spill] sm:$0xff]  ;;  %v1871_v59 = vpop.f32.mrb[95].mxu0  ;;  %v6379_v6 = vmax.f32 %v6378_v8, 0.0 }
 0x1f6   : > { %v2704_v2 = vadd.f32 %v5152_v48, %v2624_v45  ;;  %v6372_v53 = vmax.f32 %v6371_v4, 0.0  ;;  %v2705_v21 = vadd.f32 %v5152_v48, %v2625_v29 }
 0x1f7   : > { %6363 = vst [vmem:[#allocation29_spill] sm:$0xff] %v5476_v3  ;;  %v5480_v62 = vmul.f32 %v3435_v13, %v2691_v18  ;;  %v1940_v3 = vpop.f32.mrb[93].mxu1  ;;  %v6374_v18 = vmax.f32 %v6373_v42, 0.0  ;;  %v2720_v45 = vadd.f32 %v5204_v10, %v2640_v7  ;;  %v6381_v42 = vld [vmem:[#allocation38_spill] sm:$0xff] }
 0x1f8   : > { %v2626_v46 = vadd.f32 %v1938_v30, %v6372_v53  ;;  %v1942_v27 = vpop.f32.mrb[94].mxu1  ;;  %v5494_v55 = vmul.f32 %v3313_v61, %v2704_v2  ;;  %v5500_v53 = vmul.f32 %v3353_v56, %v2705_v21 }
 0x1f9   : > { %6366 = vst [vmem:[#allocation30_spill] sm:$0xff] %v5480_v62  ;;  %v2641_v37 = vadd.f32 %v1871_v59, %v6374_v18  ;;  %v6375_v62 = vld [vmem:[#allocation35_spill] sm:$0xff]  ;;  %v2642_v30 = vadd.f32 %v1942_v27, %v6379_v6  ;;  %v1944_v4 = vpop.f32.mrb[95].mxu1  ;;  %v5506_v18 = vmul.f32 %v3313_v61, %v2720_v45 }
 0x1fa   : > { %v6376_v63 = vmax.f32 %v6375_v62, 0.0  ;;  %6377 = vst [vmem:[#allocation32_spill] sm:$0xff] %v5494_v55  ;;  %v2706_v28 = vadd.f32 %v5152_v48, %v2626_v46  ;;  %6380 = vst [vmem:[#allocation31_spill] sm:$0xff] %v5500_v53  ;;  %v6382_v62 = vmax.f32 %v6381_v42, 0.0 }
 0x1fb   : > { %v2721_v29 = vadd.f32 %v5204_v10, %v2641_v37  ;;  %6383 = vst [vmem:[#allocation33_spill] sm:$0xff] %v5506_v18  ;;  %v2722_v7 = vadd.f32 %v5204_v10, %v2642_v30 }
 0x1fc   : > { %v2627_v54 = vadd.f32 %v1940_v3, %v6376_v63  ;;  %v2643_v3 = vadd.f32 %v1944_v4, %v6382_v62  ;;  %v5508_v2 = vmul.f32 %v3395_v0, %v2706_v28 }
 0x1fd   : > { %v5511_v46 = vmul.f32 %v3353_v56, %v2721_v29  ;;  %v5516_v27 = vmul.f32 %v3395_v0, %v2722_v7 }
 0x1fe   : > { %v2707_v59 = vadd.f32 %v5152_v48, %v2627_v54  ;;  %6384 = vst [vmem:[#allocation36_spill] sm:$0xff] %v5508_v2  ;;  %v2723_v21 = vadd.f32 %v5204_v10, %v2643_v3 }
 0x1ff   : > { %6385 = vst [vmem:[#allocation34_spill] sm:$0xff] %v5511_v46  ;;  %6387 = vst [vmem:[#allocation37_spill] sm:$0xff] %v5516_v27 }
 0x200   : > { %v5513_v63 = vmul.f32 %v3435_v13, %v2707_v59  ;;  %v5518_v37 = vmul.f32 %v3435_v13, %v2723_v21 }
 0x202   : > { %6386 = vst [vmem:[#allocation35_spill] sm:$0xff] %v5513_v63  ;;  %6388 = vst [vmem:[#allocation38_spill] sm:$0xff] %v5518_v37 }
 0x223   : > { %v5520_v48 = vpop.f32.mrb[32].mxu0 }
 0x224   : > { %v5522_v54 = vpop.f32.mrb[33].mxu0 }
 0x225   : > { %v2724_v61 = vmax.f32 %v5520_v48, %v5522_v54  ;;  %v5526_v45 = vpop.f32.mrb[34].mxu0  ;;  %v5528_v28 = vpop.f32.mrb[32].mxu1 }
 0x226   : > { %v5530_v56 = vpop.f32.mrb[35].mxu0  ;;  %v5532_v8 = vpop.f32.mrb[33].mxu1 }
 0x227   : > { %v2728_v10 = vmax.f32 %v2724_v61, %v5528_v28  ;;  %v2725_v0 = vmax.f32 %v5526_v45, %v5530_v56  ;;  %v5537_v13 = vpop.f32.mrb[34].mxu1 }
 0x228   : > { %v5539_v6 = vpop.f32.mrb[35].mxu1 }
 0x229   : > { %v2732_v30 = vmax.f32 %v2728_v10, %v5532_v8  ;;  %v2729_v4 = vmax.f32 %v2725_v0, %v5537_v13 }
 0x22b   : > { %v2733_v29 = vmax.f32 %v2729_v4, %v5539_v6  ;;  %v5544_v59 = vpop.f32.mrb[36].mxu0 }
 0x22c   : > { %v5546_v42 = vpop.f32.mrb[37].mxu0 }
 0x22d   : > { %v2726_v62 = vmax.f32 %v5544_v59, %v5546_v42  ;;  %v5550_v3 = vpop.f32.mrb[38].mxu0  ;;  %v5552_v7 = vpop.f32.mrb[36].mxu1 }
 0x22e   : > { %v5554_v21 = vpop.f32.mrb[39].mxu0  ;;  %v5556_v61 = vpop.f32.mrb[37].mxu1 }
 0x22f   : > { %v2730_v10 = vmax.f32 %v2726_v62, %v5552_v7  ;;  %v2727_v0 = vmax.f32 %v5550_v3, %v5554_v21  ;;  %v5561_v4 = vpop.f32.mrb[38].mxu1 }
 0x230   : > { %v5563_v37 = vpop.f32.mrb[39].mxu1 }
 0x231   : > { %v2734_v63 = vmax.f32 %v2730_v10, %v5556_v61  ;;  %v2731_v27 = vmax.f32 %v2727_v0, %v5561_v4 }
 0x233   : > { %v2735_v2 = vmax.f32 %v2731_v27, %v5563_v37  ;;  %v5568_v46 = vpop.f32.mrb[48].mxu0 }
 0x234   : > { %v2736_v53 = vmax.f32 %v2732_v30, %v5568_v46  ;;  %v5571_v47 = vpop.f32.mrb[49].mxu0 }
 0x235   : > { %v5573_v62 = vpop.f32.mrb[50].mxu0  ;;  %v5575_v1 = vpop.f32.mrb[48].mxu1 }
 0x236   : > { %v2740_v18 = vmax.f32 %v2736_v53, %v5571_v47  ;;  %v2737_v55 = vmax.f32 %v2733_v29, %v5573_v62  ;;  %v5579_v17 = vpop.f32.mrb[51].mxu0  ;;  %v5581_v10 = vpop.f32.mrb[49].mxu1 }
 0x237   : > { %6389 = vst [vmem:[#allocation66_spill] sm:$0xff] %v5581_v10  ;;  %v5583_v0 = vpop.f32.mrb[50].mxu1 }
 0x238   : > { %v2744_v27 = vmax.f32 %v2740_v18, %v5575_v1  ;;  %v2741_v30 = vmax.f32 %v2737_v55, %v5579_v17  ;;  %v5587_v15 = vpop.f32.mrb[51].mxu1 }
 0x239   : > { %6390 = vst [vmem:[#allocation67_spill] sm:$0xff] %v5587_v15 }
 0x23a   : > { %v2748_v52 = vmax.f32 %v2744_v27, %v5581_v10  ;;  %v2745_v49 = vmax.f32 %v2741_v30, %v5583_v0 }
 0x23b   : > { %v5591_v50 = vpop.f32.mrb[52].mxu0 }
 0x23c   : > { %v2749_v53 = vmax.f32 %v2745_v49, %v5587_v15  ;;  %v2738_v29 = vmax.f32 %v2734_v63, %v5591_v50  ;;  %v5595_v40 = vpop.f32.mrb[53].mxu0 }
 0x23d   : > { %v5597_v36 = vpop.f32.mrb[54].mxu0  ;;  %v5599_v34 = vpop.f32.mrb[52].mxu1 }
 0x23e   : > { %v2742_v55 = vmax.f32 %v2738_v29, %v5595_v40  ;;  %v2739_v18 = vmax.f32 %v2735_v2, %v5597_v36  ;;  %v5603_v14 = vpop.f32.mrb[55].mxu0  ;;  %v5605_v27 = vpop.f32.mrb[53].mxu1 }
 0x23f   : > { %6391 = vst [vmem:[#allocation68_spill] sm:$0xff] %v5605_v27  ;;  %v5607_v30 = vpop.f32.mrb[54].mxu1 }
 0x240   : > { %6392 = vst [vmem:[#allocation69_spill] sm:$0xff] %v5607_v30  ;;  %v2746_v49 = vmax.f32 %v2742_v55, %v5599_v34  ;;  %v2743_v63 = vmax.f32 %v2739_v18, %v5603_v14  ;;  %v5611_v51 = vpop.f32.mrb[55].mxu1 }
 0x241   : > { %6393 = vst [vmem:[#allocation70_spill] sm:$0xff] %v5611_v51 }
 0x242   : > { %v2750_v16 = vmax.f32 %v2746_v49, %v5605_v27  ;;  %v2747_v19 = vmax.f32 %v2743_v63, %v5607_v30 }
 0x243   : > { %v5615_v39 = vpop.f32.mrb[64].mxu0 }
 0x244   : > { %6394 = vst [vmem:[#allocation71_spill] sm:$0xff] %v5615_v39  ;;  %v2751_v2 = vmax.f32 %v2747_v19, %v5611_v51  ;;  %v2752_v29 = vmax.f32 %v2748_v52, %v5615_v39  ;;  %v5619_v12 = vpop.f32.mrb[65].mxu0 }
 0x245   : > { %6395 = vst [vmem:[#allocation72_spill] sm:$0xff] %v5619_v12  ;;  %v5621_v15 = vpop.f32.mrb[66].mxu0  ;;  %v5623_v31 = vpop.f32.mrb[64].mxu1 }
 0x246   : > { %6396 = vst [vmem:[#allocation73_spill] sm:$0xff] %v5621_v15  ;;  %6397 = vst [vmem:[#allocation74_spill] sm:$0xff] %v5623_v31  ;;  %v2756_v55 = vmax.f32 %v2752_v29, %v5619_v12  ;;  %v2753_v18 = vmax.f32 %v2749_v53, %v5621_v15  ;;  %v5627_v10 = vpop.f32.mrb[67].mxu0  ;;  %v5629_v49 = vpop.f32.mrb[65].mxu1 }
 0x247   : > { %6398 = vst [vmem:[#allocation75_spill] sm:$0xff] %v5627_v10  ;;  %6399 = vst [vmem:[#allocation76_spill] sm:$0xff] %v5629_v49  ;;  %v5631_v63 = vpop.f32.mrb[66].mxu1 }
 0x248   : > { %6400 = vst [vmem:[#allocation77_spill] sm:$0xff] %v5631_v63  ;;  %v2760_v19 = vmax.f32 %v2756_v55, %v5623_v31  ;;  %v2757_v52 = vmax.f32 %v2753_v18, %v5627_v10  ;;  %v5635_v39 = vpop.f32.mrb[67].mxu1 }
 0x249   : > { %6401 = vst [vmem:[#allocation78_spill] sm:$0xff] %v5635_v39 }
 0x24a   : > { %v2764_v51 = vmax.f32 %v2760_v19, %v5629_v49  ;;  %v2761_v27 = vmax.f32 %v2757_v52, %v5631_v63 }
 0x24b   : > { %v5639_v38 = vpop.f32.mrb[68].mxu0 }
 0x24c   : > { %6402 = vst [vmem:[#allocation79_spill] sm:$0xff] %v5639_v38  ;;  %v2765_v53 = vmax.f32 %v2761_v27, %v5635_v39  ;;  %v2754_v29 = vmax.f32 %v2750_v16, %v5639_v38  ;;  %v5643_v12 = vpop.f32.mrb[69].mxu0 }
 0x24d   : > { %6403 = vst [vmem:[#allocation80_spill] sm:$0xff] %v5643_v12  ;;  %v5645_v15 = vpop.f32.mrb[70].mxu0  ;;  %v5647_v32 = vpop.f32.mrb[68].mxu1 }
 0x24e   : > { %6404 = vst [vmem:[#allocation81_spill] sm:$0xff] %v5645_v15  ;;  %6405 = vst [vmem:[#allocation82_spill] sm:$0xff] %v5647_v32  ;;  %v2758_v55 = vmax.f32 %v2754_v29, %v5643_v12  ;;  %v2755_v18 = vmax.f32 %v2751_v2, %v5645_v15  ;;  %v5651_v31 = vpop.f32.mrb[71].mxu0  ;;  %v5653_v19 = vpop.f32.mrb[69].mxu1 }
 0x24f   : > { %6406 = vst [vmem:[#allocation83_spill] sm:$0xff] %v5651_v31  ;;  %6407 = vst [vmem:[#allocation84_spill] sm:$0xff] %v5653_v19  ;;  %v5655_v52 = vpop.f32.mrb[70].mxu1 }
 0x250   : > { %6408 = vst [vmem:[#allocation85_spill] sm:$0xff] %v5655_v52  ;;  %v2762_v27 = vmax.f32 %v2758_v55, %v5647_v32  ;;  %v2759_v16 = vmax.f32 %v2755_v18, %v5651_v31  ;;  %v5659_v39 = vpop.f32.mrb[71].mxu1 }
 0x251   : > { %6409 = vst [vmem:[#allocation86_spill] sm:$0xff] %v5659_v39 }
 0x252   : > { %v2766_v49 = vmax.f32 %v2762_v27, %v5653_v19  ;;  %v2763_v63 = vmax.f32 %v2759_v16, %v5655_v52 }
 0x253   : > { %v5663_v10 = vpop.f32.mrb[80].mxu0 }
 0x254   : > { %6410 = vst [vmem:[#allocation87_spill] sm:$0xff] %v5663_v10  ;;  %v2767_v2 = vmax.f32 %v2763_v63, %v5659_v39  ;;  %v2768_v29 = vmax.f32 %v2764_v51, %v5663_v10  ;;  %v5667_v12 = vpop.f32.mrb[81].mxu0 }
 0x255   : > { %6411 = vst [vmem:[#allocation88_spill] sm:$0xff] %v5667_v12  ;;  %v5669_v15 = vpop.f32.mrb[82].mxu0  ;;  %v5671_v38 = vpop.f32.mrb[80].mxu1 }
 0x256   : > { %6412 = vst [vmem:[#allocation89_spill] sm:$0xff] %v5669_v15  ;;  %6413 = vst [vmem:[#allocation90_spill] sm:$0xff] %v5671_v38  ;;  %v2772_v55 = vmax.f32 %v2768_v29, %v5667_v12  ;;  %v2769_v18 = vmax.f32 %v2765_v53, %v5669_v15  ;;  %v5675_v32 = vpop.f32.mrb[83].mxu0  ;;  %v5677_v27 = vpop.f32.mrb[81].mxu1 }
 0x257   : > { %6414 = vst [vmem:[#allocation91_spill] sm:$0xff] %v5675_v32  ;;  %6415 = vst [vmem:[#allocation92_spill] sm:$0xff] %v5677_v27  ;;  %v5679_v16 = vpop.f32.mrb[82].mxu1 }
 0x258   : > { %6416 = vst [vmem:[#allocation93_spill] sm:$0xff] %v5679_v16  ;;  %v2776_v63 = vmax.f32 %v2772_v55, %v5671_v38  ;;  %v2773_v51 = vmax.f32 %v2769_v18, %v5675_v32  ;;  %v5683_v10 = vpop.f32.mrb[83].mxu1 }
 0x259   : > { %6417 = vst [vmem:[#allocation94_spill] sm:$0xff] %v5683_v10 }
 0x25a   : > { %v2780_v39 = vmax.f32 %v2776_v63, %v5677_v27  ;;  %v2777_v19 = vmax.f32 %v2773_v51, %v5679_v16 }
 0x25b   : > { %v5687_v52 = vpop.f32.mrb[84].mxu0 }
 0x25c   : > { %6418 = vst [vmem:[#allocation95_spill] sm:$0xff] %v5687_v52  ;;  %v2781_v53 = vmax.f32 %v2777_v19, %v5683_v10  ;;  %v2770_v29 = vmax.f32 %v2766_v49, %v5687_v52  ;;  %v5691_v12 = vpop.f32.mrb[85].mxu0  ;;  %v6427_v52 = vld [vmem:[#allocation40_spill] sm:$0xff] }
 0x25d   : > { %6419 = vst [vmem:[#allocation96_spill] sm:$0xff] %v5691_v12  ;;  %v5693_v15 = vpop.f32.mrb[86].mxu0  ;;  %v5695_v31 = vpop.f32.mrb[84].mxu1 }
 0x25e   : > { %6420 = vst [vmem:[#allocation97_spill] sm:$0xff] %v5693_v15  ;;  %6421 = vst [vmem:[#allocation98_spill] sm:$0xff] %v5695_v31  ;;  %v2774_v55 = vmax.f32 %v2770_v29, %v5691_v12  ;;  %v2771_v18 = vmax.f32 %v2767_v2, %v5693_v15  ;;  %v5699_v38 = vpop.f32.mrb[87].mxu0  ;;  %v5701_v63 = vpop.f32.mrb[85].mxu1  ;;  %v6426_v2 = vld [vmem:[#allocation41_spill] sm:$0xff] }
 0x25f   : > { %6422 = vst [vmem:[#allocation99_spill] sm:$0xff] %v5699_v38  ;;  %6423 = vst [vmem:[#allocation100_spill] sm:$0xff] %v5701_v63  ;;  %v5703_v51 = vpop.f32.mrb[86].mxu1 }
 0x260   : > { %6424 = vst [vmem:[#allocation101_spill] sm:$0xff] %v5703_v51  ;;  %v2778_v19 = vmax.f32 %v2774_v55, %v5695_v31  ;;  %v2775_v49 = vmax.f32 %v2771_v18, %v5699_v38  ;;  %v5707_v10 = vpop.f32.mrb[87].mxu1  ;;  %v6428_v18 = vld [vmem:[#allocation42_spill] sm:$0xff] }
 0x261   : > { %6425 = vst [vmem:[#allocation102_spill] sm:$0xff] %v5707_v10 }
 0x262   : > { %v2782_v27 = vmax.f32 %v2778_v19, %v5701_v63  ;;  %v2779_v16 = vmax.f32 %v2775_v49, %v5703_v51  ;;  %v6429_v49 = vld [vmem:[#allocation39_spill] sm:$0xff] }
 0x263   : > { %v3772_v32 = vpop.f32.mrb[96].mxu0 }
 0x264   : > { %v2783_v29 = vmax.f32 %v2779_v16, %v5707_v10  ;;  %v5713_v12 = vadd.f32 %v3772_v32, %v6426_v2  ;;  %v2501_v15 = vpop.f32.mrb[97].mxu0 }
 0x265   : > { %v5716_v9 = vadd.f32 %v2501_v15, %v6427_v52  ;;  %v3773_v30 = vpop.f32.mrb[98].mxu0 }
 0x266   : > { %v2786_v55 = vadd.f32 %v2782_v27, %v5713_v12  ;;  %v5720_v31 = vadd.f32 %v3773_v30, %v6428_v18  ;;  %v2504_v38 = vpop.f32.mrb[99].mxu0  ;;  %v2794_v19 = vadd.f32 %v5713_v12, %v5544_v59  ;;  %v2836_v16 = vadd.f32 %v5713_v12, %v5546_v42 }
 0x267   : > { %v2784_v32 = vadd.f32 %v2780_v39, %v5716_v9  ;;  %v5728_v2 = vadd.f32 %v2504_v38, %v6429_v49  ;;  %v2792_v15 = vadd.f32 %v5716_v9, %v5520_v48  ;;  %v2834_v52 = vadd.f32 %v5716_v9, %v5522_v54 }
 0x268   : > { %v5734_v30 = vmax.f32 %v2786_v55, 0.0  ;;  %v2787_v27 = vadd.f32 %v2783_v29, %v5720_v31  ;;  %v2795_v59 = vadd.f32 %v5720_v31, %v5550_v3  ;;  %v2798_v18 = vmax.f32 %v2794_v19, 0.0 }
 0x269   : > { %v5739_v42 = vmax.f32 %v2784_v32, 0.0  ;;  %v2785_v39 = vadd.f32 %v2781_v53, %v5728_v2  ;;  %v2793_v38 = vadd.f32 %v5728_v2, %v5526_v45  ;;  %v2796_v49 = vmax.f32 %v2792_v15, 0.0 }
 0x26a   : > { %v5744_v48 = vmax.f32 %v2787_v27, 0.0  ;;  %v2799_v10 = vmax.f32 %v2795_v59, 0.0  ;;  %v2802_v54 = vsub.f32 %v2798_v18, %v5734_v30  ;;  %v2835_v29 = vadd.f32 %v5728_v2, %v5530_v56 }
 0x26b   : > { %v5749_v55 = vmax.f32 %v2785_v39, 0.0  ;;  %v2797_v3 = vmax.f32 %v2793_v38, 0.0  ;;  %v2800_v19 = vsub.f32 %v2796_v49, %v5739_v42  ;;  %v2837_v53 = vadd.f32 %v5720_v31, %v5554_v21 }
 0x26c   : > { %v2803_v32 = vsub.f32 %v2799_v10, %v5744_v48  ;;  %v2808_v45 = vmul.f32 1.442695, %v2802_v54  ;;  %v2838_v15 = vmax.f32 %v2834_v52, 0.0  ;;  %v2839_v27 = vmax.f32 %v2835_v29, 0.0 }
 0x26d   : > { %v2801_v59 = vsub.f32 %v2797_v3, %v5749_v55  ;;  %v2804_v63 = vmul.f32 1.442695, %v2800_v19  ;;  %v2840_v18 = vmax.f32 %v2836_v16, 0.0  ;;  %v2841_v51 = vmax.f32 %v2837_v53, 0.0 }
 0x26e   : > { %3943 = vpow2.f32 %v2808_v45  ;;  %v2810_v56 = vmul.f32 1.442695, %v2803_v32  ;;  %v2842_v39 = vsub.f32 %v2838_v15, %v5739_v42  ;;  %v2843_v38 = vsub.f32 %v2839_v27, %v5749_v55 }
 0x26f   : > { %3945 = vpow2.f32 %v2804_v63  ;;  %v2806_v49 = vmul.f32 1.442695, %v2801_v59  ;;  %v2844_v21 = vsub.f32 %v2840_v18, %v5734_v30  ;;  %v2845_v10 = vsub.f32 %v2841_v51, %v5744_v48 }
 0x270   : > { %3947 = vpow2.f32 %v2810_v56  ;;  %v2846_v52 = vmul.f32 1.442695, %v2842_v39  ;;  %v2848_v54 = vmul.f32 1.442695, %v2843_v38  ;;  %v2874_v29 = vadd.f32 %v5716_v9, %v5528_v28 }
 0x271   : > { %3949 = vpow2.f32 %v2806_v49  ;;  %v2850_v16 = vmul.f32 1.442695, %v2844_v21  ;;  %v2852_v3 = vmul.f32 1.442695, %v2845_v10  ;;  %v2875_v19 = vadd.f32 %v5728_v2, %v5537_v13 }
 0x272   : > { %3951 = vpow2.f32 %v2846_v52  ;;  %v2876_v63 = vadd.f32 %v5713_v12, %v5552_v7  ;;  %v2877_v53 = vadd.f32 %v5720_v31, %v5561_v4  ;;  %v2878_v51 = vmax.f32 %v2874_v29, 0.0 }
 0x273   : > { %3953 = vpow2.f32 %v2848_v54  ;;  %v2879_v32 = vmax.f32 %v2875_v19, 0.0  ;;  %v2916_v45 = vadd.f32 %v5716_v9, %v5532_v8  ;;  %v2917_v28 = vadd.f32 %v5728_v2, %v5539_v6 }
 0x274   : > { %3955 = vpow2.f32 %v2850_v16  ;;  %v2880_v15 = vmax.f32 %v2876_v63, 0.0  ;;  %v2881_v27 = vmax.f32 %v2877_v53, 0.0  ;;  %v2882_v13 = vsub.f32 %v2878_v51, %v5739_v42 }
 0x275   : > { %3957 = vpow2.f32 %v2852_v3  ;;  %v2883_v7 = vsub.f32 %v2879_v32, %v5749_v55  ;;  %v2918_v4 = vadd.f32 %v5713_v12, %v5556_v61  ;;  %v2919_v59 = vadd.f32 %v5720_v31, %v5563_v37 }
 0x276   : > { %v2884_v18 = vsub.f32 %v2880_v15, %v5734_v30  ;;  %v2885_v8 = vsub.f32 %v2881_v27, %v5744_v48  ;;  %v2886_v56 = vmul.f32 1.442695, %v2882_v13  ;;  %v2920_v6 = vmax.f32 %v2916_v45, 0.0 }
 0x277   : > { %v2888_v39 = vmul.f32 1.442695, %v2883_v7  ;;  %v2921_v38 = vmax.f32 %v2917_v28, 0.0  ;;  %v2922_v49 = vmax.f32 %v2918_v4, 0.0  ;;  %v2923_v21 = vmax.f32 %v2919_v59, 0.0 }
 0x278   : > { %v3944_v10 = vpop.eup %3943  ;;  %3959 = vpow2.f32 %v2886_v56  ;;  %v2890_v52 = vmul.f32 1.442695, %v2884_v18  ;;  %v2892_v54 = vmul.f32 1.442695, %v2885_v8  ;;  %v2924_v29 = vsub.f32 %v2920_v6, %v5739_v42 }
 0x279   : > { %v3946_v61 = vpop.eup %3945  ;;  %v2828_v16 = vmul.f32 %v3944_v10, %v5224_v41  ;;  %3961 = vpow2.f32 %v2888_v39  ;;  %v2925_v37 = vsub.f32 %v2921_v38, %v5749_v55  ;;  %v2926_v3 = vsub.f32 %v2922_v49, %v5734_v30 }
 0x27a   : > { %v3948_v19 = vpop.eup %3947  ;;  %v2826_v63 = vmul.f32 %v3946_v61, %v5181_v11  ;;  %3963 = vpow2.f32 %v2890_v52  ;;  %v2927_v53 = vsub.f32 %v2923_v21, %v5744_v48  ;;  %v2928_v51 = vmul.f32 1.442695, %v2924_v29 }
 0x27b   : > { %v3950_v32 = vpop.eup %3949  ;;  %v2829_v45 = vmul.f32 %v3948_v19, %v5235_v43  ;;  %3965 = vpow2.f32 %v2892_v54  ;;  %v2930_v28 = vmul.f32 1.442695, %v2925_v37  ;;  %v2932_v15 = vmul.f32 1.442695, %v2926_v3 }
 0x27c   : > { %v3952_v27 = vpop.eup %3951  ;;  %v2827_v41 = vmul.f32 %v3950_v32, %v5193_v60  ;;  %3967 = vpow2.f32 %v2928_v51  ;;  %v2934_v13 = vmul.f32 1.442695, %v2927_v53  ;;  %v2956_v7 = vadd.f32 %v5716_v9, %v5568_v46 }
 0x27d   : > { %v3954_v4 = vpop.eup %3953  ;;  %v2854_v11 = vadd.f32 %v3952_v27, %v3946_v61  ;;  %v2866_v59 = vmul.f32 %v3952_v27, %v5188_v22  ;;  %3969 = vpow2.f32 %v2930_v28  ;;  %v2957_v18 = vadd.f32 %v5728_v2, %v5573_v62 }
 0x27e   : > { %v3956_v43 = vpop.eup %3955  ;;  %v2855_v8 = vadd.f32 %v3954_v4, %v3950_v32  ;;  %v2867_v56 = vmul.f32 %v3954_v4, %v5198_v5  ;;  %3971 = vpow2.f32 %v2932_v15  ;;  %v2958_v60 = vadd.f32 %v5713_v12, %v5591_v50 }
 0x27f   : > { %v3958_v6 = vpop.eup %3957  ;;  %v2856_v39 = vadd.f32 %v3956_v43, %v3944_v10  ;;  %v2868_v46 = vmul.f32 %v3956_v43, %v5226_v35  ;;  %v2870_v38 = vadd.f32 %v2866_v59, %v2826_v63  ;;  %3973 = vpow2.f32 %v2934_v13 }
 0x280   : > { %v2857_v49 = vadd.f32 %v3958_v6, %v3948_v19  ;;  %v2869_v22 = vmul.f32 %v3958_v6, %v5239_v58  ;;  %v2871_v21 = vadd.f32 %v2867_v56, %v2827_v41  ;;  %v2959_v62 = vadd.f32 %v5720_v31, %v5597_v36 }
 0x281   : > { %v2872_v52 = vadd.f32 %v2868_v46, %v2828_v16  ;;  %v2960_v54 = vmax.f32 %v2956_v7, 0.0  ;;  %v2961_v5 = vmax.f32 %v2957_v18, 0.0  ;;  %v2962_v29 = vmax.f32 %v2958_v60, 0.0 }
 0x282   : > { %v3960_v61 = vpop.eup %3959  ;;  %v2873_v37 = vadd.f32 %v2869_v22, %v2829_v45  ;;  %v2963_v50 = vmax.f32 %v2959_v62, 0.0  ;;  %v2998_v10 = vadd.f32 %v5716_v9, %v5571_v47  ;;  %v2999_v35 = vadd.f32 %v5728_v2, %v5579_v17 }
 0x283   : > { %v3962_v3 = vpop.eup %3961  ;;  %v2894_v19 = vadd.f32 %v3960_v61, %v2854_v11  ;;  %v2908_v58 = vmul.f32 %v3960_v61, %v5191_v57  ;;  %v2964_v63 = vsub.f32 %v2960_v54, %v5739_v42  ;;  %v2965_v36 = vsub.f32 %v2961_v5, %v5749_v55 }
 0x284   : > { %v3964_v16 = vpop.eup %3963  ;;  %v2895_v53 = vadd.f32 %v3962_v3, %v2855_v8  ;;  %v2909_v51 = vmul.f32 %v3962_v3, %v5202_v33  ;;  %v2966_v32 = vsub.f32 %v2962_v29, %v5734_v30  ;;  %v2967_v45 = vsub.f32 %v2963_v50, %v5744_v48 }
 0x285   : > { %v3966_v47 = vpop.eup %3965  ;;  %v2896_v28 = vadd.f32 %v3964_v16, %v2856_v39  ;;  %v2910_v17 = vmul.f32 %v3964_v16, %v5232_v20  ;;  %v2912_v15 = vadd.f32 %v2908_v58, %v2870_v38  ;;  %v2968_v27 = vmul.f32 1.442695, %v2964_v63 }
 0x286   : > { %v3968_v41 = vpop.eup %3967  ;;  %v2897_v57 = vadd.f32 %v3966_v47, %v2857_v49  ;;  %v2911_v13 = vmul.f32 %v3966_v47, %v5242_v23  ;;  %v2913_v7 = vadd.f32 %v2909_v51, %v2871_v21  ;;  %v2970_v4 = vmul.f32 1.442695, %v2965_v36 }
 0x287   : > { %v3970_v11 = vpop.eup %3969  ;;  %v2914_v59 = vadd.f32 %v2910_v17, %v2872_v52  ;;  %v2936_v18 = vadd.f32 %v3968_v41, %v2894_v19  ;;  %v2948_v33 = vmul.f32 %v3968_v41, %v5195_v44  ;;  %3975 = vpow2.f32 %v2968_v27  ;;  %v6432_v41 = vld [vmem:[#allocation45_spill] sm:$0xff] }
 0x288   : > { %v3972_v43 = vpop.eup %3971  ;;  %v2915_v8 = vadd.f32 %v2911_v13, %v2873_v37  ;;  %v2937_v56 = vadd.f32 %v3970_v11, %v2895_v53  ;;  %v2949_v60 = vmul.f32 %v3970_v11, %v5206_v24  ;;  %3977 = vpow2.f32 %v2970_v4 }
 0x289   : > { %v3974_v20 = vpop.eup %3973  ;;  %v2938_v6 = vadd.f32 %v3972_v43, %v2896_v28  ;;  %v2950_v39 = vmul.f32 %v3972_v43, %v5237_v25  ;;  %v2952_v46 = vadd.f32 %v2948_v33, %v2912_v15  ;;  %v2972_v23 = vmul.f32 1.442695, %v2966_v32  ;;  %v6431_v28 = vld [vmem:[#allocation43_spill] sm:$0xff] }
 0x28a   : > { %v2939_v38 = vadd.f32 %v3974_v20, %v2897_v57  ;;  %v2951_v49 = vmul.f32 %v3974_v20, %v5244_v26  ;;  %v2953_v22 = vadd.f32 %v2949_v60, %v2913_v7  ;;  %v2974_v21 = vmul.f32 1.442695, %v2967_v45  ;;  %v6433_v20 = vld [vmem:[#allocation51_spill] sm:$0xff] }
 0x28b   : > { %v2954_v62 = vadd.f32 %v2950_v39, %v2914_v59  ;;  %3979 = vpow2.f32 %v2972_v23  ;;  %v3000_v44 = vadd.f32 %v5713_v12, %v5595_v40  ;;  %v3001_v24 = vadd.f32 %v5720_v31, %v5603_v14  ;;  %v6430_v14 = vld [vmem:[#allocation69_spill] sm:$0xff] }
 0x28c   : > { %v2955_v52 = vadd.f32 %v2951_v49, %v2915_v8  ;;  %3981 = vpow2.f32 %v2974_v21  ;;  %v3002_v54 = vmax.f32 %v2998_v10, 0.0  ;;  %v3003_v5 = vmax.f32 %v2999_v35, 0.0  ;;  %v6435_v21 = vld [vmem:[#allocation53_spill] sm:$0xff] }
 0x28d   : > { %v3004_v25 = vmax.f32 %v3000_v44, 0.0  ;;  %v3005_v29 = vmax.f32 %v3001_v24, 0.0  ;;  %v3038_v61 = vadd.f32 %v5716_v9, %v5575_v1  ;;  %v3039_v26 = vadd.f32 %v5728_v2, %v5583_v0 }
 0x28e   : > { %v3006_v37 = vsub.f32 %v3002_v54, %v5739_v42  ;;  %v3007_v50 = vsub.f32 %v3003_v5, %v5749_v55  ;;  %v3040_v40 = vadd.f32 %v5713_v12, %v5599_v34  ;;  %v3041_v3 = vadd.f32 %v5720_v31, %v6430_v14  ;;  %v6440_v14 = vld [vmem:[#allocation73_spill] sm:$0xff] }
 0x28f   : > { %v3008_v10 = vsub.f32 %v3004_v25, %v5734_v30  ;;  %v3009_v35 = vsub.f32 %v3005_v29, %v5744_v48  ;;  %v3042_v19 = vmax.f32 %v3038_v61, 0.0  ;;  %v3043_v58 = vmax.f32 %v3039_v26, 0.0  ;;  %v6438_v25 = vld [vmem:[#allocation70_spill] sm:$0xff] }
 0x290   : > { %v3010_v1 = vmul.f32 1.442695, %v3006_v37  ;;  %v3012_v63 = vmul.f32 1.442695, %v3007_v50  ;;  %v3044_v36 = vmax.f32 %v3040_v40, 0.0  ;;  %v3045_v0 = vmax.f32 %v3041_v3, 0.0 }
 0x291   : > { %v3976_v16 = vpop.eup %3975  ;;  %v3014_v53 = vmul.f32 1.442695, %v3008_v10  ;;  %v3016_v51 = vmul.f32 1.442695, %v3009_v35  ;;  %v3046_v32 = vsub.f32 %v3042_v19, %v5739_v42  ;;  %v3047_v34 = vsub.f32 %v3043_v58, %v5749_v55  ;;  %v6439_v50 = vld [vmem:[#allocation71_spill] sm:$0xff]  ;;  %v6442_v58 = vld [vmem:[#allocation81_spill] sm:$0xff] }
 0x292   : > { %v3978_v45 = vpop.eup %3977  ;;  %v2976_v47 = vadd.f32 %v3976_v16, %v2936_v18  ;;  %v2990_v17 = vmul.f32 %v3976_v16, %v6431_v28  ;;  %3983 = vpow2.f32 %v3010_v1  ;;  %v3048_v15 = vsub.f32 %v3044_v36, %v5734_v30  ;;  %v6441_v35 = vld [vmem:[#allocation79_spill] sm:$0xff] }
 0x293   : > { %v2977_v27 = vadd.f32 %v3978_v45, %v2937_v56  ;;  %v2991_v57 = vmul.f32 %v3978_v45, %v6432_v41  ;;  %3985 = vpow2.f32 %v3012_v63  ;;  %v3049_v13 = vsub.f32 %v3045_v0, %v5744_v48  ;;  %v6434_v56 = vld [vmem:[#allocation66_spill] sm:$0xff]  ;;  %v6444_v41 = vld [vmem:[#allocation47_spill] sm:$0xff] }
 0x294   : > { %v2994_v7 = vadd.f32 %v2990_v17, %v2952_v46  ;;  %3987 = vpow2.f32 %v3014_v53  ;;  %v3050_v4 = vmul.f32 1.442695, %v3046_v32  ;;  %v3052_v11 = vmul.f32 1.442695, %v3047_v34  ;;  %v6436_v46 = vld [vmem:[#allocation67_spill] sm:$0xff]  ;;  %v6443_v32 = vld [vmem:[#allocation44_spill] sm:$0xff] }
 0x295   : > { %v3980_v59 = vpop.eup %3979  ;;  %v2995_v33 = vadd.f32 %v2991_v57, %v2953_v22  ;;  %3989 = vpow2.f32 %v3016_v51  ;;  %v3054_v43 = vmul.f32 1.442695, %v3048_v15  ;;  %v3056_v18 = vmul.f32 1.442695, %v3049_v13  ;;  %v6437_v22 = vld [vmem:[#allocation68_spill] sm:$0xff] }
 0x296   : > { %v3982_v8 = vpop.eup %3981  ;;  %v2978_v60 = vadd.f32 %v3980_v59, %v2938_v6  ;;  %v2992_v39 = vmul.f32 %v3980_v59, %v6433_v20  ;;  %3991 = vpow2.f32 %v3050_v4  ;;  %v3080_v23 = vadd.f32 %v5716_v9, %v6434_v56  ;;  %v6446_v56 = vld [vmem:[#allocation55_spill] sm:$0xff] }
 0x297   : > { %v2979_v49 = vadd.f32 %v3982_v8, %v2939_v38  ;;  %v2993_v44 = vmul.f32 %v3982_v8, %v6435_v21  ;;  %3993 = vpow2.f32 %v3052_v11  ;;  %v3081_v24 = vadd.f32 %v5728_v2, %v6436_v46 }
 0x298   : > { %v2996_v54 = vadd.f32 %v2992_v39, %v2954_v62  ;;  %3995 = vpow2.f32 %v3054_v43  ;;  %v3082_v5 = vadd.f32 %v5713_v12, %v6437_v22  ;;  %v3083_v6 = vadd.f32 %v5720_v31, %v6438_v25  ;;  %v6445_v43 = vld [vmem:[#allocation52_spill] sm:$0xff] }
 0x299   : > { %v2997_v29 = vadd.f32 %v2993_v44, %v2955_v52  ;;  %3997 = vpow2.f32 %v3056_v18  ;;  %v3084_v61 = vmax.f32 %v3080_v23, 0.0  ;;  %v3085_v26 = vmax.f32 %v3081_v24, 0.0 }
 0x29a   : > { %v3086_v37 = vmax.f32 %v3082_v5, 0.0  ;;  %v3087_v38 = vmax.f32 %v3083_v6, 0.0  ;;  %v3120_v40 = vadd.f32 %v5716_v9, %v6439_v50  ;;  %v3121_v3 = vadd.f32 %v5728_v2, %v6440_v14  ;;  %v6450_v50 = vld [vmem:[#allocation57_spill] sm:$0xff] }
 0x29b   : > { %v3088_v62 = vsub.f32 %v3084_v61, %v5739_v42  ;;  %v3089_v10 = vsub.f32 %v3085_v26, %v5749_v55  ;;  %v3122_v19 = vadd.f32 %v5713_v12, %v6441_v35  ;;  %v3123_v52 = vadd.f32 %v5720_v31, %v6442_v58  ;;  %v6449_v26 = vld [vmem:[#allocation54_spill] sm:$0xff] }
 0x29c   : > { %v3984_v1 = vpop.eup %3983  ;;  %v3090_v63 = vsub.f32 %v3086_v37, %v5734_v30  ;;  %v3091_v36 = vsub.f32 %v3087_v38, %v5744_v48  ;;  %v3124_v0 = vmax.f32 %v3120_v40, 0.0  ;;  %v3125_v16 = vmax.f32 %v3121_v3, 0.0 }
 0x29d   : > { %v3986_v53 = vpop.eup %3985  ;;  %v3018_v51 = vadd.f32 %v3984_v1, %v2976_v47  ;;  %v3030_v34 = vmul.f32 %v3984_v1, %v6443_v32  ;;  %v3092_v45 = vmul.f32 1.442695, %v3088_v62  ;;  %v3094_v28 = vmul.f32 1.442695, %v3089_v10  ;;  %v6451_v1 = vld [vmem:[#allocation72_spill] sm:$0xff] }
 0x29e   : > { %v3988_v17 = vpop.eup %3987  ;;  %v3019_v15 = vadd.f32 %v3986_v53, %v2977_v27  ;;  %v3031_v57 = vmul.f32 %v3986_v53, %v6444_v41  ;;  %v3096_v13 = vmul.f32 1.442695, %v3090_v63  ;;  %v3098_v4 = vmul.f32 1.442695, %v3091_v36  ;;  %v6447_v27 = vld [vmem:[#allocation46_spill] sm:$0xff]  ;;  %v6452_v36 = vld [vmem:[#allocation75_spill] sm:$0xff] }
 0x29f   : > { %v3990_v11 = vpop.eup %3989  ;;  %v3020_v59 = vadd.f32 %v3988_v17, %v2978_v60  ;;  %v3032_v18 = vmul.f32 %v3988_v17, %v6445_v43  ;;  %v3034_v8 = vadd.f32 %v3030_v34, %v2994_v7  ;;  %3999 = vpow2.f32 %v3092_v45  ;;  %v6448_v60 = vld [vmem:[#allocation49_spill] sm:$0xff]  ;;  %v6454_v45 = vld [vmem:[#allocation83_spill] sm:$0xff] }
 0x2a0   : > { %v3992_v20 = vpop.eup %3991  ;;  %v3021_v39 = vadd.f32 %v3990_v11, %v2979_v49  ;;  %v3033_v47 = vmul.f32 %v3990_v11, %v6446_v56  ;;  %v3035_v23 = vadd.f32 %v3031_v57, %v2995_v33  ;;  %4001 = vpow2.f32 %v3094_v28  ;;  %v6455_v57 = vld [vmem:[#allocation74_spill] sm:$0xff] }
 0x2a1   : > { %v3994_v21 = vpop.eup %3993  ;;  %v3036_v44 = vadd.f32 %v3032_v18, %v2996_v54  ;;  %v3058_v46 = vadd.f32 %v3992_v20, %v3018_v51  ;;  %v3072_v24 = vmul.f32 %v3992_v20, %v6447_v27  ;;  %4003 = vpow2.f32 %v3096_v13  ;;  %v6457_v18 = vld [vmem:[#allocation48_spill] sm:$0xff] }
 0x2a2   : > { %v3996_v22 = vpop.eup %3995  ;;  %v3037_v5 = vadd.f32 %v3033_v47, %v2997_v29  ;;  %v3059_v25 = vadd.f32 %v3994_v21, %v3019_v15  ;;  %v3073_v6 = vmul.f32 %v3994_v21, %v6448_v60  ;;  %4005 = vpow2.f32 %v3098_v4  ;;  %v6456_v4 = vld [vmem:[#allocation77_spill] sm:$0xff]  ;;  %v6458_v47 = vld [vmem:[#allocation50_spill] sm:$0xff] }
 0x2a3   : > { %v3998_v7 = vpop.eup %3997  ;;  %v3060_v61 = vadd.f32 %v3996_v22, %v3020_v59  ;;  %v3074_v49 = vmul.f32 %v3996_v22, %v6449_v26  ;;  %v3076_v37 = vadd.f32 %v3072_v24, %v3034_v8  ;;  %v3126_v38 = vmax.f32 %v3122_v19, 0.0  ;;  %v6459_v24 = vld [vmem:[#allocation56_spill] sm:$0xff] }
 0x2a4   : > { %v3061_v33 = vadd.f32 %v3998_v7, %v3021_v39  ;;  %v3075_v40 = vmul.f32 %v3998_v7, %v6450_v50  ;;  %v3077_v54 = vadd.f32 %v3073_v6, %v3035_v23  ;;  %v3127_v14 = vmax.f32 %v3123_v52, 0.0  ;;  %v6453_v52 = vld [vmem:[#allocation80_spill] sm:$0xff]  ;;  %v6460_v6 = vld [vmem:[#allocation58_spill] sm:$0xff] }
 0x2a5   : > { %v3078_v3 = vadd.f32 %v3074_v49, %v3036_v44  ;;  %v3128_v62 = vsub.f32 %v3124_v0, %v5739_v42  ;;  %v3129_v29 = vsub.f32 %v3125_v16, %v5749_v55  ;;  %v3130_v10 = vsub.f32 %v3126_v38, %v5734_v30 }
 0x2a6   : > { %v3079_v35 = vadd.f32 %v3075_v40, %v3037_v5  ;;  %v3131_v58 = vsub.f32 %v3127_v14, %v5744_v48  ;;  %v3162_v63 = vadd.f32 %v5716_v9, %v6451_v1  ;;  %v3163_v19 = vadd.f32 %v5728_v2, %v6452_v36  ;;  %v6463_v36 = vld [vmem:[#allocation76_spill] sm:$0xff] }
 0x2a7   : > { %v3132_v53 = vmul.f32 1.442695, %v3128_v62  ;;  %v3134_v51 = vmul.f32 1.442695, %v3129_v29  ;;  %v3136_v32 = vmul.f32 1.442695, %v3130_v10  ;;  %v3164_v34 = vadd.f32 %v5713_v12, %v6453_v52 }
 0x2a8   : > { %v3138_v0 = vmul.f32 1.442695, %v3131_v58  ;;  %v3165_v16 = vadd.f32 %v5720_v31, %v6454_v45  ;;  %v3166_v28 = vmax.f32 %v3162_v63, 0.0  ;;  %v3167_v17 = vmax.f32 %v3163_v19, 0.0  ;;  %v6461_v62 = vld [vmem:[#allocation82_spill] sm:$0xff]  ;;  %v6462_v29 = vld [vmem:[#allocation85_spill] sm:$0xff] }
 0x2a9   : > { %v4000_v15 = vpop.eup %3999  ;;  %4007 = vpow2.f32 %v3132_v53  ;;  %v3168_v41 = vmax.f32 %v3164_v34, 0.0  ;;  %v3202_v13 = vadd.f32 %v5716_v9, %v6455_v57  ;;  %v3203_v11 = vadd.f32 %v5728_v2, %v6456_v4  ;;  %v6464_v19 = vld [vmem:[#allocation78_spill] sm:$0xff]  ;;  %v6467_v4 = vld [vmem:[#allocation16_spill] sm:$0xff] }
 0x2aa   : > { %v4002_v59 = vpop.eup %4001  ;;  %v3100_v43 = vadd.f32 %v4000_v15, %v3058_v46  ;;  %v3112_v8 = vmul.f32 %v4000_v15, %v6457_v18  ;;  %4009 = vpow2.f32 %v3134_v51  ;;  %v3169_v20 = vmax.f32 %v3165_v16, 0.0  ;;  %v6465_v16 = vld [vmem:[#allocation14_spill] sm:$0xff]  ;;  %v6466_v15 = vld [vmem:[#allocation84_spill] sm:$0xff] }
 0x2ab   : > { %v4004_v39 = vpop.eup %4003  ;;  %v3101_v56 = vadd.f32 %v4002_v59, %v3059_v25  ;;  %v3113_v23 = vmul.f32 %v4002_v59, %v6458_v47  ;;  %4011 = vpow2.f32 %v3136_v32  ;;  %v3170_v21 = vsub.f32 %v3166_v28, %v5739_v42 }
 0x2ac   : > { %v4006_v44 = vpop.eup %4005  ;;  %v3102_v27 = vadd.f32 %v4004_v39, %v3060_v61  ;;  %v3114_v22 = vmul.f32 %v4004_v39, %v6459_v24  ;;  %v3116_v5 = vadd.f32 %v3112_v8, %v3076_v37  ;;  %4013 = vpow2.f32 %v3138_v0  ;;  %v6468_v39 = vld [vmem:[#allocation17_spill] sm:$0xff] }
 0x2ad   : > { %v3103_v60 = vadd.f32 %v4006_v44, %v3061_v33  ;;  %v3115_v46 = vmul.f32 %v4006_v44, %v6460_v6  ;;  %v3117_v7 = vadd.f32 %v3113_v23, %v3077_v54  ;;  %v3171_v26 = vsub.f32 %v3167_v17, %v5749_v55 }
 0x2ae   : > { %v3118_v49 = vadd.f32 %v3114_v22, %v3078_v3  ;;  %v3172_v25 = vsub.f32 %v3168_v41, %v5734_v30  ;;  %v3173_v38 = vsub.f32 %v3169_v20, %v5744_v48  ;;  %v3174_v50 = vmul.f32 1.442695, %v3170_v21 }
 0x2af   : > { %v3119_v40 = vadd.f32 %v3115_v46, %v3079_v35  ;;  %v3176_v14 = vmul.f32 1.442695, %v3171_v26  ;;  %v3204_v61 = vadd.f32 %v5713_v12, %v6461_v62  ;;  %v3205_v37 = vadd.f32 %v5720_v31, %v6462_v29  ;;  %v6470_v46 = vld [vmem:[#allocation86_spill] sm:$0xff]  ;;  %v6472_v62 = vld [vmem:[#allocation89_spill] sm:$0xff]  ;;  %v6473_v29 = vld [vmem:[#allocation15_spill] sm:$0xff] }
 0x2b0   : > { %4015 = vpow2.f32 %v3174_v50  ;;  %v3178_v33 = vmul.f32 1.442695, %v3172_v25  ;;  %v3180_v10 = vmul.f32 1.442695, %v3173_v38  ;;  %v3206_v54 = vmax.f32 %v3202_v13, 0.0 }
 0x2b1   : > { %4017 = vpow2.f32 %v3176_v14  ;;  %v3207_v58 = vmax.f32 %v3203_v11, 0.0  ;;  %v3208_v3 = vmax.f32 %v3204_v61, 0.0  ;;  %v3209_v1 = vmax.f32 %v3205_v37, 0.0 }
 0x2b2   : > { %4019 = vpow2.f32 %v3178_v33  ;;  %v3210_v63 = vsub.f32 %v3206_v54, %v5739_v42  ;;  %v3244_v35 = vadd.f32 %v5716_v9, %v6463_v36  ;;  %v3245_v53 = vadd.f32 %v5728_v2, %v6464_v19  ;;  %v6475_v19 = vld [vmem:[#allocation19_spill] sm:$0xff] }
 0x2b3   : > { %v4008_v51 = vpop.eup %4007  ;;  %4021 = vpow2.f32 %v3180_v10  ;;  %v3211_v32 = vsub.f32 %v3207_v58, %v5749_v55  ;;  %v3212_v52 = vsub.f32 %v3208_v3, %v5734_v30  ;;  %v3213_v34 = vsub.f32 %v3209_v1, %v5744_v48  ;;  %v6474_v58 = vld [vmem:[#allocation60_spill] sm:$0xff] }
 0x2b4   : > { %v4010_v0 = vpop.eup %4009  ;;  %v3140_v45 = vadd.f32 %v4008_v51, %v3100_v43  ;;  %v3154_v28 = vmul.f32 %v4008_v51, %v6465_v16  ;;  %v3214_v17 = vmul.f32 1.442695, %v3210_v63  ;;  %v3246_v41 = vadd.f32 %v5713_v12, %v6466_v15  ;;  %v6469_v43 = vld [vmem:[#allocation20_spill] sm:$0xff] }
 0x2b5   : > { %v4012_v57 = vpop.eup %4011  ;;  %v3141_v13 = vadd.f32 %v4010_v0, %v3101_v56  ;;  %v3155_v11 = vmul.f32 %v4010_v0, %v6467_v4  ;;  %v3216_v59 = vmul.f32 1.442695, %v3211_v32  ;;  %v3218_v18 = vmul.f32 1.442695, %v3212_v52 }
 0x2b6   : > { %v4014_v8 = vpop.eup %4013  ;;  %v3142_v20 = vadd.f32 %v4012_v57, %v3102_v27  ;;  %v3156_v47 = vmul.f32 %v4012_v57, %v6468_v39  ;;  %v3158_v23 = vadd.f32 %v3154_v28, %v3116_v5  ;;  %4023 = vpow2.f32 %v3214_v17  ;;  %v6471_v5 = vld [vmem:[#allocation87_spill] sm:$0xff] }
 0x2b7   : > { %v3143_v21 = vadd.f32 %v4014_v8, %v3103_v60  ;;  %v3157_v44 = vmul.f32 %v4014_v8, %v6469_v43  ;;  %v3159_v24 = vadd.f32 %v3155_v11, %v3117_v7  ;;  %4025 = vpow2.f32 %v3216_v59  ;;  %v6478_v11 = vld [vmem:[#allocation97_spill] sm:$0xff]  ;;  %v6480_v43 = vld [vmem:[#allocation62_spill] sm:$0xff] }
 0x2b8   : > { %v3160_v22 = vadd.f32 %v3156_v47, %v3118_v49  ;;  %4027 = vpow2.f32 %v3218_v18  ;;  %v3220_v6 = vmul.f32 1.442695, %v3213_v34  ;;  %v3247_v56 = vadd.f32 %v5720_v31, %v6470_v46  ;;  %v6476_v34 = vld [vmem:[#allocation22_spill] sm:$0xff] }
 0x2b9   : > { %v3161_v26 = vadd.f32 %v3157_v44, %v3119_v40  ;;  %v3248_v25 = vmax.f32 %v3244_v35, 0.0  ;;  %v3249_v38 = vmax.f32 %v3245_v53, 0.0  ;;  %v3250_v50 = vmax.f32 %v3246_v41, 0.0 }
 0x2ba   : > { %v4016_v27 = vpop.eup %4015  ;;  %4029 = vpow2.f32 %v3220_v6  ;;  %v3251_v14 = vmax.f32 %v3247_v56, 0.0  ;;  %v3284_v60 = vadd.f32 %v5716_v9, %v6471_v5  ;;  %v3285_v7 = vadd.f32 %v5728_v2, %v6472_v62  ;;  %v6481_v6 = vld [vmem:[#allocation21_spill] sm:$0xff] }
 0x2bb   : > { %v4018_v61 = vpop.eup %4017  ;;  %v3182_v49 = vadd.f32 %v4016_v27, %v3140_v45  ;;  %v3194_v37 = vmul.f32 %v4016_v27, %v6473_v29  ;;  %v3252_v33 = vsub.f32 %v3248_v25, %v5739_v42  ;;  %v3253_v40 = vsub.f32 %v3249_v38, %v5749_v55 }
 0x2bc   : > { %v4020_v10 = vpop.eup %4019  ;;  %v3183_v54 = vadd.f32 %v4018_v61, %v3141_v13  ;;  %v3195_v3 = vmul.f32 %v4018_v61, %v6474_v58  ;;  %v3254_v1 = vsub.f32 %v3250_v50, %v5734_v30  ;;  %v3255_v63 = vsub.f32 %v3251_v14, %v5744_v48  ;;  %v6477_v13 = vld [vmem:[#allocation95_spill] sm:$0xff] }
 0x2bd   : > { %v4022_v36 = vpop.eup %4021  ;;  %v3184_v35 = vadd.f32 %v4020_v10, %v3142_v20  ;;  %v3196_v53 = vmul.f32 %v4020_v10, %v6475_v19  ;;  %v3198_v51 = vadd.f32 %v3194_v37, %v3158_v23  ;;  %v3256_v32 = vmul.f32 1.442695, %v3252_v33  ;;  %v6479_v20 = vld [vmem:[#allocation59_spill] sm:$0xff]  ;;  %v6483_v33 = vld [vmem:[#allocation88_spill] sm:$0xff] }
 0x2be   : > { %v3185_v52 = vadd.f32 %v4022_v36, %v3143_v21  ;;  %v3197_v0 = vmul.f32 %v4022_v36, %v6476_v34  ;;  %v3199_v45 = vadd.f32 %v3195_v3, %v3159_v24  ;;  %v3258_v16 = vmul.f32 1.442695, %v3253_v40  ;;  %v6484_v58 = vld [vmem:[#allocation91_spill] sm:$0xff]  ;;  %v6487_v34 = vld [vmem:[#allocation90_spill] sm:$0xff] }
 0x2bf   : > { %v3200_v28 = vadd.f32 %v3196_v53, %v3160_v22  ;;  %4031 = vpow2.f32 %v3256_v32  ;;  %v3260_v17 = vmul.f32 1.442695, %v3254_v1  ;;  %v3262_v15 = vmul.f32 1.442695, %v3255_v63  ;;  %v6485_v1 = vld [vmem:[#allocation96_spill] sm:$0xff] }
 0x2c0   : > { %v4024_v41 = vpop.eup %4023  ;;  %v3201_v57 = vadd.f32 %v3197_v0, %v3161_v26  ;;  %4033 = vpow2.f32 %v3258_v16  ;;  %v3286_v4 = vadd.f32 %v5713_v12, %v6477_v13  ;;  %v3287_v59 = vadd.f32 %v5720_v31, %v6478_v11  ;;  %v6489_v13 = vld [vmem:[#allocation18_spill] sm:$0xff] }
 0x2c1   : > { %v4026_v18 = vpop.eup %4025  ;;  %v3222_v8 = vadd.f32 %v4024_v41, %v3182_v49  ;;  %v3236_v39 = vmul.f32 %v4024_v41, %v6479_v20  ;;  %4035 = vpow2.f32 %v3260_v17  ;;  %v3288_v47 = vmax.f32 %v3284_v60, 0.0  ;;  %v6482_v60 = vld [vmem:[#allocation64_spill] sm:$0xff]  ;;  %v6490_v20 = vld [vmem:[#allocation63_spill] sm:$0xff] }
 0x2c2   : > { %v4028_v23 = vpop.eup %4027  ;;  %v3223_v21 = vadd.f32 %v4026_v18, %v3183_v54  ;;  %v3237_v44 = vmul.f32 %v4026_v18, %v6480_v43  ;;  %4037 = vpow2.f32 %v3262_v15  ;;  %v3289_v24 = vmax.f32 %v3285_v7, 0.0 }
 0x2c3   : > { %v3224_v22 = vadd.f32 %v4028_v23, %v3184_v35  ;;  %v3238_v46 = vmul.f32 %v4028_v23, %v6481_v6  ;;  %v3240_v56 = vadd.f32 %v3236_v39, %v3198_v51  ;;  %v3290_v26 = vmax.f32 %v3286_v4, 0.0  ;;  %v6486_v35 = vld [vmem:[#allocation99_spill] sm:$0xff] }
 0x2c4   : > { %v4030_v25 = vpop.eup %4029  ;;  %v3241_v38 = vadd.f32 %v3237_v44, %v3199_v45  ;;  %v3291_v50 = vmax.f32 %v3287_v59, 0.0  ;;  %v3292_v27 = vsub.f32 %v3288_v47, %v5739_v42  ;;  %v3293_v14 = vsub.f32 %v3289_v24, %v5749_v55 }
 0x2c5   : > { %v3225_v5 = vadd.f32 %v4030_v25, %v3185_v52  ;;  %v3239_v62 = vmul.f32 %v4030_v25, %v6482_v60  ;;  %v3242_v61 = vadd.f32 %v3238_v46, %v3200_v28  ;;  %v3294_v49 = vsub.f32 %v3290_v26, %v5734_v30  ;;  %v6488_v28 = vld [vmem:[#allocation61_spill] sm:$0xff]  ;;  %v6493_v60 = vld [vmem:[#allocation98_spill] sm:$0xff] }
 0x2c6   : > { %v3295_v7 = vsub.f32 %v3291_v50, %v5744_v48  ;;  %v3296_v29 = vmul.f32 1.442695, %v3292_v27  ;;  %v3298_v37 = vmul.f32 1.442695, %v3293_v14  ;;  %v3326_v40 = vadd.f32 %v5716_v9, %v6483_v33  ;;  %v6492_v14 = vld [vmem:[#allocation93_spill] sm:$0xff] }
 0x2c7   : > { %v3243_v10 = vadd.f32 %v3239_v62, %v3201_v57  ;;  %v3300_v54 = vmul.f32 1.442695, %v3294_v49  ;;  %v3327_v3 = vadd.f32 %v5728_v2, %v6484_v58  ;;  %v3328_v63 = vadd.f32 %v5713_v12, %v6485_v1  ;;  %v6494_v62 = vld [vmem:[#allocation101_spill] sm:$0xff] }
 0x2c8   : > { %4039 = vpow2.f32 %v3296_v29  ;;  %v3302_v36 = vmul.f32 1.442695, %v3295_v7  ;;  %v3329_v19 = vadd.f32 %v5720_v31, %v6486_v35  ;;  %v3330_v53 = vmax.f32 %v3326_v40, 0.0  ;;  %v6495_v29 = vld [vmem:[#allocation92_spill] sm:$0xff] }
 0x2c9   : > { %v4032_v51 = vpop.eup %4031  ;;  %4041 = vpow2.f32 %v3298_v37  ;;  %v3331_v32 = vmax.f32 %v3327_v3, 0.0  ;;  %v3332_v52 = vmax.f32 %v3328_v63, 0.0  ;;  %v3366_v0 = vadd.f32 %v5716_v9, %v6487_v34  ;;  %v6497_v63 = vld [vmem:[#allocation24_spill] sm:$0xff] }
 0x2ca   : > { %v4034_v45 = vpop.eup %4033  ;;  %v3264_v16 = vadd.f32 %v4032_v51, %v3222_v8  ;;  %v3276_v17 = vmul.f32 %v4032_v51, %v6488_v28  ;;  %4043 = vpow2.f32 %v3300_v54  ;;  %v3333_v15 = vmax.f32 %v3329_v19, 0.0  ;;  %v6491_v8 = vld [vmem:[#allocation65_spill] sm:$0xff]  ;;  %v6496_v54 = vld [vmem:[#allocation94_spill] sm:$0xff] }
 0x2cb   : > { %v4036_v41 = vpop.eup %4035  ;;  %v3265_v57 = vadd.f32 %v4034_v45, %v3223_v21  ;;  %v3277_v4 = vmul.f32 %v4034_v45, %v6489_v13  ;;  %4045 = vpow2.f32 %v3302_v36  ;;  %v3334_v11 = vsub.f32 %v3330_v53, %v5739_v42  ;;  %v6498_v51 = vld [vmem:[#allocation25_spill] sm:$0xff]  ;;  %v6499_v45 = vld [vmem:[#allocation32_spill] sm:$0xff] }
 0x2cc   : > { %v4038_v59 = vpop.eup %4037  ;;  %v3266_v18 = vadd.f32 %v4036_v41, %v3224_v22  ;;  %v3278_v39 = vmul.f32 %v4036_v41, %v6490_v20  ;;  %v3280_v47 = vadd.f32 %v3276_v17, %v3240_v56  ;;  %v3335_v23 = vsub.f32 %v3331_v32, %v5749_v55 }
 0x2cd   : > { %v3267_v43 = vadd.f32 %v4038_v59, %v3225_v5  ;;  %v3279_v44 = vmul.f32 %v4038_v59, %v6491_v8  ;;  %v3281_v24 = vadd.f32 %v3277_v4, %v3241_v38  ;;  %v3336_v6 = vsub.f32 %v3332_v52, %v5734_v30  ;;  %v6502_v8 = vld [vmem:[#allocation102_spill] sm:$0xff] }
 0x2ce   : > { %v3282_v46 = vadd.f32 %v3278_v39, %v3242_v61  ;;  %v3337_v21 = vsub.f32 %v3333_v15, %v5744_v48  ;;  %v3338_v26 = vmul.f32 1.442695, %v3334_v11  ;;  %v3340_v25 = vmul.f32 1.442695, %v3335_v23  ;;  %v6500_v15 = vld [vmem:[#allocation33_spill] sm:$0xff]  ;;  %v6501_v39 = vld [vmem:[#allocation100_spill] sm:$0xff] }
 0x2cf   : > { %v3283_v50 = vadd.f32 %v3279_v44, %v3243_v10  ;;  %v3342_v27 = vmul.f32 1.442695, %v3336_v6  ;;  %v3367_v22 = vadd.f32 %v5728_v2, %v6492_v14  ;;  %v3368_v56 = vadd.f32 %v5713_v12, %v6493_v60 }
 0x2d0   : > { %4047 = vpow2.f32 %v3338_v26  ;;  %v3344_v5 = vmul.f32 1.442695, %v3337_v21  ;;  %v3369_v38 = vadd.f32 %v5720_v31, %v6494_v62  ;;  %v3370_v49 = vmax.f32 %v3366_v0, 0.0  ;;  %v6503_v26 = vld [vmem:[#allocation23_spill] sm:$0xff] }
 0x2d1   : > { %4049 = vpow2.f32 %v3340_v25  ;;  %v3371_v61 = vmax.f32 %v3367_v22, 0.0  ;;  %v3372_v7 = vmax.f32 %v3368_v56, 0.0  ;;  %v3408_v37 = vadd.f32 %v5716_v9, %v6495_v29  ;;  %v6504_v22 = vld [vmem:[#allocation26_spill] sm:$0xff] }
 0x2d2   : > { %v4040_v33 = vpop.eup %4039  ;;  %4051 = vpow2.f32 %v3342_v27  ;;  %v3373_v40 = vmax.f32 %v3369_v38, 0.0  ;;  %v3374_v10 = vsub.f32 %v3370_v49, %v5739_v42  ;;  %v3409_v58 = vadd.f32 %v5728_v2, %v6496_v54  ;;  %v6505_v38 = vld [vmem:[#allocation31_spill] sm:$0xff] }
 0x2d3   : > { %v4042_v3 = vpop.eup %4041  ;;  %v3304_v1 = vadd.f32 %v4040_v33, %v3264_v16  ;;  %v3318_v36 = vmul.f32 %v4040_v33, %v6497_v63  ;;  %4053 = vpow2.f32 %v3344_v5  ;;  %v3375_v35 = vsub.f32 %v3371_v61, %v5749_v55 }
 0x2d4   : > { %v4044_v19 = vpop.eup %4043  ;;  %v3305_v53 = vadd.f32 %v4042_v3, %v3265_v57  ;;  %v3319_v32 = vmul.f32 %v4042_v3, %v6498_v51  ;;  %v3376_v9 = vsub.f32 %v3372_v7, %v5734_v30  ;;  %v3377_v52 = vsub.f32 %v3373_v40, %v5744_v48 }
 0x2d5   : > { %v4046_v34 = vpop.eup %4045  ;;  %v3306_v0 = vadd.f32 %v4044_v19, %v3266_v18  ;;  %v3320_v28 = vmul.f32 %v4044_v19, %v6499_v45  ;;  %v3322_v2 = vadd.f32 %v3318_v36, %v3280_v47  ;;  %v3378_v17 = vmul.f32 1.442695, %v3374_v10  ;;  %v6508_v19 = vld [vmem:[#allocation29_spill] sm:$0xff] }
 0x2d6   : > { %v3307_v16 = vadd.f32 %v4046_v34, %v3267_v43  ;;  %v3321_v41 = vmul.f32 %v4046_v34, %v6500_v15  ;;  %v3323_v13 = vadd.f32 %v3319_v32, %v3281_v24  ;;  %v3380_v4 = vmul.f32 1.442695, %v3375_v35  ;;  %v6510_v45 = vld [vmem:[#allocation37_spill] sm:$0xff] }
 0x2d7   : > { %v3324_v11 = vadd.f32 %v3320_v28, %v3282_v46  ;;  %4055 = vpow2.f32 %v3378_v17  ;;  %v3382_v57 = vmul.f32 1.442695, %v3376_v9  ;;  %v3384_v59 = vmul.f32 1.442695, %v3377_v52  ;;  %v6509_v9 = vld [vmem:[#allocation36_spill] sm:$0xff] }
 0x2d8   : > { %v3325_v20 = vadd.f32 %v3321_v41, %v3283_v50  ;;  %4057 = vpow2.f32 %v3380_v4  ;;  %v3410_v23 = vadd.f32 %v5713_v12, %v6501_v39  ;;  %v3411_v18 = vadd.f32 %v5720_v31, %v6502_v8  ;;  %v6511_v4 = vld [vmem:[#allocation27_spill] sm:$0xff] }
 0x2d9   : > { %4059 = vpow2.f32 %v3382_v57  ;;  %v3412_v47 = vmax.f32 %v3408_v37, 0.0  ;;  %v3413_v44 = vmax.f32 %v3409_v58, 0.0  ;;  %v6506_v37 = vld [vmem:[#allocation34_spill] sm:$0xff] }
 0x2da   : > { %v4048_v43 = vpop.eup %4047  ;;  %4061 = vpow2.f32 %v3384_v59  ;;  %v3414_v6 = vmax.f32 %v3410_v23, 0.0  ;;  %v3415_v24 = vmax.f32 %v3411_v18, 0.0  ;;  %v6513_v18 = vld [vmem:[#allocation35_spill] sm:$0xff] }
 0x2db   : > { %v4050_v21 = vpop.eup %4049  ;;  %v3346_v46 = vadd.f32 %v4048_v43, %v3304_v1  ;;  %v3358_v25 = vmul.f32 %v4048_v43, %v6503_v26  ;;  %v3416_v50 = vsub.f32 %v3412_v47, %v5739_v42  ;;  %v3417_v27 = vsub.f32 %v3413_v44, %v5749_v55  ;;  %v6507_v1 = vld [vmem:[#allocation28_spill] sm:$0xff] }
 0x2dc   : > { %v4052_v14 = vpop.eup %4051  ;;  %v3347_v12 = vadd.f32 %v4050_v21, %v3305_v53  ;;  %v3359_v60 = vmul.f32 %v4050_v21, %v6504_v22  ;;  %v3418_v31 = vsub.f32 %v3414_v6, %v5734_v30  ;;  %v3419_v56 = vsub.f32 %v3415_v24, %v5744_v48  ;;  %v6514_v6 = vld [vmem:[#allocation38_spill] sm:$0xff] }
 0x2dd   : > { %v4054_v5 = vpop.eup %4053  ;;  %v3348_v62 = vadd.f32 %v4052_v14, %v3306_v0  ;;  %v3360_v49 = vmul.f32 %v4052_v14, %v6505_v38  ;;  %v3362_v61 = vadd.f32 %v3358_v25, %v3322_v2  ;;  %v3420_v7 = vmul.f32 1.442695, %v3416_v50 }
 0x2de   : > { %v3349_v29 = vadd.f32 %v4054_v5, %v3307_v16  ;;  %v3361_v33 = vmul.f32 %v4054_v5, %v6506_v37  ;;  %v3363_v42 = vadd.f32 %v3359_v60, %v3323_v13  ;;  %v3422_v40 = vmul.f32 1.442695, %v3417_v27 }
 0x2df   : > { %v3364_v55 = vadd.f32 %v3360_v49, %v3324_v11  ;;  %4063 = vpow2.f32 %v3420_v7  ;;  %v3424_v10 = vmul.f32 1.442695, %v3418_v31  ;;  %v3426_v54 = vmul.f32 1.442695, %v3419_v56 }
 0x2e0   : > { %v3365_v58 = vadd.f32 %v3361_v33, %v3325_v20  ;;  %4065 = vpow2.f32 %v3422_v40  ;;  %v6512_v20 = vld [vmem:[#allocation30_spill] sm:$0xff] }
 0x2e1   : > { %v4056_v30 = vpop.eup %4055  ;;  %4067 = vpow2.f32 %v3424_v10 }
 0x2e2   : > { %v4058_v48 = vpop.eup %4057  ;;  %v3386_v3 = vadd.f32 %v4056_v30, %v3346_v46  ;;  %v3400_v63 = vmul.f32 %v4056_v30, %v6507_v1  ;;  %4069 = vpow2.f32 %v3426_v54 }
 0x2e3   : > { %v4060_v36 = vpop.eup %4059  ;;  %v3387_v35 = vadd.f32 %v4058_v48, %v3347_v12  ;;  %v3401_v53 = vmul.f32 %v4058_v48, %v6508_v19 }
 0x2e4   : > { %v4062_v51 = vpop.eup %4061  ;;  %v3388_v32 = vadd.f32 %v4060_v36, %v3348_v62  ;;  %v3402_v52 = vmul.f32 %v4060_v36, %v6509_v9  ;;  %v3404_v34 = vadd.f32 %v3400_v63, %v3362_v61 }
 0x2e5   : > { %v3389_v0 = vadd.f32 %v4062_v51, %v3349_v29  ;;  %v3403_v28 = vmul.f32 %v4062_v51, %v6510_v45  ;;  %v3405_v2 = vadd.f32 %v3401_v53, %v3363_v42 }
 0x2e6   : > { %v3406_v17 = vadd.f32 %v3402_v52, %v3364_v55 }
 0x2e7   : > { %v3407_v16 = vadd.f32 %v3403_v28, %v3365_v58 }
 0x2e9   : > { %v4064_v15 = vpop.eup %4063 }
 0x2ea   : > { %v4066_v41 = vpop.eup %4065  ;;  %v3428_v13 = vadd.f32 %v4064_v15, %v3386_v3  ;;  %v3440_v11 = vmul.f32 %v4064_v15, %v6511_v4 }
 0x2eb   : > { %v4068_v57 = vpop.eup %4067  ;;  %v3429_v59 = vadd.f32 %v4066_v41, %v3387_v35  ;;  %v3441_v39 = vmul.f32 %v4066_v41, %v6512_v20 }
 0x2ec   : > { %v4070_v23 = vpop.eup %4069  ;;  %v3430_v8 = vadd.f32 %v4068_v57, %v3388_v32  ;;  %v3442_v47 = vmul.f32 %v4068_v57, %v6513_v18  ;;  %v3444_v44 = vadd.f32 %v3440_v11, %v3404_v34  ;;  %4071 = vrcp.f32 %v3428_v13 }
 0x2ed   : > { %v3431_v43 = vadd.f32 %v4070_v23, %v3389_v0  ;;  %v3443_v24 = vmul.f32 %v4070_v23, %v6514_v6  ;;  %v3445_v21 = vadd.f32 %v3441_v39, %v3405_v2  ;;  %4073 = vrcp.f32 %v3429_v59 }
 0x2ee   : > { %v3446_v46 = vadd.f32 %v3442_v47, %v3406_v17  ;;  %4075 = vrcp.f32 %v3430_v8 }
 0x2ef   : > { %v3447_v26 = vadd.f32 %v3443_v24, %v3407_v16  ;;  %4077 = vrcp.f32 %v3431_v43 }
 0x2f6   : > { %v4072_v25 = vpop.eup %4071 }
 0x2f7   : > { %v4074_v50 = vpop.eup %4073  ;;  %v3452_v27 = vmul.f32 %v4072_v25, %v3444_v44 }
 0x2f8   : > { %v4076_v14 = vpop.eup %4075  ;;  %v3453_v12 = vmul.f32 %v4074_v50, %v3445_v21 }
 0x2f9   : > { %v4078_v22 = vpop.eup %4077  ;;  %v3454_v60 = vmul.f32 %v4076_v14, %v3446_v46  ;;  %3456 = vst [vmem:[%s441_s13] sm:$0xff] %v3452_v27 }
 0x2fa   : > { %v3455_v31 = vmul.f32 %v4078_v22, %v3447_v26  ;;  %3457 = vst [vmem:[%s441_s13 + $0x8] sm:$0xff] %v3453_v12 }
 0x2fb   : > { %3458 = vst [vmem:[%s441_s13 + $0x10] sm:$0xff] %v3454_v60 }
 0x2fc   : > { %3459 = vst [vmem:[%s441_s13 + $0x18] sm:$0xff] %v3455_v31 }
 0x2fd   : > { %4120 = shalt.err (!%p4117_p4)
}
 0x2fe   : > { %s4121_s18 = scalar_lea.hbm %s6000_s19, 512  ;;  %s4125_s9 = scalar_lea.hbm %s6061_s7, 2048 }
 0x2ff   : > { %p4122_p5 = scmp.ne.s32.totalorder %s6000_s19, %s4121_s18  ;;  %p4126_p12 = scmp.lt.u32.totalorder %s6000_s19, %s6061_s7 }
 0x300   : > { %p4127_p2 = scmp.lt.u32.totalorder %s4125_s9, %s4121_s18  ;;  %p4129_p8 = scmp.lt.u32.totalorder %s4121_s18, %s6000_s19 }
 0x301   : > { %p4123_p3 = pnand %p4122_p5, %p6515_p7 }
 0x302   : > { %p4128_p6 = por %p4127_p2, %p4126_p12 }
 0x303   : > { %p4124_p9 = pneg %p4123_p3 }
 0x304   : > { %p4130_p10 = por %p4129_p8, %p4128_p6 }
 0x306   : > { %p4131_p11 = pnand %p4130_p10, %p4124_p9 }
 0x308   : > { %4134 = shalt.err (!%p4131_p11)
}
 0x309   : > { %s4216_s13 = smov 128   ;;  %s4217_s12 = smov 256  }
 0x30a   : > { %s4218_s28 = smov 8  }
 0x30b   : > { %3840 = dma.vmem_to_hbm [thread:$0]  (%p6515_p7), %s5995_s11, 512, %s6000_s19, %s3461_s23, %s4216_s13, %s4217_s12, %s4218_s28  }
 0x30c PF: > { %s6516_s27 = sld [smem:[#allocation12_spill]]  ;;  %p3846_p13 = scmp.ge.s32.totalorder %s4205_s8, 2 }
 0x30d   : > { %s3490_s14 = sand.u32 1, %s4177_s24  }
 0x30e   : > { %s3491_s21 = scalar_lea.sflag [#allocation4], %s3490_s14 }
 0x312   : > { %p6517_p0 = scmp.ne.s32.totalorder %s6516_s27, 0 }
 0x314   : > { %p3843_p1 = pnand %p3846_p13, %p6517_p0 }
 0x316   : > { %4172 = dma.done.wait (!%p3843_p1), %s3491_s21, 512  }
 0x317   : > { %4174 = vsyncadd (!%p3843_p1), %s3491_s21, 4294966784  ;;  %s23_s8 = sadd.s32 1, %s4205_s8   ;;  %s6518_s1 = sld [smem:[#allocation9_spill]] }
 0x318   : > { %p20_p4 = scmp.ge.s32.totalorder %s23_s8, 6   ;;  %s6519_s26 = sld [smem:[#allocation13_spill]] }
 0x319   : > { %s6520_s16 = sld [smem:[#allocation10_spill]]  ;;  %s6521_s11 = sld [smem:[#allocation11_spill]] }
 0x31a   : > { %s6522_s24 = smov %s4181_s25  ;;  %s6524_s27 = smov %s4197_s29 }
 0x31b   : > { %s6525_s28 = smov %s4201_s30  ;;  %22 = sbr.rel (!%p20_p4) target bundleno = 9 (0x9), region = 148 }
 0x31d   : > { %s6523_s25 = smov %s6518_s1 }
 0x31f   : > { %s6526_s29 = smov %s6520_s16  ;;  %s6527_s30 = smov %s6521_s11 }
 0x322   :  { %3496 = vsyncpa [#allocation3], 1 }
 0x323   :  { %3498 = vsyncpa [#allocation3 + $0x1], 1 }
 0x324   :  { %3499 = vsyncpa [#allocation4], 1 }
 0x325   :  { %3501 = vsyncpa [#allocation4 + $0x1], 1 }

</bundles_post_ra>
